<compile_context>
chip_gen: v5e
topology: v5e:2x2
jax: 0.10.0
libtpu: 0.0.40
codegen_flags: <defaults>
</compile_context>

<pallas_src>
import functools

import jax
import jax.numpy as jnp
from jax.experimental import pallas as pl
from jax.experimental.pallas import tpu as pltpu


def encoder_kernel(x_ref, wqkv_ref, bqkv_ref, wo_ref, bo_ref,
                   g1_ref, b1_ref, wff_ref, bff_ref, g2_ref, b2_ref,
                   out_ref, attn_ref, *, num_layers, num_heads, batch, seq):
    B, S, H = batch, seq, num_heads
    x = x_ref[...]                                   # (B*S, E) f32, whole batch
    E = x.shape[-1]
    dh = E // H

    for l in range(num_layers):                      # static unroll over layers
        # --- fused QKV projection: one (B*S, E) @ (E, 3E) MXU matmul.
        #     1/sqrt(dh) is pre-folded into the Wq / bq columns at pack time.
        xb = x.astype(jnp.bfloat16)
        qkv = jnp.dot(xb, wqkv_ref[l],
                      preferred_element_type=jnp.float32) + bqkv_ref[l]

        # --- head split: static row/lane slices -> (B*H, S, dh) batches ---
        q_blk, k_blk, v_blk = [], [], []
        for b in range(B):
            row = qkv[b * S:(b + 1) * S, :]          # (S, 3E)
            for h in range(H):
                q_blk.append(row[:, h * dh:(h + 1) * dh])
                k_blk.append(row[:, E + h * dh:E + (h + 1) * dh])
                v_blk.append(row[:, 2 * E + h * dh:2 * E + (h + 1) * dh])
        q = jnp.stack(q_blk).astype(jnp.bfloat16)    # (B*H, S, dh)
        k = jnp.stack(k_blk).astype(jnp.bfloat16)
        v = jnp.stack(v_blk).astype(jnp.bfloat16)

        # --- (B*H)-batched scaled dot-product attention ---
        s = jnp.einsum("nqd,nkd->nqk", q, k,
                       preferred_element_type=jnp.float32)     # (B*H, S, S)
        s = s - jnp.max(s, axis=-1, keepdims=True)
        p = jnp.exp(s)
        p = p / jnp.sum(p, axis=-1, keepdims=True)   # exact softmax probs
        attn_ref[l] = p                               # per-layer attn scores
        ctx = jnp.einsum("nqk,nkd->nqd", p.astype(jnp.bfloat16), v,
                         preferred_element_type=jnp.float32)   # (B*H, S, dh)

        # --- merge heads back to (B*S, E) lanes + single Wo matmul ---
        ctx2d = jnp.concatenate(
            [jnp.concatenate([ctx[b * H + h] for h in range(H)], axis=-1)
             for b in range(B)], axis=0).astype(jnp.bfloat16)  # (B*S, E)
        mha = jnp.dot(ctx2d, wo_ref[l],
                      preferred_element_type=jnp.float32) + bo_ref[l]

        # --- residual + LayerNorm (mid) ---
        h1 = x + mha
        c1 = h1 - jnp.mean(h1, axis=-1, keepdims=True)
        var1 = jnp.mean(c1 * c1, axis=-1, keepdims=True)
        h1n = c1 * jax.lax.rsqrt(var1 + 1e-5) * g1_ref[l] + b1_ref[l]

        # --- feed-forward Linear(E -> E), residual + LayerNorm (out) ---
        ff = jnp.dot(h1n.astype(jnp.bfloat16), wff_ref[l],
                     preferred_element_type=jnp.float32) + bff_ref[l]
        h2 = h1n + ff
        c2 = h2 - jnp.mean(h2, axis=-1, keepdims=True)
        var2 = jnp.mean(c2 * c2, axis=-1, keepdims=True)
        x = c2 * jax.lax.rsqrt(var2 + 1e-5) * g2_ref[l] + b2_ref[l]

        out_ref[l] = x                                # (B*S, E) per-layer output


@functools.partial(jax.jit, static_argnames=("num_heads", "num_layers"))
def transformer_encoder_forward(x, packed_params, num_heads, num_layers):
    """Single fused pallas_call over all layers; batch folded into one step."""
    B, S, E = x.shape
    x2d = x.reshape(B * S, E)

    in_specs = [pl.BlockSpec((B * S, E), lambda i: (0, 0))]
    for p in packed_params:
        in_specs.append(pl.BlockSpec(p.shape, lambda i, n=p.ndim: (0,) * n))

    out_specs = (
        pl.BlockSpec((num_layers, B * S, E), lambda i: (0, 0, 0)),
        pl.BlockSpec((num_layers, B * num_heads, S, S), lambda i: (0, 0, 0, 0)),
    )
    out_shape = (
        jax.ShapeDtypeStruct((num_layers, B * S, E), jnp.float32),
        jax.ShapeDtypeStruct((num_layers, B * num_heads, S, S), jnp.float32),
    )

    kernel = functools.partial(encoder_kernel, num_layers=num_layers,
                               num_heads=num_heads, batch=B, seq=S)
    outs_flat, attn_flat = pl.pallas_call(
        kernel,
        out_shape=out_shape,
        grid_spec=pltpu.PrefetchScalarGridSpec(
            num_scalar_prefetch=0,
            grid=(1,),
            in_specs=in_specs,
            out_specs=out_specs,
        ),
        compiler_params=pltpu.CompilerParams(
            dimension_semantics=("arbitrary",)),
    )(x2d, *packed_params)

    outs = outs_flat.reshape(num_layers, B, S, E)
    attns = attn_flat.reshape(num_layers, B, num_heads, S, S)
    return outs, attns


def transformer_encoder(x, packed_params, num_heads, num_layers):
    """Mirrors TransformerEncoder.forward ('abs' positional-encoding path)."""
    outs, attns = transformer_encoder_forward(
        x, packed_params, num_heads=num_heads, num_layers=num_layers)
    output_list = [outs[l] for l in range(num_layers)]
    attn_score_list = [attns[l] for l in range(num_layers)]
    return output_list[-1], output_list, attn_score_list


def init_block_params(key, emb_dim):
    """Deterministic synthetic params for one encoder block."""
    ks = jax.random.split(key, 6)
    std = 0.02
    zeros = jnp.zeros((1, emb_dim), jnp.float32)
    ones = jnp.ones((1, emb_dim), jnp.float32)
    return {
        "wq": std * jax.random.normal(ks[0], (emb_dim, emb_dim), jnp.float32),
        "bq": zeros,
        "wk": std * jax.random.normal(ks[1], (emb_dim, emb_dim), jnp.float32),
        "bk": zeros,
        "wv": std * jax.random.normal(ks[2], (emb_dim, emb_dim), jnp.float32),
        "bv": zeros,
        "wo": std * jax.random.normal(ks[3], (emb_dim, emb_dim), jnp.float32),
        "bo": zeros,
        "ln1_g": ones, "ln1_b": zeros,
        "wff": std * jax.random.normal(ks[4], (emb_dim, emb_dim), jnp.float32),
        "bff": std * jax.random.normal(ks[5], (1, emb_dim), jnp.float32),
        "ln2_g": ones, "ln2_b": zeros,
    }


def pack_params(layer_params, num_heads):
    """Pack per-layer params once (leading dim = L) for the fused kernel.

    Wq/Wk/Wv concatenated along output lanes into (E, 3E); the attention
    scale 1/sqrt(dh) is folded into the Wq/bq columns.  Matmul weights bf16.
    """
    E = layer_params[0]["wq"].shape[0]
    dh = E // num_heads
    scale = 1.0 / float(dh) ** 0.5

    wqkv, bqkv, wo, bo, g1, b1, wff, bff, g2, b2 = ([] for _ in range(10))
    for p in layer_params:
        wqkv.append(jnp.concatenate(
            [p["wq"] * scale, p["wk"], p["wv"]], axis=1))      # (E, 3E)
        bqkv.append(jnp.concatenate(
            [p["bq"] * scale, p["bk"], p["bv"]], axis=1))      # (1, 3E)
        wo.append(p["wo"]); bo.append(p["bo"])
        g1.append(p["ln1_g"]); b1.append(p["ln1_b"])
        wff.append(p["wff"]); bff.append(p["bff"])
        g2.append(p["ln2_g"]); b2.append(p["ln2_b"])

    bf16 = jnp.bfloat16
    return (
        jnp.stack(wqkv).astype(bf16),   # (L, E, 3E)
        jnp.stack(bqkv),                # (L, 1, 3E) f32
        jnp.stack(wo).astype(bf16),     # (L, E, E)
        jnp.stack(bo),                  # (L, 1, E)
        jnp.stack(g1), jnp.stack(b1),   # (L, 1, E)
        jnp.stack(wff).astype(bf16),    # (L, E, E)
        jnp.stack(bff),                 # (L, 1, E)
        jnp.stack(g2), jnp.stack(b2),   # (L, 1, E)
    )


def reference_forward(x, layer_params, num_heads):
    """Pure-JAX f32 reference mirroring the PyTorch module (eval mode)."""
    B, S, E = x.shape
    H = num_heads
    dh = E // H
    scale = 1.0 / float(dh) ** 0.5

    def ln(t, g, b):
        m = t.mean(-1, keepdims=True)
        var = ((t - m) ** 2).mean(-1, keepdims=True)
        return (t - m) / jnp.sqrt(var + 1e-5) * g + b

    outs, attns = [], []
    h = x
    for p in layer_params:
        q = h @ p["wq"] + p["bq"]
        k = h @ p["wk"] + p["bk"]
        v = h @ p["wv"] + p["bv"]
        split = lambda t: t.reshape(B, S, H, dh).transpose(0, 2, 1, 3)
        s = jnp.einsum("bhqd,bhkd->bhqk", split(q), split(k)) * scale
        pa = jax.nn.softmax(s, axis=-1)
        ctx = jnp.einsum("bhqk,bhkd->bhqd", pa, split(v))
        ctx = ctx.transpose(0, 2, 1, 3).reshape(B, S, E)
        mha = ctx @ p["wo"] + p["bo"]
        h1 = ln(h + mha, p["ln1_g"], p["ln1_b"])
        ff = h1 @ p["wff"] + p["bff"]
        h = ln(h1 + ff, p["ln2_g"], p["ln2_b"])
        outs.append(h)
        attns.append(pa)
    return h, outs, attns


if __name__ == "__main__":
    B, S, E, H, L = 2, 8, 32, 4, 3

    key = jax.random.PRNGKey(0)
    k_in, k_params = jax.random.split(key)
    x = jax.random.normal(k_in, (B, S, E), jnp.float32)

    layer_keys = jax.random.split(k_params, L)
    all_params = [init_block_params(layer_keys[i], E) for i in range(L)]

    packed = pack_params(all_params, H)        # packed ONCE, reused per forward

    out, output_list, attn_score_list = transformer_encoder(x, packed, H, L)
    jax.block_until_ready(out)
    jax.block_until_ready(output_list)
    jax.block_until_ready(attn_score_list)

    assert out.shape == (B, S, E)
    assert len(output_list) == L and len(attn_score_list) == L
    assert output_list[-1].shape == (B, S, E)
    assert attn_score_list[0].shape == (B, H, S, S)

    # Sanity check against the pure-JAX f32 reference (loose tol: bf16 MXU).
    ref_out, _, ref_attns = reference_forward(x, all_params, H)
    assert bool(jnp.all(jnp.isfinite(out)))
    assert float(jnp.max(jnp.abs(out - ref_out))) < 1e-1
    assert float(jnp.max(jnp.abs(attn_score_list[-1] - ref_attns[-1]))) < 1e-1

    print("KERNEL_OK")
</pallas_src>

<mosaic_0001>
module attributes {stable_mosaic.version = 11 : i64} {
  func.func @encoder_kernel(%arg0: i32, %arg1: memref<16x32xf32, #tpu.memory_space<vmem>>, %arg2: memref<3x32x96xbf16, #tpu.memory_space<vmem>>, %arg3: memref<3x1x96xf32, #tpu.memory_space<vmem>>, %arg4: memref<3x32x32xbf16, #tpu.memory_space<vmem>>, %arg5: memref<3x1x32xf32, #tpu.memory_space<vmem>>, %arg6: memref<3x1x32xf32, #tpu.memory_space<vmem>>, %arg7: memref<3x1x32xf32, #tpu.memory_space<vmem>>, %arg8: memref<3x32x32xbf16, #tpu.memory_space<vmem>>, %arg9: memref<3x1x32xf32, #tpu.memory_space<vmem>>, %arg10: memref<3x1x32xf32, #tpu.memory_space<vmem>>, %arg11: memref<3x1x32xf32, #tpu.memory_space<vmem>>, %arg12: memref<3x16x32xf32, #tpu.memory_space<vmem>>, %arg13: memref<3x8x8x8xf32, #tpu.memory_space<vmem>>) attributes {dimension_semantics = [#tpu.dimension_semantics<arbitrary>], iteration_bounds = array<i64: 1>, scalar_prefetch = 0 : i64, scratch_operands = 0 : i64, tpu.core_type = #tpu.core_type<tc>, window_params = [{pipeline_mode = #tpu.pipeline_mode<synchronous>, transform_indices = @transform_0, window_bounds = array<i64: 16, 32>}, {pipeline_mode = #tpu.pipeline_mode<synchronous>, transform_indices = @transform_1, window_bounds = array<i64: 3, 32, 96>}, {pipeline_mode = #tpu.pipeline_mode<synchronous>, transform_indices = @transform_2, window_bounds = array<i64: 3, 1, 96>}, {pipeline_mode = #tpu.pipeline_mode<synchronous>, transform_indices = @transform_3, window_bounds = array<i64: 3, 32, 32>}, {pipeline_mode = #tpu.pipeline_mode<synchronous>, transform_indices = @transform_4, window_bounds = array<i64: 3, 1, 32>}, {pipeline_mode = #tpu.pipeline_mode<synchronous>, transform_indices = @transform_5, window_bounds = array<i64: 3, 1, 32>}, {pipeline_mode = #tpu.pipeline_mode<synchronous>, transform_indices = @transform_6, window_bounds = array<i64: 3, 1, 32>}, {pipeline_mode = #tpu.pipeline_mode<synchronous>, transform_indices = @transform_7, window_bounds = array<i64: 3, 32, 32>}, {pipeline_mode = #tpu.pipeline_mode<synchronous>, transform_indices = @transform_8, window_bounds = array<i64: 3, 1, 32>}, {pipeline_mode = #tpu.pipeline_mode<synchronous>, transform_indices = @transform_9, window_bounds = array<i64: 3, 1, 32>}, {pipeline_mode = #tpu.pipeline_mode<synchronous>, transform_indices = @transform_10, window_bounds = array<i64: 3, 1, 32>}, {pipeline_mode = #tpu.pipeline_mode<synchronous>, transform_indices = @transform_11, window_bounds = array<i64: 3, 16, 32>}, {pipeline_mode = #tpu.pipeline_mode<synchronous>, transform_indices = @transform_12, window_bounds = array<i64: 3, 8, 8, 8>}]} {
    %c0 = arith.constant 0 : index
    %c0_0 = arith.constant 0 : index
    %0 = vector.load %arg1[%c0, %c0_0] : memref<16x32xf32, #tpu.memory_space<vmem>>, vector<16x32xf32>
    %1 = arith.truncf %0 : vector<16x32xf32> to vector<16x32xbf16>
    %c0_1 = arith.constant 0 : index
    %c0_2 = arith.constant 0 : index
    %c0_3 = arith.constant 0 : index
    %2 = vector.load %arg2[%c0_1, %c0_2, %c0_3] : memref<3x32x96xbf16, #tpu.memory_space<vmem>>, vector<1x32x96xbf16>
    %3 = vector.shape_cast %2 : vector<1x32x96xbf16> to vector<32x96xbf16>
    %cst = arith.constant dense<0.000000e+00> : vector<16x96xf32>
    %4 = tpu.matmul %1, %3, %cst {dimension_numbers = #tpu.dot_dimension_numbers<[1], [0], [0], [1], [0, 0, 1, 1], [], []>} : vector<16x32xbf16>, vector<32x96xbf16>, vector<16x96xf32> -> vector<16x96xf32>
    %c0_4 = arith.constant 0 : index
    %c0_5 = arith.constant 0 : index
    %c0_6 = arith.constant 0 : index
    %5 = vector.load %arg3[%c0_4, %c0_5, %c0_6] : memref<3x1x96xf32, #tpu.memory_space<vmem>>, vector<1x1x96xf32>
    %6 = vector.shape_cast %5 : vector<1x1x96xf32> to vector<1x96xf32>
    %7 = vector.broadcast %6 : vector<1x96xf32> to vector<16x96xf32>
    %8 = arith.addf %4, %7 : vector<16x96xf32>
    %9 = vector.extract_strided_slice %8 {offsets = [0, 0], sizes = [8, 96], strides = [1, 1]} : vector<16x96xf32> to vector<8x96xf32>
    %10 = vector.extract_strided_slice %9 {offsets = [0, 0], sizes = [8, 8], strides = [1, 1]} : vector<8x96xf32> to vector<8x8xf32>
    %11 = vector.extract_strided_slice %9 {offsets = [0, 32], sizes = [8, 8], strides = [1, 1]} : vector<8x96xf32> to vector<8x8xf32>
    %12 = vector.extract_strided_slice %9 {offsets = [0, 64], sizes = [8, 8], strides = [1, 1]} : vector<8x96xf32> to vector<8x8xf32>
    %13 = vector.extract_strided_slice %9 {offsets = [0, 8], sizes = [8, 8], strides = [1, 1]} : vector<8x96xf32> to vector<8x8xf32>
    %14 = vector.extract_strided_slice %9 {offsets = [0, 40], sizes = [8, 8], strides = [1, 1]} : vector<8x96xf32> to vector<8x8xf32>
    %15 = vector.extract_strided_slice %9 {offsets = [0, 72], sizes = [8, 8], strides = [1, 1]} : vector<8x96xf32> to vector<8x8xf32>
    %16 = vector.extract_strided_slice %9 {offsets = [0, 16], sizes = [8, 8], strides = [1, 1]} : vector<8x96xf32> to vector<8x8xf32>
    %17 = vector.extract_strided_slice %9 {offsets = [0, 48], sizes = [8, 8], strides = [1, 1]} : vector<8x96xf32> to vector<8x8xf32>
    %18 = vector.extract_strided_slice %9 {offsets = [0, 80], sizes = [8, 8], strides = [1, 1]} : vector<8x96xf32> to vector<8x8xf32>
    %19 = vector.extract_strided_slice %9 {offsets = [0, 24], sizes = [8, 8], strides = [1, 1]} : vector<8x96xf32> to vector<8x8xf32>
    %20 = vector.extract_strided_slice %9 {offsets = [0, 56], sizes = [8, 8], strides = [1, 1]} : vector<8x96xf32> to vector<8x8xf32>
    %21 = vector.extract_strided_slice %9 {offsets = [0, 88], sizes = [8, 8], strides = [1, 1]} : vector<8x96xf32> to vector<8x8xf32>
    %22 = vector.extract_strided_slice %8 {offsets = [8, 0], sizes = [8, 96], strides = [1, 1]} : vector<16x96xf32> to vector<8x96xf32>
    %23 = vector.extract_strided_slice %22 {offsets = [0, 0], sizes = [8, 8], strides = [1, 1]} : vector<8x96xf32> to vector<8x8xf32>
    %24 = vector.extract_strided_slice %22 {offsets = [0, 32], sizes = [8, 8], strides = [1, 1]} : vector<8x96xf32> to vector<8x8xf32>
    %25 = vector.extract_strided_slice %22 {offsets = [0, 64], sizes = [8, 8], strides = [1, 1]} : vector<8x96xf32> to vector<8x8xf32>
    %26 = vector.extract_strided_slice %22 {offsets = [0, 8], sizes = [8, 8], strides = [1, 1]} : vector<8x96xf32> to vector<8x8xf32>
    %27 = vector.extract_strided_slice %22 {offsets = [0, 40], sizes = [8, 8], strides = [1, 1]} : vector<8x96xf32> to vector<8x8xf32>
    %28 = vector.extract_strided_slice %22 {offsets = [0, 72], sizes = [8, 8], strides = [1, 1]} : vector<8x96xf32> to vector<8x8xf32>
    %29 = vector.extract_strided_slice %22 {offsets = [0, 16], sizes = [8, 8], strides = [1, 1]} : vector<8x96xf32> to vector<8x8xf32>
    %30 = vector.extract_strided_slice %22 {offsets = [0, 48], sizes = [8, 8], strides = [1, 1]} : vector<8x96xf32> to vector<8x8xf32>
    %31 = vector.extract_strided_slice %22 {offsets = [0, 80], sizes = [8, 8], strides = [1, 1]} : vector<8x96xf32> to vector<8x8xf32>
    %32 = vector.extract_strided_slice %22 {offsets = [0, 24], sizes = [8, 8], strides = [1, 1]} : vector<8x96xf32> to vector<8x8xf32>
    %33 = vector.extract_strided_slice %22 {offsets = [0, 56], sizes = [8, 8], strides = [1, 1]} : vector<8x96xf32> to vector<8x8xf32>
    %34 = vector.extract_strided_slice %22 {offsets = [0, 88], sizes = [8, 8], strides = [1, 1]} : vector<8x96xf32> to vector<8x8xf32>
    %35 = vector.shape_cast %10 : vector<8x8xf32> to vector<1x8x8xf32>
    %36 = vector.shape_cast %13 : vector<8x8xf32> to vector<1x8x8xf32>
    %37 = vector.shape_cast %16 : vector<8x8xf32> to vector<1x8x8xf32>
    %38 = vector.shape_cast %19 : vector<8x8xf32> to vector<1x8x8xf32>
    %39 = vector.shape_cast %23 : vector<8x8xf32> to vector<1x8x8xf32>
    %40 = vector.shape_cast %26 : vector<8x8xf32> to vector<1x8x8xf32>
    %41 = vector.shape_cast %29 : vector<8x8xf32> to vector<1x8x8xf32>
    %42 = vector.shape_cast %32 : vector<8x8xf32> to vector<1x8x8xf32>
    %43 = tpu.concatenate %35, %36, %37, %38, %39, %40, %41, %42 in 0 : vector<1x8x8xf32>, vector<1x8x8xf32>, vector<1x8x8xf32>, vector<1x8x8xf32>, vector<1x8x8xf32>, vector<1x8x8xf32>, vector<1x8x8xf32>, vector<1x8x8xf32> -> vector<8x8x8xf32>
    %44 = arith.truncf %43 : vector<8x8x8xf32> to vector<8x8x8xbf16>
    %45 = vector.shape_cast %11 : vector<8x8xf32> to vector<1x8x8xf32>
    %46 = vector.shape_cast %14 : vector<8x8xf32> to vector<1x8x8xf32>
    %47 = vector.shape_cast %17 : vector<8x8xf32> to vector<1x8x8xf32>
    %48 = vector.shape_cast %20 : vector<8x8xf32> to vector<1x8x8xf32>
    %49 = vector.shape_cast %24 : vector<8x8xf32> to vector<1x8x8xf32>
    %50 = vector.shape_cast %27 : vector<8x8xf32> to vector<1x8x8xf32>
    %51 = vector.shape_cast %30 : vector<8x8xf32> to vector<1x8x8xf32>
    %52 = vector.shape_cast %33 : vector<8x8xf32> to vector<1x8x8xf32>
    %53 = tpu.concatenate %45, %46, %47, %48, %49, %50, %51, %52 in 0 : vector<1x8x8xf32>, vector<1x8x8xf32>, vector<1x8x8xf32>, vector<1x8x8xf32>, vector<1x8x8xf32>, vector<1x8x8xf32>, vector<1x8x8xf32>, vector<1x8x8xf32> -> vector<8x8x8xf32>
    %54 = arith.truncf %53 : vector<8x8x8xf32> to vector<8x8x8xbf16>
    %55 = vector.shape_cast %12 : vector<8x8xf32> to vector<1x8x8xf32>
    %56 = vector.shape_cast %15 : vector<8x8xf32> to vector<1x8x8xf32>
    %57 = vector.shape_cast %18 : vector<8x8xf32> to vector<1x8x8xf32>
    %58 = vector.shape_cast %21 : vector<8x8xf32> to vector<1x8x8xf32>
    %59 = vector.shape_cast %25 : vector<8x8xf32> to vector<1x8x8xf32>
    %60 = vector.shape_cast %28 : vector<8x8xf32> to vector<1x8x8xf32>
    %61 = vector.shape_cast %31 : vector<8x8xf32> to vector<1x8x8xf32>
    %62 = vector.shape_cast %34 : vector<8x8xf32> to vector<1x8x8xf32>
    %63 = tpu.concatenate %55, %56, %57, %58, %59, %60, %61, %62 in 0 : vector<1x8x8xf32>, vector<1x8x8xf32>, vector<1x8x8xf32>, vector<1x8x8xf32>, vector<1x8x8xf32>, vector<1x8x8xf32>, vector<1x8x8xf32>, vector<1x8x8xf32> -> vector<8x8x8xf32>
    %64 = arith.truncf %63 : vector<8x8x8xf32> to vector<8x8x8xbf16>
    "tpu.trace_start"() <{level = 10 : i32, message = "nqd,nkd->nqk"}> : () -> ()
    %cst_7 = arith.constant dense<0.000000e+00> : vector<8x8x8xf32>
    %65 = tpu.matmul %44, %54, %cst_7 {dimension_numbers = #tpu.dot_dimension_numbers<[2], [2], [1], [1], [0, 0, 0, 1, 1, 1], [0], [0]>} : vector<8x8x8xbf16>, vector<8x8x8xbf16>, vector<8x8x8xf32> -> vector<8x8x8xf32>
    "tpu.trace_stop"() : () -> ()
    %cst_8 = arith.constant dense<0xFF800000> : vector<8x8xf32>
    %66 = vector.multi_reduction <maximumf>, %65, %cst_8 [2] : vector<8x8x8xf32> to vector<8x8xf32>
    %67 = vector.shape_cast %66 : vector<8x8xf32> to vector<8x8x1xf32>
    %68 = vector.broadcast %67 : vector<8x8x1xf32> to vector<8x8x8xf32>
    %69 = arith.subf %65, %68 : vector<8x8x8xf32>
    %70 = math.exp %69 : vector<8x8x8xf32>
    %cst_9 = arith.constant dense<0.000000e+00> : vector<8x8xf32>
    %71 = vector.multi_reduction <add>, %70, %cst_9 [2] : vector<8x8x8xf32> to vector<8x8xf32>
    %72 = vector.shape_cast %71 : vector<8x8xf32> to vector<8x8x1xf32>
    %73 = vector.broadcast %72 : vector<8x8x1xf32> to vector<8x8x8xf32>
    %74 = arith.divf %70, %73 : vector<8x8x8xf32>
    %c0_10 = arith.constant 0 : index
    %c0_11 = arith.constant 0 : index
    %c0_12 = arith.constant 0 : index
    %c0_13 = arith.constant 0 : index
    %75 = vector.load %arg13[%c0_10, %c0_11, %c0_12, %c0_13] : memref<3x8x8x8xf32, #tpu.memory_space<vmem>>, vector<1x8x8x8xf32>
    %76 = vector.shape_cast %75 : vector<1x8x8x8xf32> to vector<8x8x8xf32>
    %77 = vector.shape_cast %74 : vector<8x8x8xf32> to vector<1x8x8x8xf32>
    tpu.vector_store %arg13[%c0_10, %c0_11, %c0_12, %c0_13], %77 {strides = array<i32>} : memref<3x8x8x8xf32, #tpu.memory_space<vmem>>, vector<1x8x8x8xf32>,
    %78 = arith.truncf %74 : vector<8x8x8xf32> to vector<8x8x8xbf16>
    "tpu.trace_start"() <{level = 10 : i32, message = "nqk,nkd->nqd"}> : () -> ()
    %cst_14 = arith.constant dense<0.000000e+00> : vector<8x8x8xf32>
    %79 = tpu.matmul %78, %64, %cst_14 {dimension_numbers = #tpu.dot_dimension_numbers<[2], [1], [1], [2], [0, 0, 0, 1, 1, 2], [0], [0]>} : vector<8x8x8xbf16>, vector<8x8x8xbf16>, vector<8x8x8xf32> -> vector<8x8x8xf32>
    "tpu.trace_stop"() : () -> ()
    %80 = vector.extract_strided_slice %79 {offsets = [0, 0, 0], sizes = [1, 8, 8], strides = [1, 1, 1]} : vector<8x8x8xf32> to vector<1x8x8xf32>
    %81 = vector.shape_cast %80 : vector<1x8x8xf32> to vector<8x8xf32>
    %82 = vector.extract_strided_slice %79 {offsets = [1, 0, 0], sizes = [1, 8, 8], strides = [1, 1, 1]} : vector<8x8x8xf32> to vector<1x8x8xf32>
    %83 = vector.shape_cast %82 : vector<1x8x8xf32> to vector<8x8xf32>
    %84 = vector.extract_strided_slice %79 {offsets = [2, 0, 0], sizes = [1, 8, 8], strides = [1, 1, 1]} : vector<8x8x8xf32> to vector<1x8x8xf32>
    %85 = vector.shape_cast %84 : vector<1x8x8xf32> to vector<8x8xf32>
    %86 = vector.extract_strided_slice %79 {offsets = [3, 0, 0], sizes = [1, 8, 8], strides = [1, 1, 1]} : vector<8x8x8xf32> to vector<1x8x8xf32>
    %87 = vector.shape_cast %86 : vector<1x8x8xf32> to vector<8x8xf32>
    %88 = tpu.concatenate %81, %83, %85, %87 in 1 : vector<8x8xf32>, vector<8x8xf32>, vector<8x8xf32>, vector<8x8xf32> -> vector<8x32xf32>
    %89 = vector.extract_strided_slice %79 {offsets = [4, 0, 0], sizes = [1, 8, 8], strides = [1, 1, 1]} : vector<8x8x8xf32> to vector<1x8x8xf32>
    %90 = vector.shape_cast %89 : vector<1x8x8xf32> to vector<8x8xf32>
    %91 = vector.extract_strided_slice %79 {offsets = [5, 0, 0], sizes = [1, 8, 8], strides = [1, 1, 1]} : vector<8x8x8xf32> to vector<1x8x8xf32>
    %92 = vector.shape_cast %91 : vector<1x8x8xf32> to vector<8x8xf32>
    %93 = vector.extract_strided_slice %79 {offsets = [6, 0, 0], sizes = [1, 8, 8], strides = [1, 1, 1]} : vector<8x8x8xf32> to vector<1x8x8xf32>
    %94 = vector.shape_cast %93 : vector<1x8x8xf32> to vector<8x8xf32>
    %95 = vector.extract_strided_slice %79 {offsets = [7, 0, 0], sizes = [1, 8, 8], strides = [1, 1, 1]} : vector<8x8x8xf32> to vector<1x8x8xf32>
    %96 = vector.shape_cast %95 : vector<1x8x8xf32> to vector<8x8xf32>
    %97 = tpu.concatenate %90, %92, %94, %96 in 1 : vector<8x8xf32>, vector<8x8xf32>, vector<8x8xf32>, vector<8x8xf32> -> vector<8x32xf32>
    %98 = tpu.concatenate %88, %97 in 0 : vector<8x32xf32>, vector<8x32xf32> -> vector<16x32xf32>
    %99 = arith.truncf %98 : vector<16x32xf32> to vector<16x32xbf16>
    %c0_15 = arith.constant 0 : index
    %c0_16 = arith.constant 0 : index
    %c0_17 = arith.constant 0 : index
    %100 = vector.load %arg4[%c0_15, %c0_16, %c0_17] : memref<3x32x32xbf16, #tpu.memory_space<vmem>>, vector<1x32x32xbf16>
    %101 = vector.shape_cast %100 : vector<1x32x32xbf16> to vector<32x32xbf16>
    %cst_18 = arith.constant dense<0.000000e+00> : vector<16x32xf32>
    %102 = tpu.matmul %99, %101, %cst_18 {dimension_numbers = #tpu.dot_dimension_numbers<[1], [0], [0], [1], [0, 0, 1, 1], [], []>} : vector<16x32xbf16>, vector<32x32xbf16>, vector<16x32xf32> -> vector<16x32xf32>
    %c0_19 = arith.constant 0 : index
    %c0_20 = arith.constant 0 : index
    %c0_21 = arith.constant 0 : index
    %103 = vector.load %arg5[%c0_19, %c0_20, %c0_21] : memref<3x1x32xf32, #tpu.memory_space<vmem>>, vector<1x1x32xf32>
    %104 = vector.shape_cast %103 : vector<1x1x32xf32> to vector<1x32xf32>
    %105 = vector.broadcast %104 : vector<1x32xf32> to vector<16x32xf32>
    %106 = arith.addf %102, %105 : vector<16x32xf32>
    %107 = arith.addf %0, %106 : vector<16x32xf32>
    %cst_22 = arith.constant dense<0.000000e+00> : vector<16xf32>
    %108 = vector.multi_reduction <add>, %107, %cst_22 [1] : vector<16x32xf32> to vector<16xf32>
    %109 = vector.shape_cast %108 : vector<16xf32> to vector<16x1xf32>
    %cst_23 = arith.constant 3.200000e+01 : f32
    %110 = vector.broadcast %cst_23 : f32 to vector<16x1xf32>
    %111 = arith.divf %109, %110 : vector<16x1xf32>
    %112 = vector.broadcast %111 : vector<16x1xf32> to vector<16x32xf32>
    %113 = arith.subf %107, %112 : vector<16x32xf32>
    %114 = arith.mulf %113, %113 : vector<16x32xf32>
    %cst_24 = arith.constant dense<0.000000e+00> : vector<16xf32>
    %115 = vector.multi_reduction <add>, %114, %cst_24 [1] : vector<16x32xf32> to vector<16xf32>
    %116 = vector.shape_cast %115 : vector<16xf32> to vector<16x1xf32>
    %cst_25 = arith.constant 3.200000e+01 : f32
    %117 = vector.broadcast %cst_25 : f32 to vector<16x1xf32>
    %118 = arith.divf %116, %117 : vector<16x1xf32>
    %cst_26 = arith.constant 9.99999974E-6 : f32
    %119 = vector.broadcast %cst_26 : f32 to vector<16x1xf32>
    %120 = arith.addf %118, %119 : vector<16x1xf32>
    %121 = math.rsqrt %120 : vector<16x1xf32>
    %122 = vector.broadcast %121 : vector<16x1xf32> to vector<16x32xf32>
    %123 = arith.mulf %113, %122 : vector<16x32xf32>
    %c0_27 = arith.constant 0 : index
    %c0_28 = arith.constant 0 : index
    %c0_29 = arith.constant 0 : index
    %124 = vector.load %arg6[%c0_27, %c0_28, %c0_29] : memref<3x1x32xf32, #tpu.memory_space<vmem>>, vector<1x1x32xf32>
    %125 = vector.shape_cast %124 : vector<1x1x32xf32> to vector<1x32xf32>
    %126 = vector.broadcast %125 : vector<1x32xf32> to vector<16x32xf32>
    %127 = arith.mulf %123, %126 : vector<16x32xf32>
    %c0_30 = arith.constant 0 : index
    %c0_31 = arith.constant 0 : index
    %c0_32 = arith.constant 0 : index
    %128 = vector.load %arg7[%c0_30, %c0_31, %c0_32] : memref<3x1x32xf32, #tpu.memory_space<vmem>>, vector<1x1x32xf32>
    %129 = vector.shape_cast %128 : vector<1x1x32xf32> to vector<1x32xf32>
    %130 = vector.broadcast %129 : vector<1x32xf32> to vector<16x32xf32>
    %131 = arith.addf %127, %130 : vector<16x32xf32>
    %132 = arith.truncf %131 : vector<16x32xf32> to vector<16x32xbf16>
    %c0_33 = arith.constant 0 : index
    %c0_34 = arith.constant 0 : index
    %c0_35 = arith.constant 0 : index
    %133 = vector.load %arg8[%c0_33, %c0_34, %c0_35] : memref<3x32x32xbf16, #tpu.memory_space<vmem>>, vector<1x32x32xbf16>
    %134 = vector.shape_cast %133 : vector<1x32x32xbf16> to vector<32x32xbf16>
    %cst_36 = arith.constant dense<0.000000e+00> : vector<16x32xf32>
    %135 = tpu.matmul %132, %134, %cst_36 {dimension_numbers = #tpu.dot_dimension_numbers<[1], [0], [0], [1], [0, 0, 1, 1], [], []>} : vector<16x32xbf16>, vector<32x32xbf16>, vector<16x32xf32> -> vector<16x32xf32>
    %c0_37 = arith.constant 0 : index
    %c0_38 = arith.constant 0 : index
    %c0_39 = arith.constant 0 : index
    %136 = vector.load %arg9[%c0_37, %c0_38, %c0_39] : memref<3x1x32xf32, #tpu.memory_space<vmem>>, vector<1x1x32xf32>
    %137 = vector.shape_cast %136 : vector<1x1x32xf32> to vector<1x32xf32>
    %138 = vector.broadcast %137 : vector<1x32xf32> to vector<16x32xf32>
    %139 = arith.addf %135, %138 : vector<16x32xf32>
    %140 = arith.addf %131, %139 : vector<16x32xf32>
    %cst_40 = arith.constant dense<0.000000e+00> : vector<16xf32>
    %141 = vector.multi_reduction <add>, %140, %cst_40 [1] : vector<16x32xf32> to vector<16xf32>
    %142 = vector.shape_cast %141 : vector<16xf32> to vector<16x1xf32>
    %cst_41 = arith.constant 3.200000e+01 : f32
    %143 = vector.broadcast %cst_41 : f32 to vector<16x1xf32>
    %144 = arith.divf %142, %143 : vector<16x1xf32>
    %145 = vector.broadcast %144 : vector<16x1xf32> to vector<16x32xf32>
    %146 = arith.subf %140, %145 : vector<16x32xf32>
    %147 = arith.mulf %146, %146 : vector<16x32xf32>
    %cst_42 = arith.constant dense<0.000000e+00> : vector<16xf32>
    %148 = vector.multi_reduction <add>, %147, %cst_42 [1] : vector<16x32xf32> to vector<16xf32>
    %149 = vector.shape_cast %148 : vector<16xf32> to vector<16x1xf32>
    %cst_43 = arith.constant 3.200000e+01 : f32
    %150 = vector.broadcast %cst_43 : f32 to vector<16x1xf32>
    %151 = arith.divf %149, %150 : vector<16x1xf32>
    %cst_44 = arith.constant 9.99999974E-6 : f32
    %152 = vector.broadcast %cst_44 : f32 to vector<16x1xf32>
    %153 = arith.addf %151, %152 : vector<16x1xf32>
    %154 = math.rsqrt %153 : vector<16x1xf32>
    %155 = vector.broadcast %154 : vector<16x1xf32> to vector<16x32xf32>
    %156 = arith.mulf %146, %155 : vector<16x32xf32>
    %c0_45 = arith.constant 0 : index
    %c0_46 = arith.constant 0 : index
    %c0_47 = arith.constant 0 : index
    %157 = vector.load %arg10[%c0_45, %c0_46, %c0_47] : memref<3x1x32xf32, #tpu.memory_space<vmem>>, vector<1x1x32xf32>
    %158 = vector.shape_cast %157 : vector<1x1x32xf32> to vector<1x32xf32>
    %159 = vector.broadcast %158 : vector<1x32xf32> to vector<16x32xf32>
    %160 = arith.mulf %156, %159 : vector<16x32xf32>
    %c0_48 = arith.constant 0 : index
    %c0_49 = arith.constant 0 : index
    %c0_50 = arith.constant 0 : index
    %161 = vector.load %arg11[%c0_48, %c0_49, %c0_50] : memref<3x1x32xf32, #tpu.memory_space<vmem>>, vector<1x1x32xf32>
    %162 = vector.shape_cast %161 : vector<1x1x32xf32> to vector<1x32xf32>
    %163 = vector.broadcast %162 : vector<1x32xf32> to vector<16x32xf32>
    %164 = arith.addf %160, %163 : vector<16x32xf32>
    %c0_51 = arith.constant 0 : index
    %c0_52 = arith.constant 0 : index
    %c0_53 = arith.constant 0 : index
    %165 = vector.load %arg12[%c0_51, %c0_52, %c0_53] : memref<3x16x32xf32, #tpu.memory_space<vmem>>, vector<1x16x32xf32>
    %166 = vector.shape_cast %165 : vector<1x16x32xf32> to vector<16x32xf32>
    %167 = vector.shape_cast %164 : vector<16x32xf32> to vector<1x16x32xf32>
    tpu.vector_store %arg12[%c0_51, %c0_52, %c0_53], %167 {strides = array<i32>} : memref<3x16x32xf32, #tpu.memory_space<vmem>>, vector<1x16x32xf32>,
    %168 = arith.truncf %164 : vector<16x32xf32> to vector<16x32xbf16>
    %c1 = arith.constant 1 : index
    %c0_54 = arith.constant 0 : index
    %c0_55 = arith.constant 0 : index
    %169 = vector.load %arg2[%c1, %c0_54, %c0_55] : memref<3x32x96xbf16, #tpu.memory_space<vmem>>, vector<1x32x96xbf16>
    %170 = vector.shape_cast %169 : vector<1x32x96xbf16> to vector<32x96xbf16>
    %cst_56 = arith.constant dense<0.000000e+00> : vector<16x96xf32>
    %171 = tpu.matmul %168, %170, %cst_56 {dimension_numbers = #tpu.dot_dimension_numbers<[1], [0], [0], [1], [0, 0, 1, 1], [], []>} : vector<16x32xbf16>, vector<32x96xbf16>, vector<16x96xf32> -> vector<16x96xf32>
    %c1_57 = arith.constant 1 : index
    %c0_58 = arith.constant 0 : index
    %c0_59 = arith.constant 0 : index
    %172 = vector.load %arg3[%c1_57, %c0_58, %c0_59] : memref<3x1x96xf32, #tpu.memory_space<vmem>>, vector<1x1x96xf32>
    %173 = vector.shape_cast %172 : vector<1x1x96xf32> to vector<1x96xf32>
    %174 = vector.broadcast %173 : vector<1x96xf32> to vector<16x96xf32>
    %175 = arith.addf %171, %174 : vector<16x96xf32>
    %176 = vector.extract_strided_slice %175 {offsets = [0, 0], sizes = [8, 96], strides = [1, 1]} : vector<16x96xf32> to vector<8x96xf32>
    %177 = vector.extract_strided_slice %176 {offsets = [0, 0], sizes = [8, 8], strides = [1, 1]} : vector<8x96xf32> to vector<8x8xf32>
    %178 = vector.extract_strided_slice %176 {offsets = [0, 32], sizes = [8, 8], strides = [1, 1]} : vector<8x96xf32> to vector<8x8xf32>
    %179 = vector.extract_strided_slice %176 {offsets = [0, 64], sizes = [8, 8], strides = [1, 1]} : vector<8x96xf32> to vector<8x8xf32>
    %180 = vector.extract_strided_slice %176 {offsets = [0, 8], sizes = [8, 8], strides = [1, 1]} : vector<8x96xf32> to vector<8x8xf32>
    %181 = vector.extract_strided_slice %176 {offsets = [0, 40], sizes = [8, 8], strides = [1, 1]} : vector<8x96xf32> to vector<8x8xf32>
    %182 = vector.extract_strided_slice %176 {offsets = [0, 72], sizes = [8, 8], strides = [1, 1]} : vector<8x96xf32> to vector<8x8xf32>
    %183 = vector.extract_strided_slice %176 {offsets = [0, 16], sizes = [8, 8], strides = [1, 1]} : vector<8x96xf32> to vector<8x8xf32>
    %184 = vector.extract_strided_slice %176 {offsets = [0, 48], sizes = [8, 8], strides = [1, 1]} : vector<8x96xf32> to vector<8x8xf32>
    %185 = vector.extract_strided_slice %176 {offsets = [0, 80], sizes = [8, 8], strides = [1, 1]} : vector<8x96xf32> to vector<8x8xf32>
    %186 = vector.extract_strided_slice %176 {offsets = [0, 24], sizes = [8, 8], strides = [1, 1]} : vector<8x96xf32> to vector<8x8xf32>
    %187 = vector.extract_strided_slice %176 {offsets = [0, 56], sizes = [8, 8], strides = [1, 1]} : vector<8x96xf32> to vector<8x8xf32>
    %188 = vector.extract_strided_slice %176 {offsets = [0, 88], sizes = [8, 8], strides = [1, 1]} : vector<8x96xf32> to vector<8x8xf32>
    %189 = vector.extract_strided_slice %175 {offsets = [8, 0], sizes = [8, 96], strides = [1, 1]} : vector<16x96xf32> to vector<8x96xf32>
    %190 = vector.extract_strided_slice %189 {offsets = [0, 0], sizes = [8, 8], strides = [1, 1]} : vector<8x96xf32> to vector<8x8xf32>
    %191 = vector.extract_strided_slice %189 {offsets = [0, 32], sizes = [8, 8], strides = [1, 1]} : vector<8x96xf32> to vector<8x8xf32>
    %192 = vector.extract_strided_slice %189 {offsets = [0, 64], sizes = [8, 8], strides = [1, 1]} : vector<8x96xf32> to vector<8x8xf32>
    %193 = vector.extract_strided_slice %189 {offsets = [0, 8], sizes = [8, 8], strides = [1, 1]} : vector<8x96xf32> to vector<8x8xf32>
    %194 = vector.extract_strided_slice %189 {offsets = [0, 40], sizes = [8, 8], strides = [1, 1]} : vector<8x96xf32> to vector<8x8xf32>
    %195 = vector.extract_strided_slice %189 {offsets = [0, 72], sizes = [8, 8], strides = [1, 1]} : vector<8x96xf32> to vector<8x8xf32>
    %196 = vector.extract_strided_slice %189 {offsets = [0, 16], sizes = [8, 8], strides = [1, 1]} : vector<8x96xf32> to vector<8x8xf32>
    %197 = vector.extract_strided_slice %189 {offsets = [0, 48], sizes = [8, 8], strides = [1, 1]} : vector<8x96xf32> to vector<8x8xf32>
    %198 = vector.extract_strided_slice %189 {offsets = [0, 80], sizes = [8, 8], strides = [1, 1]} : vector<8x96xf32> to vector<8x8xf32>
    %199 = vector.extract_strided_slice %189 {offsets = [0, 24], sizes = [8, 8], strides = [1, 1]} : vector<8x96xf32> to vector<8x8xf32>
    %200 = vector.extract_strided_slice %189 {offsets = [0, 56], sizes = [8, 8], strides = [1, 1]} : vector<8x96xf32> to vector<8x8xf32>
    %201 = vector.extract_strided_slice %189 {offsets = [0, 88], sizes = [8, 8], strides = [1, 1]} : vector<8x96xf32> to vector<8x8xf32>
    %202 = vector.shape_cast %177 : vector<8x8xf32> to vector<1x8x8xf32>
    %203 = vector.shape_cast %180 : vector<8x8xf32> to vector<1x8x8xf32>
    %204 = vector.shape_cast %183 : vector<8x8xf32> to vector<1x8x8xf32>
    %205 = vector.shape_cast %186 : vector<8x8xf32> to vector<1x8x8xf32>
    %206 = vector.shape_cast %190 : vector<8x8xf32> to vector<1x8x8xf32>
    %207 = vector.shape_cast %193 : vector<8x8xf32> to vector<1x8x8xf32>
    %208 = vector.shape_cast %196 : vector<8x8xf32> to vector<1x8x8xf32>
    %209 = vector.shape_cast %199 : vector<8x8xf32> to vector<1x8x8xf32>
    %210 = tpu.concatenate %202, %203, %204, %205, %206, %207, %208, %209 in 0 : vector<1x8x8xf32>, vector<1x8x8xf32>, vector<1x8x8xf32>, vector<1x8x8xf32>, vector<1x8x8xf32>, vector<1x8x8xf32>, vector<1x8x8xf32>, vector<1x8x8xf32> -> vector<8x8x8xf32>
    %211 = arith.truncf %210 : vector<8x8x8xf32> to vector<8x8x8xbf16>
    %212 = vector.shape_cast %178 : vector<8x8xf32> to vector<1x8x8xf32>
    %213 = vector.shape_cast %181 : vector<8x8xf32> to vector<1x8x8xf32>
    %214 = vector.shape_cast %184 : vector<8x8xf32> to vector<1x8x8xf32>
    %215 = vector.shape_cast %187 : vector<8x8xf32> to vector<1x8x8xf32>
    %216 = vector.shape_cast %191 : vector<8x8xf32> to vector<1x8x8xf32>
    %217 = vector.shape_cast %194 : vector<8x8xf32> to vector<1x8x8xf32>
    %218 = vector.shape_cast %197 : vector<8x8xf32> to vector<1x8x8xf32>
    %219 = vector.shape_cast %200 : vector<8x8xf32> to vector<1x8x8xf32>
    %220 = tpu.concatenate %212, %213, %214, %215, %216, %217, %218, %219 in 0 : vector<1x8x8xf32>, vector<1x8x8xf32>, vector<1x8x8xf32>, vector<1x8x8xf32>, vector<1x8x8xf32>, vector<1x8x8xf32>, vector<1x8x8xf32>, vector<1x8x8xf32> -> vector<8x8x8xf32>
    %221 = arith.truncf %220 : vector<8x8x8xf32> to vector<8x8x8xbf16>
    %222 = vector.shape_cast %179 : vector<8x8xf32> to vector<1x8x8xf32>
    %223 = vector.shape_cast %182 : vector<8x8xf32> to vector<1x8x8xf32>
    %224 = vector.shape_cast %185 : vector<8x8xf32> to vector<1x8x8xf32>
    %225 = vector.shape_cast %188 : vector<8x8xf32> to vector<1x8x8xf32>
    %226 = vector.shape_cast %192 : vector<8x8xf32> to vector<1x8x8xf32>
    %227 = vector.shape_cast %195 : vector<8x8xf32> to vector<1x8x8xf32>
    %228 = vector.shape_cast %198 : vector<8x8xf32> to vector<1x8x8xf32>
    %229 = vector.shape_cast %201 : vector<8x8xf32> to vector<1x8x8xf32>
    %230 = tpu.concatenate %222, %223, %224, %225, %226, %227, %228, %229 in 0 : vector<1x8x8xf32>, vector<1x8x8xf32>, vector<1x8x8xf32>, vector<1x8x8xf32>, vector<1x8x8xf32>, vector<1x8x8xf32>, vector<1x8x8xf32>, vector<1x8x8xf32> -> vector<8x8x8xf32>
    %231 = arith.truncf %230 : vector<8x8x8xf32> to vector<8x8x8xbf16>
    "tpu.trace_start"() <{level = 10 : i32, message = "nqd,nkd->nqk"}> : () -> ()
    %cst_60 = arith.constant dense<0.000000e+00> : vector<8x8x8xf32>
    %232 = tpu.matmul %211, %221, %cst_60 {dimension_numbers = #tpu.dot_dimension_numbers<[2], [2], [1], [1], [0, 0, 0, 1, 1, 1], [0], [0]>} : vector<8x8x8xbf16>, vector<8x8x8xbf16>, vector<8x8x8xf32> -> vector<8x8x8xf32>
    "tpu.trace_stop"() : () -> ()
    %cst_61 = arith.constant dense<0xFF800000> : vector<8x8xf32>
    %233 = vector.multi_reduction <maximumf>, %232, %cst_61 [2] : vector<8x8x8xf32> to vector<8x8xf32>
    %234 = vector.shape_cast %233 : vector<8x8xf32> to vector<8x8x1xf32>
    %235 = vector.broadcast %234 : vector<8x8x1xf32> to vector<8x8x8xf32>
    %236 = arith.subf %232, %235 : vector<8x8x8xf32>
    %237 = math.exp %236 : vector<8x8x8xf32>
    %cst_62 = arith.constant dense<0.000000e+00> : vector<8x8xf32>
    %238 = vector.multi_reduction <add>, %237, %cst_62 [2] : vector<8x8x8xf32> to vector<8x8xf32>
    %239 = vector.shape_cast %238 : vector<8x8xf32> to vector<8x8x1xf32>
    %240 = vector.broadcast %239 : vector<8x8x1xf32> to vector<8x8x8xf32>
    %241 = arith.divf %237, %240 : vector<8x8x8xf32>
    %c1_63 = arith.constant 1 : index
    %c0_64 = arith.constant 0 : index
    %c0_65 = arith.constant 0 : index
    %c0_66 = arith.constant 0 : index
    %242 = vector.load %arg13[%c1_63, %c0_64, %c0_65, %c0_66] : memref<3x8x8x8xf32, #tpu.memory_space<vmem>>, vector<1x8x8x8xf32>
    %243 = vector.shape_cast %242 : vector<1x8x8x8xf32> to vector<8x8x8xf32>
    %244 = vector.shape_cast %241 : vector<8x8x8xf32> to vector<1x8x8x8xf32>
    tpu.vector_store %arg13[%c1_63, %c0_64, %c0_65, %c0_66], %244 {strides = array<i32>} : memref<3x8x8x8xf32, #tpu.memory_space<vmem>>, vector<1x8x8x8xf32>,
    %245 = arith.truncf %241 : vector<8x8x8xf32> to vector<8x8x8xbf16>
    "tpu.trace_start"() <{level = 10 : i32, message = "nqk,nkd->nqd"}> : () -> ()
    %cst_67 = arith.constant dense<0.000000e+00> : vector<8x8x8xf32>
    %246 = tpu.matmul %245, %231, %cst_67 {dimension_numbers = #tpu.dot_dimension_numbers<[2], [1], [1], [2], [0, 0, 0, 1, 1, 2], [0], [0]>} : vector<8x8x8xbf16>, vector<8x8x8xbf16>, vector<8x8x8xf32> -> vector<8x8x8xf32>
    "tpu.trace_stop"() : () -> ()
    %247 = vector.extract_strided_slice %246 {offsets = [0, 0, 0], sizes = [1, 8, 8], strides = [1, 1, 1]} : vector<8x8x8xf32> to vector<1x8x8xf32>
    %248 = vector.shape_cast %247 : vector<1x8x8xf32> to vector<8x8xf32>
    %249 = vector.extract_strided_slice %246 {offsets = [1, 0, 0], sizes = [1, 8, 8], strides = [1, 1, 1]} : vector<8x8x8xf32> to vector<1x8x8xf32>
    %250 = vector.shape_cast %249 : vector<1x8x8xf32> to vector<8x8xf32>
    %251 = vector.extract_strided_slice %246 {offsets = [2, 0, 0], sizes = [1, 8, 8], strides = [1, 1, 1]} : vector<8x8x8xf32> to vector<1x8x8xf32>
    %252 = vector.shape_cast %251 : vector<1x8x8xf32> to vector<8x8xf32>
    %253 = vector.extract_strided_slice %246 {offsets = [3, 0, 0], sizes = [1, 8, 8], strides = [1, 1, 1]} : vector<8x8x8xf32> to vector<1x8x8xf32>
    %254 = vector.shape_cast %253 : vector<1x8x8xf32> to vector<8x8xf32>
    %255 = tpu.concatenate %248, %250, %252, %254 in 1 : vector<8x8xf32>, vector<8x8xf32>, vector<8x8xf32>, vector<8x8xf32> -> vector<8x32xf32>
    %256 = vector.extract_strided_slice %246 {offsets = [4, 0, 0], sizes = [1, 8, 8], strides = [1, 1, 1]} : vector<8x8x8xf32> to vector<1x8x8xf32>
    %257 = vector.shape_cast %256 : vector<1x8x8xf32> to vector<8x8xf32>
    %258 = vector.extract_strided_slice %246 {offsets = [5, 0, 0], sizes = [1, 8, 8], strides = [1, 1, 1]} : vector<8x8x8xf32> to vector<1x8x8xf32>
    %259 = vector.shape_cast %258 : vector<1x8x8xf32> to vector<8x8xf32>
    %260 = vector.extract_strided_slice %246 {offsets = [6, 0, 0], sizes = [1, 8, 8], strides = [1, 1, 1]} : vector<8x8x8xf32> to vector<1x8x8xf32>
    %261 = vector.shape_cast %260 : vector<1x8x8xf32> to vector<8x8xf32>
    %262 = vector.extract_strided_slice %246 {offsets = [7, 0, 0], sizes = [1, 8, 8], strides = [1, 1, 1]} : vector<8x8x8xf32> to vector<1x8x8xf32>
    %263 = vector.shape_cast %262 : vector<1x8x8xf32> to vector<8x8xf32>
    %264 = tpu.concatenate %257, %259, %261, %263 in 1 : vector<8x8xf32>, vector<8x8xf32>, vector<8x8xf32>, vector<8x8xf32> -> vector<8x32xf32>
    %265 = tpu.concatenate %255, %264 in 0 : vector<8x32xf32>, vector<8x32xf32> -> vector<16x32xf32>
    %266 = arith.truncf %265 : vector<16x32xf32> to vector<16x32xbf16>
    %c1_68 = arith.constant 1 : index
    %c0_69 = arith.constant 0 : index
    %c0_70 = arith.constant 0 : index
    %267 = vector.load %arg4[%c1_68, %c0_69, %c0_70] : memref<3x32x32xbf16, #tpu.memory_space<vmem>>, vector<1x32x32xbf16>
    %268 = vector.shape_cast %267 : vector<1x32x32xbf16> to vector<32x32xbf16>
    %cst_71 = arith.constant dense<0.000000e+00> : vector<16x32xf32>
    %269 = tpu.matmul %266, %268, %cst_71 {dimension_numbers = #tpu.dot_dimension_numbers<[1], [0], [0], [1], [0, 0, 1, 1], [], []>} : vector<16x32xbf16>, vector<32x32xbf16>, vector<16x32xf32> -> vector<16x32xf32>
    %c1_72 = arith.constant 1 : index
    %c0_73 = arith.constant 0 : index
    %c0_74 = arith.constant 0 : index
    %270 = vector.load %arg5[%c1_72, %c0_73, %c0_74] : memref<3x1x32xf32, #tpu.memory_space<vmem>>, vector<1x1x32xf32>
    %271 = vector.shape_cast %270 : vector<1x1x32xf32> to vector<1x32xf32>
    %272 = vector.broadcast %271 : vector<1x32xf32> to vector<16x32xf32>
    %273 = arith.addf %269, %272 : vector<16x32xf32>
    %274 = arith.addf %164, %273 : vector<16x32xf32>
    %cst_75 = arith.constant dense<0.000000e+00> : vector<16xf32>
    %275 = vector.multi_reduction <add>, %274, %cst_75 [1] : vector<16x32xf32> to vector<16xf32>
    %276 = vector.shape_cast %275 : vector<16xf32> to vector<16x1xf32>
    %cst_76 = arith.constant 3.200000e+01 : f32
    %277 = vector.broadcast %cst_76 : f32 to vector<16x1xf32>
    %278 = arith.divf %276, %277 : vector<16x1xf32>
    %279 = vector.broadcast %278 : vector<16x1xf32> to vector<16x32xf32>
    %280 = arith.subf %274, %279 : vector<16x32xf32>
    %281 = arith.mulf %280, %280 : vector<16x32xf32>
    %cst_77 = arith.constant dense<0.000000e+00> : vector<16xf32>
    %282 = vector.multi_reduction <add>, %281, %cst_77 [1] : vector<16x32xf32> to vector<16xf32>
    %283 = vector.shape_cast %282 : vector<16xf32> to vector<16x1xf32>
    %cst_78 = arith.constant 3.200000e+01 : f32
    %284 = vector.broadcast %cst_78 : f32 to vector<16x1xf32>
    %285 = arith.divf %283, %284 : vector<16x1xf32>
    %cst_79 = arith.constant 9.99999974E-6 : f32
    %286 = vector.broadcast %cst_79 : f32 to vector<16x1xf32>
    %287 = arith.addf %285, %286 : vector<16x1xf32>
    %288 = math.rsqrt %287 : vector<16x1xf32>
    %289 = vector.broadcast %288 : vector<16x1xf32> to vector<16x32xf32>
    %290 = arith.mulf %280, %289 : vector<16x32xf32>
    %c1_80 = arith.constant 1 : index
    %c0_81 = arith.constant 0 : index
    %c0_82 = arith.constant 0 : index
    %291 = vector.load %arg6[%c1_80, %c0_81, %c0_82] : memref<3x1x32xf32, #tpu.memory_space<vmem>>, vector<1x1x32xf32>
    %292 = vector.shape_cast %291 : vector<1x1x32xf32> to vector<1x32xf32>
    %293 = vector.broadcast %292 : vector<1x32xf32> to vector<16x32xf32>
    %294 = arith.mulf %290, %293 : vector<16x32xf32>
    %c1_83 = arith.constant 1 : index
    %c0_84 = arith.constant 0 : index
    %c0_85 = arith.constant 0 : index
    %295 = vector.load %arg7[%c1_83, %c0_84, %c0_85] : memref<3x1x32xf32, #tpu.memory_space<vmem>>, vector<1x1x32xf32>
    %296 = vector.shape_cast %295 : vector<1x1x32xf32> to vector<1x32xf32>
    %297 = vector.broadcast %296 : vector<1x32xf32> to vector<16x32xf32>
    %298 = arith.addf %294, %297 : vector<16x32xf32>
    %299 = arith.truncf %298 : vector<16x32xf32> to vector<16x32xbf16>
    %c1_86 = arith.constant 1 : index
    %c0_87 = arith.constant 0 : index
    %c0_88 = arith.constant 0 : index
    %300 = vector.load %arg8[%c1_86, %c0_87, %c0_88] : memref<3x32x32xbf16, #tpu.memory_space<vmem>>, vector<1x32x32xbf16>
    %301 = vector.shape_cast %300 : vector<1x32x32xbf16> to vector<32x32xbf16>
    %cst_89 = arith.constant dense<0.000000e+00> : vector<16x32xf32>
    %302 = tpu.matmul %299, %301, %cst_89 {dimension_numbers = #tpu.dot_dimension_numbers<[1], [0], [0], [1], [0, 0, 1, 1], [], []>} : vector<16x32xbf16>, vector<32x32xbf16>, vector<16x32xf32> -> vector<16x32xf32>
    %c1_90 = arith.constant 1 : index
    %c0_91 = arith.constant 0 : index
    %c0_92 = arith.constant 0 : index
    %303 = vector.load %arg9[%c1_90, %c0_91, %c0_92] : memref<3x1x32xf32, #tpu.memory_space<vmem>>, vector<1x1x32xf32>
    %304 = vector.shape_cast %303 : vector<1x1x32xf32> to vector<1x32xf32>
    %305 = vector.broadcast %304 : vector<1x32xf32> to vector<16x32xf32>
    %306 = arith.addf %302, %305 : vector<16x32xf32>
    %307 = arith.addf %298, %306 : vector<16x32xf32>
    %cst_93 = arith.constant dense<0.000000e+00> : vector<16xf32>
    %308 = vector.multi_reduction <add>, %307, %cst_93 [1] : vector<16x32xf32> to vector<16xf32>
    %309 = vector.shape_cast %308 : vector<16xf32> to vector<16x1xf32>
    %cst_94 = arith.constant 3.200000e+01 : f32
    %310 = vector.broadcast %cst_94 : f32 to vector<16x1xf32>
    %311 = arith.divf %309, %310 : vector<16x1xf32>
    %312 = vector.broadcast %311 : vector<16x1xf32> to vector<16x32xf32>
    %313 = arith.subf %307, %312 : vector<16x32xf32>
    %314 = arith.mulf %313, %313 : vector<16x32xf32>
    %cst_95 = arith.constant dense<0.000000e+00> : vector<16xf32>
    %315 = vector.multi_reduction <add>, %314, %cst_95 [1] : vector<16x32xf32> to vector<16xf32>
    %316 = vector.shape_cast %315 : vector<16xf32> to vector<16x1xf32>
    %cst_96 = arith.constant 3.200000e+01 : f32
    %317 = vector.broadcast %cst_96 : f32 to vector<16x1xf32>
    %318 = arith.divf %316, %317 : vector<16x1xf32>
    %cst_97 = arith.constant 9.99999974E-6 : f32
    %319 = vector.broadcast %cst_97 : f32 to vector<16x1xf32>
    %320 = arith.addf %318, %319 : vector<16x1xf32>
    %321 = math.rsqrt %320 : vector<16x1xf32>
    %322 = vector.broadcast %321 : vector<16x1xf32> to vector<16x32xf32>
    %323 = arith.mulf %313, %322 : vector<16x32xf32>
    %c1_98 = arith.constant 1 : index
    %c0_99 = arith.constant 0 : index
    %c0_100 = arith.constant 0 : index
    %324 = vector.load %arg10[%c1_98, %c0_99, %c0_100] : memref<3x1x32xf32, #tpu.memory_space<vmem>>, vector<1x1x32xf32>
    %325 = vector.shape_cast %324 : vector<1x1x32xf32> to vector<1x32xf32>
    %326 = vector.broadcast %325 : vector<1x32xf32> to vector<16x32xf32>
    %327 = arith.mulf %323, %326 : vector<16x32xf32>
    %c1_101 = arith.constant 1 : index
    %c0_102 = arith.constant 0 : index
    %c0_103 = arith.constant 0 : index
    %328 = vector.load %arg11[%c1_101, %c0_102, %c0_103] : memref<3x1x32xf32, #tpu.memory_space<vmem>>, vector<1x1x32xf32>
    %329 = vector.shape_cast %328 : vector<1x1x32xf32> to vector<1x32xf32>
    %330 = vector.broadcast %329 : vector<1x32xf32> to vector<16x32xf32>
    %331 = arith.addf %327, %330 : vector<16x32xf32>
    %c1_104 = arith.constant 1 : index
    %c0_105 = arith.constant 0 : index
    %c0_106 = arith.constant 0 : index
    %332 = vector.load %arg12[%c1_104, %c0_105, %c0_106] : memref<3x16x32xf32, #tpu.memory_space<vmem>>, vector<1x16x32xf32>
    %333 = vector.shape_cast %332 : vector<1x16x32xf32> to vector<16x32xf32>
    %334 = vector.shape_cast %331 : vector<16x32xf32> to vector<1x16x32xf32>
    tpu.vector_store %arg12[%c1_104, %c0_105, %c0_106], %334 {strides = array<i32>} : memref<3x16x32xf32, #tpu.memory_space<vmem>>, vector<1x16x32xf32>,
    %335 = arith.truncf %331 : vector<16x32xf32> to vector<16x32xbf16>
    %c2 = arith.constant 2 : index
    %c0_107 = arith.constant 0 : index
    %c0_108 = arith.constant 0 : index
    %336 = vector.load %arg2[%c2, %c0_107, %c0_108] : memref<3x32x96xbf16, #tpu.memory_space<vmem>>, vector<1x32x96xbf16>
    %337 = vector.shape_cast %336 : vector<1x32x96xbf16> to vector<32x96xbf16>
    %cst_109 = arith.constant dense<0.000000e+00> : vector<16x96xf32>
    %338 = tpu.matmul %335, %337, %cst_109 {dimension_numbers = #tpu.dot_dimension_numbers<[1], [0], [0], [1], [0, 0, 1, 1], [], []>} : vector<16x32xbf16>, vector<32x96xbf16>, vector<16x96xf32> -> vector<16x96xf32>
    %c2_110 = arith.constant 2 : index
    %c0_111 = arith.constant 0 : index
    %c0_112 = arith.constant 0 : index
    %339 = vector.load %arg3[%c2_110, %c0_111, %c0_112] : memref<3x1x96xf32, #tpu.memory_space<vmem>>, vector<1x1x96xf32>
    %340 = vector.shape_cast %339 : vector<1x1x96xf32> to vector<1x96xf32>
    %341 = vector.broadcast %340 : vector<1x96xf32> to vector<16x96xf32>
    %342 = arith.addf %338, %341 : vector<16x96xf32>
    %343 = vector.extract_strided_slice %342 {offsets = [0, 0], sizes = [8, 96], strides = [1, 1]} : vector<16x96xf32> to vector<8x96xf32>
    %344 = vector.extract_strided_slice %343 {offsets = [0, 0], sizes = [8, 8], strides = [1, 1]} : vector<8x96xf32> to vector<8x8xf32>
    %345 = vector.extract_strided_slice %343 {offsets = [0, 32], sizes = [8, 8], strides = [1, 1]} : vector<8x96xf32> to vector<8x8xf32>
    %346 = vector.extract_strided_slice %343 {offsets = [0, 64], sizes = [8, 8], strides = [1, 1]} : vector<8x96xf32> to vector<8x8xf32>
    %347 = vector.extract_strided_slice %343 {offsets = [0, 8], sizes = [8, 8], strides = [1, 1]} : vector<8x96xf32> to vector<8x8xf32>
    %348 = vector.extract_strided_slice %343 {offsets = [0, 40], sizes = [8, 8], strides = [1, 1]} : vector<8x96xf32> to vector<8x8xf32>
    %349 = vector.extract_strided_slice %343 {offsets = [0, 72], sizes = [8, 8], strides = [1, 1]} : vector<8x96xf32> to vector<8x8xf32>
    %350 = vector.extract_strided_slice %343 {offsets = [0, 16], sizes = [8, 8], strides = [1, 1]} : vector<8x96xf32> to vector<8x8xf32>
    %351 = vector.extract_strided_slice %343 {offsets = [0, 48], sizes = [8, 8], strides = [1, 1]} : vector<8x96xf32> to vector<8x8xf32>
    %352 = vector.extract_strided_slice %343 {offsets = [0, 80], sizes = [8, 8], strides = [1, 1]} : vector<8x96xf32> to vector<8x8xf32>
    %353 = vector.extract_strided_slice %343 {offsets = [0, 24], sizes = [8, 8], strides = [1, 1]} : vector<8x96xf32> to vector<8x8xf32>
    %354 = vector.extract_strided_slice %343 {offsets = [0, 56], sizes = [8, 8], strides = [1, 1]} : vector<8x96xf32> to vector<8x8xf32>
    %355 = vector.extract_strided_slice %343 {offsets = [0, 88], sizes = [8, 8], strides = [1, 1]} : vector<8x96xf32> to vector<8x8xf32>
    %356 = vector.extract_strided_slice %342 {offsets = [8, 0], sizes = [8, 96], strides = [1, 1]} : vector<16x96xf32> to vector<8x96xf32>
    %357 = vector.extract_strided_slice %356 {offsets = [0, 0], sizes = [8, 8], strides = [1, 1]} : vector<8x96xf32> to vector<8x8xf32>
    %358 = vector.extract_strided_slice %356 {offsets = [0, 32], sizes = [8, 8], strides = [1, 1]} : vector<8x96xf32> to vector<8x8xf32>
    %359 = vector.extract_strided_slice %356 {offsets = [0, 64], sizes = [8, 8], strides = [1, 1]} : vector<8x96xf32> to vector<8x8xf32>
    %360 = vector.extract_strided_slice %356 {offsets = [0, 8], sizes = [8, 8], strides = [1, 1]} : vector<8x96xf32> to vector<8x8xf32>
    %361 = vector.extract_strided_slice %356 {offsets = [0, 40], sizes = [8, 8], strides = [1, 1]} : vector<8x96xf32> to vector<8x8xf32>
    %362 = vector.extract_strided_slice %356 {offsets = [0, 72], sizes = [8, 8], strides = [1, 1]} : vector<8x96xf32> to vector<8x8xf32>
    %363 = vector.extract_strided_slice %356 {offsets = [0, 16], sizes = [8, 8], strides = [1, 1]} : vector<8x96xf32> to vector<8x8xf32>
    %364 = vector.extract_strided_slice %356 {offsets = [0, 48], sizes = [8, 8], strides = [1, 1]} : vector<8x96xf32> to vector<8x8xf32>
    %365 = vector.extract_strided_slice %356 {offsets = [0, 80], sizes = [8, 8], strides = [1, 1]} : vector<8x96xf32> to vector<8x8xf32>
    %366 = vector.extract_strided_slice %356 {offsets = [0, 24], sizes = [8, 8], strides = [1, 1]} : vector<8x96xf32> to vector<8x8xf32>
    %367 = vector.extract_strided_slice %356 {offsets = [0, 56], sizes = [8, 8], strides = [1, 1]} : vector<8x96xf32> to vector<8x8xf32>
    %368 = vector.extract_strided_slice %356 {offsets = [0, 88], sizes = [8, 8], strides = [1, 1]} : vector<8x96xf32> to vector<8x8xf32>
    %369 = vector.shape_cast %344 : vector<8x8xf32> to vector<1x8x8xf32>
    %370 = vector.shape_cast %347 : vector<8x8xf32> to vector<1x8x8xf32>
    %371 = vector.shape_cast %350 : vector<8x8xf32> to vector<1x8x8xf32>
    %372 = vector.shape_cast %353 : vector<8x8xf32> to vector<1x8x8xf32>
    %373 = vector.shape_cast %357 : vector<8x8xf32> to vector<1x8x8xf32>
    %374 = vector.shape_cast %360 : vector<8x8xf32> to vector<1x8x8xf32>
    %375 = vector.shape_cast %363 : vector<8x8xf32> to vector<1x8x8xf32>
    %376 = vector.shape_cast %366 : vector<8x8xf32> to vector<1x8x8xf32>
    %377 = tpu.concatenate %369, %370, %371, %372, %373, %374, %375, %376 in 0 : vector<1x8x8xf32>, vector<1x8x8xf32>, vector<1x8x8xf32>, vector<1x8x8xf32>, vector<1x8x8xf32>, vector<1x8x8xf32>, vector<1x8x8xf32>, vector<1x8x8xf32> -> vector<8x8x8xf32>
    %378 = arith.truncf %377 : vector<8x8x8xf32> to vector<8x8x8xbf16>
    %379 = vector.shape_cast %345 : vector<8x8xf32> to vector<1x8x8xf32>
    %380 = vector.shape_cast %348 : vector<8x8xf32> to vector<1x8x8xf32>
    %381 = vector.shape_cast %351 : vector<8x8xf32> to vector<1x8x8xf32>
    %382 = vector.shape_cast %354 : vector<8x8xf32> to vector<1x8x8xf32>
    %383 = vector.shape_cast %358 : vector<8x8xf32> to vector<1x8x8xf32>
    %384 = vector.shape_cast %361 : vector<8x8xf32> to vector<1x8x8xf32>
    %385 = vector.shape_cast %364 : vector<8x8xf32> to vector<1x8x8xf32>
    %386 = vector.shape_cast %367 : vector<8x8xf32> to vector<1x8x8xf32>
    %387 = tpu.concatenate %379, %380, %381, %382, %383, %384, %385, %386 in 0 : vector<1x8x8xf32>, vector<1x8x8xf32>, vector<1x8x8xf32>, vector<1x8x8xf32>, vector<1x8x8xf32>, vector<1x8x8xf32>, vector<1x8x8xf32>, vector<1x8x8xf32> -> vector<8x8x8xf32>
    %388 = arith.truncf %387 : vector<8x8x8xf32> to vector<8x8x8xbf16>
    %389 = vector.shape_cast %346 : vector<8x8xf32> to vector<1x8x8xf32>
    %390 = vector.shape_cast %349 : vector<8x8xf32> to vector<1x8x8xf32>
    %391 = vector.shape_cast %352 : vector<8x8xf32> to vector<1x8x8xf32>
    %392 = vector.shape_cast %355 : vector<8x8xf32> to vector<1x8x8xf32>
    %393 = vector.shape_cast %359 : vector<8x8xf32> to vector<1x8x8xf32>
    %394 = vector.shape_cast %362 : vector<8x8xf32> to vector<1x8x8xf32>
    %395 = vector.shape_cast %365 : vector<8x8xf32> to vector<1x8x8xf32>
    %396 = vector.shape_cast %368 : vector<8x8xf32> to vector<1x8x8xf32>
    %397 = tpu.concatenate %389, %390, %391, %392, %393, %394, %395, %396 in 0 : vector<1x8x8xf32>, vector<1x8x8xf32>, vector<1x8x8xf32>, vector<1x8x8xf32>, vector<1x8x8xf32>, vector<1x8x8xf32>, vector<1x8x8xf32>, vector<1x8x8xf32> -> vector<8x8x8xf32>
    %398 = arith.truncf %397 : vector<8x8x8xf32> to vector<8x8x8xbf16>
    "tpu.trace_start"() <{level = 10 : i32, message = "nqd,nkd->nqk"}> : () -> ()
    %cst_113 = arith.constant dense<0.000000e+00> : vector<8x8x8xf32>
    %399 = tpu.matmul %378, %388, %cst_113 {dimension_numbers = #tpu.dot_dimension_numbers<[2], [2], [1], [1], [0, 0, 0, 1, 1, 1], [0], [0]>} : vector<8x8x8xbf16>, vector<8x8x8xbf16>, vector<8x8x8xf32> -> vector<8x8x8xf32>
    "tpu.trace_stop"() : () -> ()
    %cst_114 = arith.constant dense<0xFF800000> : vector<8x8xf32>
    %400 = vector.multi_reduction <maximumf>, %399, %cst_114 [2] : vector<8x8x8xf32> to vector<8x8xf32>
    %401 = vector.shape_cast %400 : vector<8x8xf32> to vector<8x8x1xf32>
    %402 = vector.broadcast %401 : vector<8x8x1xf32> to vector<8x8x8xf32>
    %403 = arith.subf %399, %402 : vector<8x8x8xf32>
    %404 = math.exp %403 : vector<8x8x8xf32>
    %cst_115 = arith.constant dense<0.000000e+00> : vector<8x8xf32>
    %405 = vector.multi_reduction <add>, %404, %cst_115 [2] : vector<8x8x8xf32> to vector<8x8xf32>
    %406 = vector.shape_cast %405 : vector<8x8xf32> to vector<8x8x1xf32>
    %407 = vector.broadcast %406 : vector<8x8x1xf32> to vector<8x8x8xf32>
    %408 = arith.divf %404, %407 : vector<8x8x8xf32>
    %c2_116 = arith.constant 2 : index
    %c0_117 = arith.constant 0 : index
    %c0_118 = arith.constant 0 : index
    %c0_119 = arith.constant 0 : index
    %409 = vector.load %arg13[%c2_116, %c0_117, %c0_118, %c0_119] : memref<3x8x8x8xf32, #tpu.memory_space<vmem>>, vector<1x8x8x8xf32>
    %410 = vector.shape_cast %409 : vector<1x8x8x8xf32> to vector<8x8x8xf32>
    %411 = vector.shape_cast %408 : vector<8x8x8xf32> to vector<1x8x8x8xf32>
    tpu.vector_store %arg13[%c2_116, %c0_117, %c0_118, %c0_119], %411 {strides = array<i32>} : memref<3x8x8x8xf32, #tpu.memory_space<vmem>>, vector<1x8x8x8xf32>,
    %412 = arith.truncf %408 : vector<8x8x8xf32> to vector<8x8x8xbf16>
    "tpu.trace_start"() <{level = 10 : i32, message = "nqk,nkd->nqd"}> : () -> ()
    %cst_120 = arith.constant dense<0.000000e+00> : vector<8x8x8xf32>
    %413 = tpu.matmul %412, %398, %cst_120 {dimension_numbers = #tpu.dot_dimension_numbers<[2], [1], [1], [2], [0, 0, 0, 1, 1, 2], [0], [0]>} : vector<8x8x8xbf16>, vector<8x8x8xbf16>, vector<8x8x8xf32> -> vector<8x8x8xf32>
    "tpu.trace_stop"() : () -> ()
    %414 = vector.extract_strided_slice %413 {offsets = [0, 0, 0], sizes = [1, 8, 8], strides = [1, 1, 1]} : vector<8x8x8xf32> to vector<1x8x8xf32>
    %415 = vector.shape_cast %414 : vector<1x8x8xf32> to vector<8x8xf32>
    %416 = vector.extract_strided_slice %413 {offsets = [1, 0, 0], sizes = [1, 8, 8], strides = [1, 1, 1]} : vector<8x8x8xf32> to vector<1x8x8xf32>
    %417 = vector.shape_cast %416 : vector<1x8x8xf32> to vector<8x8xf32>
    %418 = vector.extract_strided_slice %413 {offsets = [2, 0, 0], sizes = [1, 8, 8], strides = [1, 1, 1]} : vector<8x8x8xf32> to vector<1x8x8xf32>
    %419 = vector.shape_cast %418 : vector<1x8x8xf32> to vector<8x8xf32>
    %420 = vector.extract_strided_slice %413 {offsets = [3, 0, 0], sizes = [1, 8, 8], strides = [1, 1, 1]} : vector<8x8x8xf32> to vector<1x8x8xf32>
    %421 = vector.shape_cast %420 : vector<1x8x8xf32> to vector<8x8xf32>
    %422 = tpu.concatenate %415, %417, %419, %421 in 1 : vector<8x8xf32>, vector<8x8xf32>, vector<8x8xf32>, vector<8x8xf32> -> vector<8x32xf32>
    %423 = vector.extract_strided_slice %413 {offsets = [4, 0, 0], sizes = [1, 8, 8], strides = [1, 1, 1]} : vector<8x8x8xf32> to vector<1x8x8xf32>
    %424 = vector.shape_cast %423 : vector<1x8x8xf32> to vector<8x8xf32>
    %425 = vector.extract_strided_slice %413 {offsets = [5, 0, 0], sizes = [1, 8, 8], strides = [1, 1, 1]} : vector<8x8x8xf32> to vector<1x8x8xf32>
    %426 = vector.shape_cast %425 : vector<1x8x8xf32> to vector<8x8xf32>
    %427 = vector.extract_strided_slice %413 {offsets = [6, 0, 0], sizes = [1, 8, 8], strides = [1, 1, 1]} : vector<8x8x8xf32> to vector<1x8x8xf32>
    %428 = vector.shape_cast %427 : vector<1x8x8xf32> to vector<8x8xf32>
    %429 = vector.extract_strided_slice %413 {offsets = [7, 0, 0], sizes = [1, 8, 8], strides = [1, 1, 1]} : vector<8x8x8xf32> to vector<1x8x8xf32>
    %430 = vector.shape_cast %429 : vector<1x8x8xf32> to vector<8x8xf32>
    %431 = tpu.concatenate %424, %426, %428, %430 in 1 : vector<8x8xf32>, vector<8x8xf32>, vector<8x8xf32>, vector<8x8xf32> -> vector<8x32xf32>
    %432 = tpu.concatenate %422, %431 in 0 : vector<8x32xf32>, vector<8x32xf32> -> vector<16x32xf32>
    %433 = arith.truncf %432 : vector<16x32xf32> to vector<16x32xbf16>
    %c2_121 = arith.constant 2 : index
    %c0_122 = arith.constant 0 : index
    %c0_123 = arith.constant 0 : index
    %434 = vector.load %arg4[%c2_121, %c0_122, %c0_123] : memref<3x32x32xbf16, #tpu.memory_space<vmem>>, vector<1x32x32xbf16>
    %435 = vector.shape_cast %434 : vector<1x32x32xbf16> to vector<32x32xbf16>
    %cst_124 = arith.constant dense<0.000000e+00> : vector<16x32xf32>
    %436 = tpu.matmul %433, %435, %cst_124 {dimension_numbers = #tpu.dot_dimension_numbers<[1], [0], [0], [1], [0, 0, 1, 1], [], []>} : vector<16x32xbf16>, vector<32x32xbf16>, vector<16x32xf32> -> vector<16x32xf32>
    %c2_125 = arith.constant 2 : index
    %c0_126 = arith.constant 0 : index
    %c0_127 = arith.constant 0 : index
    %437 = vector.load %arg5[%c2_125, %c0_126, %c0_127] : memref<3x1x32xf32, #tpu.memory_space<vmem>>, vector<1x1x32xf32>
    %438 = vector.shape_cast %437 : vector<1x1x32xf32> to vector<1x32xf32>
    %439 = vector.broadcast %438 : vector<1x32xf32> to vector<16x32xf32>
    %440 = arith.addf %436, %439 : vector<16x32xf32>
    %441 = arith.addf %331, %440 : vector<16x32xf32>
    %cst_128 = arith.constant dense<0.000000e+00> : vector<16xf32>
    %442 = vector.multi_reduction <add>, %441, %cst_128 [1] : vector<16x32xf32> to vector<16xf32>
    %443 = vector.shape_cast %442 : vector<16xf32> to vector<16x1xf32>
    %cst_129 = arith.constant 3.200000e+01 : f32
    %444 = vector.broadcast %cst_129 : f32 to vector<16x1xf32>
    %445 = arith.divf %443, %444 : vector<16x1xf32>
    %446 = vector.broadcast %445 : vector<16x1xf32> to vector<16x32xf32>
    %447 = arith.subf %441, %446 : vector<16x32xf32>
    %448 = arith.mulf %447, %447 : vector<16x32xf32>
    %cst_130 = arith.constant dense<0.000000e+00> : vector<16xf32>
    %449 = vector.multi_reduction <add>, %448, %cst_130 [1] : vector<16x32xf32> to vector<16xf32>
    %450 = vector.shape_cast %449 : vector<16xf32> to vector<16x1xf32>
    %cst_131 = arith.constant 3.200000e+01 : f32
    %451 = vector.broadcast %cst_131 : f32 to vector<16x1xf32>
    %452 = arith.divf %450, %451 : vector<16x1xf32>
    %cst_132 = arith.constant 9.99999974E-6 : f32
    %453 = vector.broadcast %cst_132 : f32 to vector<16x1xf32>
    %454 = arith.addf %452, %453 : vector<16x1xf32>
    %455 = math.rsqrt %454 : vector<16x1xf32>
    %456 = vector.broadcast %455 : vector<16x1xf32> to vector<16x32xf32>
    %457 = arith.mulf %447, %456 : vector<16x32xf32>
    %c2_133 = arith.constant 2 : index
    %c0_134 = arith.constant 0 : index
    %c0_135 = arith.constant 0 : index
    %458 = vector.load %arg6[%c2_133, %c0_134, %c0_135] : memref<3x1x32xf32, #tpu.memory_space<vmem>>, vector<1x1x32xf32>
    %459 = vector.shape_cast %458 : vector<1x1x32xf32> to vector<1x32xf32>
    %460 = vector.broadcast %459 : vector<1x32xf32> to vector<16x32xf32>
    %461 = arith.mulf %457, %460 : vector<16x32xf32>
    %c2_136 = arith.constant 2 : index
    %c0_137 = arith.constant 0 : index
    %c0_138 = arith.constant 0 : index
    %462 = vector.load %arg7[%c2_136, %c0_137, %c0_138] : memref<3x1x32xf32, #tpu.memory_space<vmem>>, vector<1x1x32xf32>
    %463 = vector.shape_cast %462 : vector<1x1x32xf32> to vector<1x32xf32>
    %464 = vector.broadcast %463 : vector<1x32xf32> to vector<16x32xf32>
    %465 = arith.addf %461, %464 : vector<16x32xf32>
    %466 = arith.truncf %465 : vector<16x32xf32> to vector<16x32xbf16>
    %c2_139 = arith.constant 2 : index
    %c0_140 = arith.constant 0 : index
    %c0_141 = arith.constant 0 : index
    %467 = vector.load %arg8[%c2_139, %c0_140, %c0_141] : memref<3x32x32xbf16, #tpu.memory_space<vmem>>, vector<1x32x32xbf16>
    %468 = vector.shape_cast %467 : vector<1x32x32xbf16> to vector<32x32xbf16>
    %cst_142 = arith.constant dense<0.000000e+00> : vector<16x32xf32>
    %469 = tpu.matmul %466, %468, %cst_142 {dimension_numbers = #tpu.dot_dimension_numbers<[1], [0], [0], [1], [0, 0, 1, 1], [], []>} : vector<16x32xbf16>, vector<32x32xbf16>, vector<16x32xf32> -> vector<16x32xf32>
    %c2_143 = arith.constant 2 : index
    %c0_144 = arith.constant 0 : index
    %c0_145 = arith.constant 0 : index
    %470 = vector.load %arg9[%c2_143, %c0_144, %c0_145] : memref<3x1x32xf32, #tpu.memory_space<vmem>>, vector<1x1x32xf32>
    %471 = vector.shape_cast %470 : vector<1x1x32xf32> to vector<1x32xf32>
    %472 = vector.broadcast %471 : vector<1x32xf32> to vector<16x32xf32>
    %473 = arith.addf %469, %472 : vector<16x32xf32>
    %474 = arith.addf %465, %473 : vector<16x32xf32>
    %cst_146 = arith.constant dense<0.000000e+00> : vector<16xf32>
    %475 = vector.multi_reduction <add>, %474, %cst_146 [1] : vector<16x32xf32> to vector<16xf32>
    %476 = vector.shape_cast %475 : vector<16xf32> to vector<16x1xf32>
    %cst_147 = arith.constant 3.200000e+01 : f32
    %477 = vector.broadcast %cst_147 : f32 to vector<16x1xf32>
    %478 = arith.divf %476, %477 : vector<16x1xf32>
    %479 = vector.broadcast %478 : vector<16x1xf32> to vector<16x32xf32>
    %480 = arith.subf %474, %479 : vector<16x32xf32>
    %481 = arith.mulf %480, %480 : vector<16x32xf32>
    %cst_148 = arith.constant dense<0.000000e+00> : vector<16xf32>
    %482 = vector.multi_reduction <add>, %481, %cst_148 [1] : vector<16x32xf32> to vector<16xf32>
    %483 = vector.shape_cast %482 : vector<16xf32> to vector<16x1xf32>
    %cst_149 = arith.constant 3.200000e+01 : f32
    %484 = vector.broadcast %cst_149 : f32 to vector<16x1xf32>
    %485 = arith.divf %483, %484 : vector<16x1xf32>
    %cst_150 = arith.constant 9.99999974E-6 : f32
    %486 = vector.broadcast %cst_150 : f32 to vector<16x1xf32>
    %487 = arith.addf %485, %486 : vector<16x1xf32>
    %488 = math.rsqrt %487 : vector<16x1xf32>
    %489 = vector.broadcast %488 : vector<16x1xf32> to vector<16x32xf32>
    %490 = arith.mulf %480, %489 : vector<16x32xf32>
    %c2_151 = arith.constant 2 : index
    %c0_152 = arith.constant 0 : index
    %c0_153 = arith.constant 0 : index
    %491 = vector.load %arg10[%c2_151, %c0_152, %c0_153] : memref<3x1x32xf32, #tpu.memory_space<vmem>>, vector<1x1x32xf32>
    %492 = vector.shape_cast %491 : vector<1x1x32xf32> to vector<1x32xf32>
    %493 = vector.broadcast %492 : vector<1x32xf32> to vector<16x32xf32>
    %494 = arith.mulf %490, %493 : vector<16x32xf32>
    %c2_154 = arith.constant 2 : index
    %c0_155 = arith.constant 0 : index
    %c0_156 = arith.constant 0 : index
    %495 = vector.load %arg11[%c2_154, %c0_155, %c0_156] : memref<3x1x32xf32, #tpu.memory_space<vmem>>, vector<1x1x32xf32>
    %496 = vector.shape_cast %495 : vector<1x1x32xf32> to vector<1x32xf32>
    %497 = vector.broadcast %496 : vector<1x32xf32> to vector<16x32xf32>
    %498 = arith.addf %494, %497 : vector<16x32xf32>
    %c2_157 = arith.constant 2 : index
    %c0_158 = arith.constant 0 : index
    %c0_159 = arith.constant 0 : index
    %499 = vector.load %arg12[%c2_157, %c0_158, %c0_159] : memref<3x16x32xf32, #tpu.memory_space<vmem>>, vector<1x16x32xf32>
    %500 = vector.shape_cast %499 : vector<1x16x32xf32> to vector<16x32xf32>
    %501 = vector.shape_cast %498 : vector<16x32xf32> to vector<1x16x32xf32>
    tpu.vector_store %arg12[%c2_157, %c0_158, %c0_159], %501 {strides = array<i32>} : memref<3x16x32xf32, #tpu.memory_space<vmem>>, vector<1x16x32xf32>,
    return
  }
  func.func @transform_0(%arg0: i32) -> (i32, i32) {
    %c0_i32 = arith.constant 0 : i32
    %c0_i32_0 = arith.constant 0 : i32
    %c0_i32_1 = arith.constant 0 : i32
    return %c0_i32, %c0_i32_0 : i32, i32
  }
  func.func @transform_1(%arg0: i32) -> (i32, i32, i32) {
    %c0_i32 = arith.constant 0 : i32
    %c0_i32_0 = arith.constant 0 : i32
    %c0_i32_1 = arith.constant 0 : i32
    %c0_i32_2 = arith.constant 0 : i32
    return %c0_i32, %c0_i32_0, %c0_i32_1 : i32, i32, i32
  }
  func.func @transform_2(%arg0: i32) -> (i32, i32, i32) {
    %c0_i32 = arith.constant 0 : i32
    %c0_i32_0 = arith.constant 0 : i32
    %c0_i32_1 = arith.constant 0 : i32
    %c0_i32_2 = arith.constant 0 : i32
    return %c0_i32, %c0_i32_0, %c0_i32_1 : i32, i32, i32
  }
  func.func @transform_3(%arg0: i32) -> (i32, i32, i32) {
    %c0_i32 = arith.constant 0 : i32
    %c0_i32_0 = arith.constant 0 : i32
    %c0_i32_1 = arith.constant 0 : i32
    %c0_i32_2 = arith.constant 0 : i32
    return %c0_i32, %c0_i32_0, %c0_i32_1 : i32, i32, i32
  }
  func.func @transform_4(%arg0: i32) -> (i32, i32, i32) {
    %c0_i32 = arith.constant 0 : i32
    %c0_i32_0 = arith.constant 0 : i32
    %c0_i32_1 = arith.constant 0 : i32
    %c0_i32_2 = arith.constant 0 : i32
    return %c0_i32, %c0_i32_0, %c0_i32_1 : i32, i32, i32
  }
  func.func @transform_5(%arg0: i32) -> (i32, i32, i32) {
    %c0_i32 = arith.constant 0 : i32
    %c0_i32_0 = arith.constant 0 : i32
    %c0_i32_1 = arith.constant 0 : i32
    %c0_i32_2 = arith.constant 0 : i32
    return %c0_i32, %c0_i32_0, %c0_i32_1 : i32, i32, i32
  }
  func.func @transform_6(%arg0: i32) -> (i32, i32, i32) {
    %c0_i32 = arith.constant 0 : i32
    %c0_i32_0 = arith.constant 0 : i32
    %c0_i32_1 = arith.constant 0 : i32
    %c0_i32_2 = arith.constant 0 : i32
    return %c0_i32, %c0_i32_0, %c0_i32_1 : i32, i32, i32
  }
  func.func @transform_7(%arg0: i32) -> (i32, i32, i32) {
    %c0_i32 = arith.constant 0 : i32
    %c0_i32_0 = arith.constant 0 : i32
    %c0_i32_1 = arith.constant 0 : i32
    %c0_i32_2 = arith.constant 0 : i32
    return %c0_i32, %c0_i32_0, %c0_i32_1 : i32, i32, i32
  }
  func.func @transform_8(%arg0: i32) -> (i32, i32, i32) {
    %c0_i32 = arith.constant 0 : i32
    %c0_i32_0 = arith.constant 0 : i32
    %c0_i32_1 = arith.constant 0 : i32
    %c0_i32_2 = arith.constant 0 : i32
    return %c0_i32, %c0_i32_0, %c0_i32_1 : i32, i32, i32
  }
  func.func @transform_9(%arg0: i32) -> (i32, i32, i32) {
    %c0_i32 = arith.constant 0 : i32
    %c0_i32_0 = arith.constant 0 : i32
    %c0_i32_1 = arith.constant 0 : i32
    %c0_i32_2 = arith.constant 0 : i32
    return %c0_i32, %c0_i32_0, %c0_i32_1 : i32, i32, i32
  }
  func.func @transform_10(%arg0: i32) -> (i32, i32, i32) {
    %c0_i32 = arith.constant 0 : i32
    %c0_i32_0 = arith.constant 0 : i32
    %c0_i32_1 = arith.constant 0 : i32
    %c0_i32_2 = arith.constant 0 : i32
    return %c0_i32, %c0_i32_0, %c0_i32_1 : i32, i32, i32
  }
  func.func @transform_11(%arg0: i32) -> (i32, i32, i32) {
    %c0_i32 = arith.constant 0 : i32
    %c0_i32_0 = arith.constant 0 : i32
    %c0_i32_1 = arith.constant 0 : i32
    %c0_i32_2 = arith.constant 0 : i32
    return %c0_i32, %c0_i32_0, %c0_i32_1 : i32, i32, i32
  }
  func.func @transform_12(%arg0: i32) -> (i32, i32, i32, i32) {
    %c0_i32 = arith.constant 0 : i32
    %c0_i32_0 = arith.constant 0 : i32
    %c0_i32_1 = arith.constant 0 : i32
    %c0_i32_2 = arith.constant 0 : i32
    %c0_i32_3 = arith.constant 0 : i32
    return %c0_i32, %c0_i32_0, %c0_i32_1, %c0_i32_2 : i32, i32, i32, i32
  }
}

</mosaic_0001>

<bundles_post_ra>
// kernel: transformer_encoder_forward.1
= control target key start
LH: loop header
LB: loop body
LE: loop exit
PB: predicated region body
PF: predicated region fallthrough
CT: control target
= control target key end

     0   :  { %18 = vsyncpa [#allocation3], 0  ;;  %s4202_s0 = inlined_call_operand.hbm [shape: f32[16,32], index: 0, kind: input, shape index: {}]   ;;  %s4203_s1 = inlined_call_operand.hbm [shape: bf16[3,32,96], index: 1, kind: input, shape index: {}]   ;;  %s4204_s2 = inlined_call_operand.hbm [shape: f32[3,1,96], index: 2, kind: input, shape index: {}]   ;;  %s4205_s3 = inlined_call_operand.hbm [shape: bf16[3,32,32], index: 3, kind: input, shape index: {}]   ;;  %s4206_s4 = inlined_call_operand.vmem [shape: f32[3,1,32], index: 4, kind: input, shape index: {}]   ;;  %s4207_s5 = inlined_call_operand.hbm [shape: f32[3,1,32], index: 5, kind: input, shape index: {}]   ;;  %s4208_s6 = inlined_call_operand.vmem [shape: f32[3,1,32], index: 6, kind: input, shape index: {}]   ;;  %s4209_s7 = inlined_call_operand.hbm [shape: bf16[3,32,32], index: 7, kind: input, shape index: {}]   ;;  %s4210_s8 = inlined_call_operand.hbm [shape: f32[3,1,32], index: 8, kind: input, shape index: {}]   ;;  %s4211_s9 = inlined_call_operand.vmem [shape: f32[3,1,32], index: 9, kind: input, shape index: {}]   ;;  %s4212_s10 = inlined_call_operand.hbm [shape: f32[3,1,32], index: 10, kind: input, shape index: {}]   ;;  %s4213_s11 = inlined_call_operand.hbm [shape: f32[3,16,32], index: 11, kind: output, shape index: {0}]   ;;  %s4214_s12 = inlined_call_operand.hbm [shape: f32[3,8,8,8], index: 12, kind: output, shape index: {1}]  }
   0x1   :  { %19 = vsyncpa [#allocation6], 0 }
   0x2   :  { %20 = vsyncpa [#allocation9], 0 }
   0x3   :  { %21 = vsyncpa [#allocation12], 0 }
   0x4   :  { %22 = vsyncpa [#allocation15], 0 }
   0x5   :  { %23 = vsyncpa [#allocation4], 0  ;;  %s42_s23 = sshll.u32 %s4203_s1, 4  ;;  %s43_s23 = int_to_ptr.hbm [resolvable:$true] %s42_s23 }
   0x6   :  { %24 = vsyncpa [#allocation18], 0  ;;  %s3438_s24 = smov [#allocation5]   ;;  %s68_s28 = sshll.u32 %s4205_s3, 4  ;;  %s69_s28 = int_to_ptr.hbm [resolvable:$true] %s68_s28 }
   0x7   :  { %s44_s25 = sshll.u32 %s3438_s24, 4  ;;  %s3439_s29 = smov 64   ;;  %s45_s25 = int_to_ptr.vmem [resolvable:$true] %s44_s25 }
   0x8   :  { %s3440_s30 = smov 4   ;;  %s3441_s13 = smov [#allocation8]  }
   0x9   :  { %50 = dma.hbm_to_vmem [thread:$0]  %s43_s23, 768, %s45_s25, [#allocation6], %s3439_s29, %s3439_s29, %s3440_s30  }
   0xa   :  { %s70_s14 = sshll.u32 %s3441_s13, 4  ;;  %s98_s1 = sshll.u32 %s4209_s7, 4  ;;  %s71_s14 = int_to_ptr.vmem [resolvable:$true] %s70_s14  ;;  %s99_s1 = int_to_ptr.hbm [resolvable:$true] %s98_s1 }
   0xb   :  { %76 = dma.hbm_to_vmem [thread:$0]  %s69_s28, 768, %s71_s14, [#allocation9], %s3439_s29, %s3439_s29, %s3440_s30  }
   0xc   :  { %s29_s3 = sshll.u32 %s4202_s0, 4  ;;  %s3442_s19 = smov [#allocation11]   ;;  %s30_s3 = int_to_ptr.hbm [resolvable:$true] %s29_s3 }
   0xd   :  { %s100_s20 = sshll.u32 %s3442_s19, 4  ;;  %s3443_s21 = smov [#allocation2]   ;;  %s101_s20 = int_to_ptr.vmem [resolvable:$true] %s100_s20 }
   0xe   :  { %106 = dma.hbm_to_vmem [thread:$0]  %s99_s1, 768, %s101_s20, [#allocation12], %s3439_s29, %s3439_s29, %s3440_s30  }
   0xf   :  { %s31_s22 = sshll.u32 %s3443_s21, 4  ;;  %s3444_s7 = smov 128   ;;  %s32_s22 = int_to_ptr.vmem [resolvable:$true] %s31_s22 }
  0x10   :  { %s3445_s23 = smov 8   ;;  %s55_s0 = sshll.u32 %s4204_s2, 4  ;;  %s56_s0 = int_to_ptr.hbm [resolvable:$true] %s55_s0 }
  0x11   :  { %37 = dma.hbm_to_vmem [thread:$0]  %s30_s3, 256, %s32_s22, [#allocation3], %s3444_s7, %s3444_s7, %s3445_s23  }
  0x12   :  { %s3446_s26 = smov [#allocation7]   ;;  %s83_s30 = sshll.u32 %s4207_s5, 4  ;;  %s84_s30 = int_to_ptr.hbm [resolvable:$true] %s83_s30 }
  0x13   :  { %s57_s27 = sshll.u32 %s3446_s26, 4  ;;  %s3447_s14 = smov 16   ;;  %s58_s27 = int_to_ptr.vmem [resolvable:$true] %s57_s27 }
  0x14   :  { %s3448_s15 = smov 1   ;;  %s3449_s16 = smov [#allocation10]  }
  0x15   :  { %63 = dma.hbm_to_vmem [thread:$0]  %s56_s0, 48, %s58_s27, [#allocation6], %s3447_s14, %s3447_s14, %s3448_s15  }
  0x16   :  { %s85_s1 = sshll.u32 %s3449_s16, 4  ;;  %s111_s2 = sshll.u32 %s4210_s8, 4  ;;  %s86_s1 = int_to_ptr.vmem [resolvable:$true] %s85_s1  ;;  %s112_s2 = int_to_ptr.hbm [resolvable:$true] %s111_s2 }
  0x17   :  { %91 = dma.hbm_to_vmem [thread:$0]  %s84_s30, 48, %s86_s1, [#allocation9], %s3447_s14, %s3447_s14, %s3448_s15  }
  0x18   :  { %s126_s5 = sshll.u32 %s4212_s10, 4  ;;  %s3450_s20 = smov [#allocation13]   ;;  %s127_s5 = int_to_ptr.hbm [resolvable:$true] %s126_s5 }
  0x19   :  { %s113_s21 = sshll.u32 %s3450_s20, 4  ;;  %s3451_s22 = smov [#allocation14]   ;;  %s114_s21 = int_to_ptr.vmem [resolvable:$true] %s113_s21 }
  0x1a   :  { %119 = dma.hbm_to_vmem [thread:$0]  %s112_s2, 48, %s114_s21, [#allocation12], %s3447_s14, %s3447_s14, %s3448_s15  }
  0x1b   :  { %s128_s24 = sshll.u32 %s3451_s22, 4  ;;  %s129_s24 = int_to_ptr.vmem [resolvable:$true] %s128_s24 }
  0x1c   :  { %134 = dma.hbm_to_vmem [thread:$0]  %s127_s5, 48, %s129_s24, [#allocation15], %s3447_s14, %s3447_s14, %s3448_s15  }
  0x1d   :  { %3424 = dma.done.wait [#allocation3], 256  }
  0x1e   :  { %3425 = vsyncadd [#allocation3], 4294967040 }
  0x1f   :  { %3426 = dma.done.wait [#allocation6], 816  }
  0x20   :  { %3427 = vsyncadd [#allocation6], 4294966480 }
  0x21   :  { %3428 = dma.done.wait [#allocation9], 816  }
  0x22   :  { %3429 = vsyncadd [#allocation9], 4294966480 }
  0x23   :  { %3430 = dma.done.wait [#allocation12], 816  }
  0x24   :  { %3431 = vsyncadd [#allocation12], 4294966480 }
  0x25   :  { %3432 = dma.done.wait [#allocation15], 48  }
  0x26   :  { %3433 = vsyncadd [#allocation15], 4294967248  ;;  %v2957_v0 = vld [vmem:[#allocation5 + $0x8] sm:$0xff]  ;;  %v2956_v1 = vld [vmem:[#allocation5] sm:$0xff]  ;;  %vm191_vm0 = vcmask 261120   ;;  %s3452_s8 = smov 104  }
  0x27   :  { %v3566_v2 = vld [vmem:[#allocation2] sm:$0xff]  ;;  %v3568_v3 = vld [vmem:[#allocation2 + $0x8] sm:$0xff]  ;;  %201 = vmatpush.bf16.msra.mxu0 %v2957_v0  ;;  %s3453_s10 = smov 120   ;;  %s3454_s25 = smov 112   ;;  %vm242_vm1 = vcmask 64512   ;;  %vm643_vm2 = vcmask 1043456  }
  0x28   :  { %v170_v4 = vpack.c.bf16 %v3568_v3, %v3566_v2  ;;  %v3041_v5 = vld [vmem:[#allocation7] ss:$0 sm:$0xff]  ;;  %s3455_s0 = smov 96   ;;  %s3456_s26 = smov 24  }
  0x29   :  { %s2799_s24 = sshll.u32 %s4214_s12, 4  ;;  %s2800_s24 = int_to_ptr.hbm [resolvable:$true] %s2799_s24 }
  0x2b   :  { %202 = vmatpush.bf16.msra.mxu0 %v2956_v1 }
  0x2e   :  { %2829 = vmatmul.msk.bf16.vlgmr.msra.gmra.mxu0 %vm191_vm0, %v170_v4 }
  0xab   :  { %v204_v6 = vpop.f32.mrf.mxu0 }
  0xac   :  { %v205_v7 = vadd.f32 %v3041_v5, %v204_v6 }
  0xae   :  { %216 = vrot.lane.b32.xlu1 %v205_v7, %s3452_s8  ;;  %210 = vrot.lane.b32.xlu0 %v205_v7, %s3453_s10  ;;  %v229_v30 = vpack.c.bf16 %v205_v7, %v205_v7 }
  0xb0   :  { %v238_v33 = vunpack.c.l.b16 %v229_v30 }
  0xb2   :  { %v3599_v35 = vpack.c.b16 %v238_v33, %v238_v33 }
  0xb3   :  { %v206_v8 = vpop.f32.mrf.mxu0 }
  0xb4   :  { %v207_v9 = vadd.f32 %v3041_v5, %v206_v8 }
  0xb6   :  { %223 = vrot.lane.b32.xlu2 %v207_v9, %s3454_s25  ;;  %220 = vrot.lane.b32.xlu1 %v207_v9, %s3453_s10  ;;  %v233_v37 = vpack.c.bf16 %v207_v9, %v207_v9 }
  0xb7   :  { %213 = vrot.lane.b32.xlu0 %v205_v7, %s3454_s25 }
  0xb8   :  { %v335_v38 = vunpack.c.l.b16 %v233_v37 }
  0xba   :  { %v3607_v39 = vpack.c.b16 %v335_v38, %v335_v38 }
  0xbe   :  { %226 = vrot.lane.b32.xlu2 %v207_v9, %s3452_s8 }
 0x110   :  { %v224_v10 = vpop.permute.xlu2 %223 }
 0x111   :  { %v235_v31 = vpack.c.bf16 %v224_v10, %v224_v10 }
 0x113   :  { %v383_v34 = vunpack.c.l.b16 %v235_v31 }
 0x115   :  { %v3601_v36 = vpack.c.b16 %v383_v34, %v383_v34 }
 0x118   :  { %v227_v15 = vpop.permute.xlu2 %226 }
 0x119   :  { %v236_v18 = vpack.c.bf16 %v227_v15, %v227_v15 }
 0x11b   :  { %v407_v22 = vunpack.c.l.b16 %v236_v18 }
 0x11d   :  { %v3587_v28 = vpack.c.b16 %v407_v22, %v407_v22 }
 0x120   :  { %v217_v11 = vpop.permute.xlu1 %216  ;;  %v211_v12 = vpop.permute.xlu0 %210 }
 0x121   :  { %v232_v13 = vpack.c.bf16 %v217_v11, %v217_v11  ;;  %v230_v14 = vpack.c.bf16 %v211_v12, %v211_v12 }
 0x123   :  { %v311_v16 = vunpack.c.l.b16 %v232_v13  ;;  %v263_v17 = vunpack.c.l.b16 %v230_v14 }
 0x125   :  { %v3579_v19 = vpack.c.b16 %v311_v16, %v311_v16  ;;  %v3581_v20 = vpack.c.b16 %v263_v17, %v263_v17 }
 0x127   :  { %313 = vrot.lane.b32.xlu2 %v3579_v19, %s3455_s0  ;;  %265 = vrot.lane.b32.xlu0 %v3581_v20, %s3455_s0 }
 0x128   :  { %v221_v21 = vpop.permute.xlu1 %220 }
 0x129   :  { %v234_v23 = vpack.c.bf16 %v221_v21, %v221_v21  ;;  %v214_v24 = vpop.permute.xlu0 %213 }
 0x12a   :  { %v231_v25 = vpack.c.bf16 %v214_v24, %v214_v24 }
 0x12b   :  { %v359_v26 = vunpack.c.l.b16 %v234_v23 }
 0x12c   :  { %v287_v27 = vunpack.c.l.b16 %v231_v25 }
 0x12d   :  { %v3589_v29 = vpack.c.b16 %v359_v26, %v359_v26 }
 0x12e   :  { %v3591_v32 = vpack.c.b16 %v287_v27, %v287_v27 }
 0x12f   :  { %409 = vrot.lane.b32.xlu2 %v3587_v28, %s3455_s0  ;;  %361 = vrot.lane.b32.xlu0 %v3589_v29, %s3455_s0 }
 0x130   :  { %289 = vrot.lane.b32.xlu1 %v3591_v32, %s3455_s0 }
 0x137   :  { %240 = vrot.lane.b32.xlu0 %v3599_v35, %s3455_s0 }
 0x138   :  { %385 = vrot.lane.b32.xlu1 %v3601_v36, %s3455_s0 }
 0x140   :  { %337 = vrot.lane.b32.xlu1 %v3607_v39, %s3455_s0 }
 0x181   :  { %v314_v40 = vpop.permute.xlu2 %313 }
 0x182   :  { %v319_v41 = vsel %vm242_vm1, %v314_v40, 0 }
 0x183   :  { %328 = vmatpush.bf16.xpose.msrb.mxu0 %v319_v41 }
 0x189   :  { %v410_v42 = vpop.permute.xlu2 %409 }
 0x18a   :  { %v415_v43 = vsel %vm242_vm1, %v410_v42, 0  ;;  %2833 = vmatmul.msk.bf16.vlgmr.msrb.gmra.mxu0 %vm242_vm1, %v232_v13 }
 0x18b   :  { %424 = vmatpush.bf16.xpose.msra.mxu0 %v415_v43 }
 0x199   :  { %v266_v44 = vpop.permute.xlu0 %265 }
 0x19a   :  { %2837 = vmatmul.msk.bf16.vlgmr.msra.gmra.mxu0 %vm242_vm1, %v236_v18  ;;  %v271_v45 = vsel %vm242_vm1, %v266_v44, 0 }
 0x19b   :  { %280 = vmatpush.bf16.xpose.msra.mxu2 %v271_v45 }
 0x1a1   :  { %v362_v46 = vpop.permute.xlu0 %361 }
 0x1a2   :  { %v290_v47 = vpop.permute.xlu1 %289  ;;  %2831 = vmatmul.msk.bf16.vlgmr.msra.gmra.mxu2 %vm242_vm1, %v230_v14  ;;  %v367_v48 = vsel %vm242_vm1, %v362_v46, 0 }
 0x1a3   :  { %v295_v49 = vsel %vm242_vm1, %v290_v47, 0  ;;  %376 = vmatpush.bf16.xpose.msrb.mxu2 %v367_v48 }
 0x1a4   :  { %304 = vmatpush.bf16.xpose.msra.mxu3 %v295_v49 }
 0x1a9   :  { %v241_v50 = vpop.permute.xlu0 %240 }
 0x1aa   :  { %v386_v51 = vpop.permute.xlu1 %385  ;;  %v247_v52 = vsel %vm242_vm1, %v241_v50, 0 }
 0x1ab   :  { %2832 = vmatmul.msk.bf16.vlgmr.msra.gmra.mxu3 %vm242_vm1, %v231_v25  ;;  %256 = vmatpush.bf16.xpose.msra.mxu1 %v247_v52  ;;  %v391_v53 = vsel %vm242_vm1, %v386_v51, 0 }
 0x1ac   :  { %400 = vmatpush.bf16.xpose.msrb.mxu3 %v391_v53 }
 0x1b2   :  { %v338_v54 = vpop.permute.xlu1 %337  ;;  %2830 = vmatmul.msk.bf16.vlgmr.msra.gmra.mxu1 %vm242_vm1, %v229_v30  ;;  %2835 = vmatmul.msk.bf16.vlgmr.msrb.gmra.mxu2 %vm242_vm1, %v234_v23 }
 0x1b3   :  { %v343_v55 = vsel %vm242_vm1, %v338_v54, 0 }
 0x1b4   :  { %352 = vmatpush.bf16.xpose.msrb.mxu1 %v343_v55 }
 0x1bb   :  { %2836 = vmatmul.msk.bf16.vlgmr.msrb.gmra.mxu3 %vm242_vm1, %v235_v31 }
 0x1c2   :  { %2834 = vmatmul.msk.bf16.vlgmr.msrb.gmra.mxu1 %vm242_vm1, %v233_v37 }
 0x207   :  { %v330_v56 = vpop.f32.mrf.mxu0 }
 0x208   :  { %v439_v57 = vsel %vm242_vm1, %v330_v56, -inf }
 0x209   :  { %440 = vmax.xlane.f32.xlu1 %v439_v57 }
 0x20f   :  { %v332_v58 = vpop.f32.mrf.mxu0 }
 0x217   :  { %v426_v59 = vpop.f32.mrf.mxu0 }
 0x218   :  { %v451_v7 = vsel %vm242_vm1, %v426_v59, -inf }
 0x21f   :  { %v428_v60 = vpop.f32.mrf.mxu0 }
 0x225   :  { %v282_v61 = vpop.f32.mrf.mxu2 }
 0x226   :  { %v433_v15 = vsel %vm242_vm1, %v282_v61, -inf }
 0x22d   :  { %v284_v62 = vpop.f32.mrf.mxu2 }
 0x22e   :  { %v306_v63 = vpop.f32.mrf.mxu3 }
 0x22f   :  { %v436_v0 = vsel %vm242_vm1, %v306_v63, -inf  ;;  %v3629_v1 = vpop.f32.mrf.mxu1 }
 0x230   :  { %437 = vmax.xlane.f32.xlu0 %v436_v0  ;;  %v430_v4 = vsel %vm242_vm1, %v3629_v1, -inf }
 0x231   :  { %431 = vmax.xlane.f32.xlu1 %v430_v4 }
 0x235   :  { %v378_v5 = vpop.f32.mrf.mxu2 }
 0x236   :  { %v308_v6 = vpop.f32.mrf.mxu3  ;;  %v445_v16 = vsel %vm242_vm1, %v378_v5, -inf }
 0x237   :  { %v260_v8 = vpop.f32.mrf.mxu1 }
 0x238   :  { %452 = vmax.xlane.f32.xlu0 %v451_v7 }
 0x23d   :  { %v380_v9 = vpop.f32.mrf.mxu2 }
 0x23e   :  { %v402_v10 = vpop.f32.mrf.mxu3 }
 0x23f   :  { %v3634_v11 = vpop.f32.mrf.mxu1  ;;  %v448_v17 = vsel %vm242_vm1, %v402_v10, -inf }
 0x240   :  { %v442_v12 = vsel %vm242_vm1, %v3634_v11, -inf }
 0x241   :  { %443 = vmax.xlane.f32.xlu2 %v442_v12 }
 0x246   :  { %v404_v13 = vpop.f32.mrf.mxu3 }
 0x247   :  { %v356_v14 = vpop.f32.mrf.mxu1 }
 0x249   :  { %434 = vmax.xlane.f32.xlu2 %v433_v15 }
 0x24c   :  { %681 = vrot.lane.b32.xlu0 %v3591_v32, %s3439_s29 }
 0x251   :  { %446 = vmax.xlane.f32.xlu2 %v445_v16 }
 0x259   :  { %449 = vmax.xlane.f32.xlu2 %v448_v17 }
 0x271   :  { %660 = vrot.lane.b32.xlu2 %v3581_v20, %s3439_s29 }
 0x27c   :  { %v441_v18 = vpop.xlane.xlu1 %440 }
 0x27d   :  { %v457_v21 = vsub.f32 %v330_v56, %v441_v18 }
 0x27f   :  { %v468_v22 = vmul.f32 1.442695, %v457_v21 }
 0x281   :  { %3062 = vpow2.f32 %v468_v22 }
 0x287   :  { %v3645_v23 = vpop.eup %3062 }
 0x288   :  { %v487_v24 = vsel %vm242_vm1, %v3645_v23, 0.0 }
 0x289   :  { %488 = vadd.xlane.f32.xlu1 %v487_v24 }
 0x2a3   :  { %v438_v25 = vpop.xlane.xlu0 %437 }
 0x2a4   :  { %v456_v26 = vsub.f32 %v306_v63, %v438_v25 }
 0x2a6   :  { %v466_v27 = vmul.f32 1.442695, %v456_v26 }
 0x2a8   :  { %3064 = vpow2.f32 %v466_v27 }
 0x2ab   :  { %v453_v30 = vpop.xlane.xlu0 %452 }
 0x2ac   :  { %v461_v31 = vsub.f32 %v426_v59, %v453_v30  ;;  %v432_v59 = vpop.xlane.xlu1 %431 }
 0x2ad   :  { %v454_v60 = vsub.f32 %v3629_v1, %v432_v59 }
 0x2ae   :  { %v3649_v32 = vpop.eup %3064  ;;  %v476_v33 = vmul.f32 1.442695, %v461_v31 }
 0x2af   :  { %v484_v20 = vsel %vm242_vm1, %v3649_v32, 0.0 }
 0x2b0   :  { %3066 = vpow2.f32 %v476_v33  ;;  %485 = vadd.xlane.f32.xlu0 %v484_v20 }
 0x2b4   :  { %v3653_v34 = vpop.xlane.xlu2 %443 }
 0x2b5   :  { %v458_v1 = vsub.f32 %v3634_v11, %v3653_v34 }
 0x2b6   :  { %v3655_v37 = vpop.eup %3066 }
 0x2b7   :  { %v499_v38 = vsel %vm242_vm1, %v3655_v37, 0.0  ;;  %v470_v8 = vmul.f32 1.442695, %v458_v1 }
 0x2b8   :  { %500 = vadd.xlane.f32.xlu1 %v499_v38 }
 0x2bc   :  { %v435_v40 = vpop.xlane.xlu2 %434 }
 0x2bd   :  { %v455_v41 = vsub.f32 %v282_v61, %v435_v40  ;;  %v462_v61 = vmul.f32 1.442695, %v454_v60 }
 0x2be   :  { %v682_v42 = vpop.permute.xlu0 %681 }
 0x2bf   :  { %v464_v43 = vmul.f32 1.442695, %v455_v41  ;;  %v687_v44 = vsel %vm643_vm2, %v682_v42, 0 }
 0x2c0   :  { %696 = vmatpush.bf16.msra.mxu3 %v687_v44 }
 0x2c1   :  { %3068 = vpow2.f32 %v464_v43 }
 0x2c4   :  { %v447_v45 = vpop.xlane.xlu2 %446 }
 0x2c5   :  { %v459_v46 = vsub.f32 %v378_v5, %v447_v45 }
 0x2c7   :  { %v3660_v47 = vpop.eup %3068  ;;  %v472_v48 = vmul.f32 1.442695, %v459_v46 }
 0x2c8   :  { %v481_v49 = vsel %vm242_vm1, %v3660_v47, 0.0 }
 0x2c9   :  { %3070 = vpow2.f32 %v472_v48  ;;  %482 = vadd.xlane.f32.xlu2 %v481_v49 }
 0x2cc   :  { %v450_v50 = vpop.xlane.xlu2 %449 }
 0x2cd   :  { %v460_v51 = vsub.f32 %v402_v10, %v450_v50 }
 0x2cf   :  { %v3664_v52 = vpop.eup %3070  ;;  %v474_v53 = vmul.f32 1.442695, %v460_v51 }
 0x2d0   :  { %v493_v54 = vsel %vm242_vm1, %v3664_v52, 0.0 }
 0x2d1   :  { %3072 = vpow2.f32 %v474_v53  ;;  %494 = vadd.xlane.f32.xlu0 %v493_v54 }
 0x2d4   :  { %v661_v55 = vpop.permute.xlu2 %660 }
 0x2d5   :  { %v666_v56 = vsel %vm643_vm2, %v661_v55, 0 }
 0x2d6   :  { %675 = vmatpush.bf16.msra.mxu2 %v666_v56 }
 0x2d7   :  { %v3669_v57 = vpop.eup %3072 }
 0x2d8   :  { %v496_v58 = vsel %vm242_vm1, %v3669_v57, 0.0 }
 0x2d9   :  { %497 = vadd.xlane.f32.xlu1 %v496_v58 }
 0x2e1   :  { %765 = vrot.lane.b32.xlu2 %v3601_v36, %s3439_s29 }
 0x2e5   :  { %744 = vrot.lane.b32.xlu0 %v3589_v29, %s3439_s29 }
 0x2ed   :  { %786 = vrot.lane.b32.xlu0 %v3587_v28, %s3439_s29 }
 0x2f2   :  { %702 = vrot.lane.b32.xlu1 %v3579_v19, %s3439_s29 }
 0x2f5   :  { %638 = vrot.lane.b32.xlu0 %v3599_v35, %s3439_s29 }
 0x2fc   :  { %v489_v62 = vpop.xlane.xlu1 %488 }
 0x2fd   :  { %3074 = vrcp.f32 %v489_v62  ;;  %723 = vrot.lane.b32.xlu0 %v3607_v39, %s3439_s29  ;;  %v558_v0 = vand.u32 2147483648, %v489_v62  ;;  %v556_v4 = vand.u32 2147483647, %v489_v62  ;;  %vm552_vm4 = vweird.f32 %v489_v62 }
 0x2fe   :  { %3076 = vpow2.f32 %v462_v61 }
 0x2ff   :  { %v559_v39 = vor.u32 1.1754944e-38, %v558_v0  ;;  %vm557_vm6 = vcmp.eq.f32.partialorder %v556_v4, 8.507059e+37  ;;  %3078 = vpow2.f32 %v470_v8 }
 0x303   :  { %v3075_v29 = vpop.eup %3074 }
 0x304   :  { %v548_v36 = vmul.f32 %v3075_v29, %v489_v62  ;;  %v3686_v63 = vpop.eup %3076  ;;  %vm553_vm3 = vweird.f32 %v3075_v29 }
 0x305   :  { %v478_v35 = vsel %vm242_vm1, %v3686_v63, 0.0  ;;  %vm554_vm5 = vmor %vm552_vm4, %vm553_vm3  ;;  %v3697_v10 = vpop.eup %3078 }
 0x306   :  { %v549_v28 = vsub.f32 1.0, %v548_v36  ;;  %v490_v11 = vsel %vm242_vm1, %v3697_v10, 0.0 }
 0x308   :  { %v550_v19 = vmul.f32 %v3075_v29, %v549_v28 }
 0x30a   :  { %v551_v5 = vadd.f32 %v3075_v29, %v550_v19  ;;  %479 = vadd.xlane.f32.xlu2 %v478_v35 }
 0x30c   :  { %v555_v6 = vsel %vm554_vm5, %v3075_v29, %v551_v5 }
 0x30d   :  { %v560_v7 = vsel %vm557_vm6, %v559_v39, %v555_v6 }
 0x30e   :  { %v3693_v9 = vmul.f32 %v3645_v23, %v560_v7 }
 0x310   :  { %625 = vst.msk [vmem:[#allocation17 + $0x18] sm:$0xff] %vm242_vm1, %v3693_v9 }
 0x31c   :  { %491 = vadd.xlane.f32.xlu1 %v490_v11 }
 0x323   :  { %v486_v12 = vpop.xlane.xlu0 %485 }
 0x324   :  { %3080 = vrcp.f32 %v486_v12  ;;  %v543_v17 = vand.u32 2147483648, %v486_v12  ;;  %v541_v21 = vand.u32 2147483647, %v486_v12  ;;  %vm537_vm8 = vweird.f32 %v486_v12 }
 0x326   :  { %v544_v24 = vor.u32 1.1754944e-38, %v543_v17  ;;  %vm542_vm10 = vcmp.eq.f32.partialorder %v541_v21, 8.507059e+37 }
 0x32a   :  { %v3081_v13 = vpop.eup %3080 }
 0x32b   :  { %v533_v14 = vmul.f32 %v3081_v13, %v486_v12  ;;  %v501_v15 = vpop.xlane.xlu1 %500  ;;  %vm538_vm7 = vweird.f32 %v3081_v13 }
 0x32c   :  { %3082 = vrcp.f32 %v501_v15  ;;  %vm539_vm9 = vmor %vm537_vm8, %vm538_vm7  ;;  %v618_v33 = vand.u32 2147483648, %v501_v15  ;;  %v616_v34 = vand.u32 2147483647, %v501_v15  ;;  %vm612_vm12 = vweird.f32 %v501_v15 }
 0x32d   :  { %v534_v16 = vsub.f32 1.0, %v533_v14 }
 0x32e   :  { %v619_v41 = vor.u32 1.1754944e-38, %v618_v33  ;;  %vm617_vm14 = vcmp.eq.f32.partialorder %v616_v34, 8.507059e+37 }
 0x32f   :  { %v535_v18 = vmul.f32 %v3081_v13, %v534_v16 }
 0x331   :  { %v536_v22 = vadd.f32 %v3081_v13, %v535_v18 }
 0x332   :  { %v3083_v23 = vpop.eup %3082 }
 0x333   :  { %v540_v25 = vsel %vm539_vm9, %v3081_v13, %v536_v22  ;;  %v608_v26 = vmul.f32 %v3083_v23, %v501_v15  ;;  %vm613_vm11 = vweird.f32 %v3083_v23 }
 0x334   :  { %v545_v27 = vsel %vm542_vm10, %v544_v24, %v540_v25  ;;  %vm614_vm13 = vmor %vm612_vm12, %vm613_vm11 }
 0x335   :  { %v546_v30 = vmul.f32 %v3649_v32, %v545_v27  ;;  %v609_v31 = vsub.f32 1.0, %v608_v26 }
 0x337   :  { %624 = vst.msk [vmem:[#allocation17 + $0x10] sm:$0xff] %vm242_vm1, %v546_v30  ;;  %v610_v20 = vmul.f32 %v3083_v23, %v609_v31  ;;  %v632_v38 = vpack.c.bf16 %v546_v30, %v546_v30 }
 0x339   :  { %v611_v40 = vadd.f32 %v3083_v23, %v610_v20  ;;  %2840 = vmatmul.msk.bf16.vlgmr.msra.gmra.mxu3 %vm242_vm1, %v632_v38 }
 0x33b   :  { %v615_v42 = vsel %vm614_vm13, %v3083_v23, %v611_v40 }
 0x33c   :  { %v620_v43 = vsel %vm617_vm14, %v619_v41, %v615_v42  ;;  %v483_v44 = vpop.xlane.xlu2 %482 }
 0x33d   :  { %v3705_v32 = vmul.f32 %v3655_v37, %v620_v43  ;;  %3084 = vrcp.f32 %v483_v44  ;;  %v528_v53 = vand.u32 2147483648, %v483_v44  ;;  %v526_v55 = vand.u32 2147483647, %v483_v44 }
 0x33e   :  { %vm522_vm3 = vweird.f32 %v483_v44 }
 0x33f   :  { %629 = vst.msk [vmem:[#allocation17 + $0x38] sm:$0xff] %vm242_vm1, %v3705_v32  ;;  %v529_v58 = vor.u32 1.1754944e-38, %v528_v53  ;;  %vm527_vm5 = vcmp.eq.f32.partialorder %v526_v55, 8.507059e+37  ;;  %v637_v34 = vpack.c.bf16 %v3705_v32, %v3705_v32 }
 0x343   :  { %v3085_v45 = vpop.eup %3084 }
 0x344   :  { %v518_v46 = vmul.f32 %v3085_v45, %v483_v44  ;;  %v766_v48 = vpop.permute.xlu2 %765  ;;  %v495_v49 = vpop.xlane.xlu0 %494  ;;  %vm523_vm15 = vweird.f32 %v3085_v45 }
 0x345   :  { %v771_v50 = vsel %vm643_vm2, %v766_v48, 0  ;;  %3086 = vrcp.f32 %v495_v49  ;;  %vm524_vm4 = vmor %vm522_vm3, %vm523_vm15  ;;  %v588_v28 = vand.u32 2147483648, %v495_v49  ;;  %v586_v19 = vand.u32 2147483647, %v495_v49 }
 0x346   :  { %v519_v51 = vsub.f32 1.0, %v518_v46  ;;  %780 = vmatpush.bf16.msrb.mxu3 %v771_v50  ;;  %vm582_vm7 = vweird.f32 %v495_v49 }
 0x347   :  { %v589_v5 = vor.u32 1.1754944e-38, %v588_v28  ;;  %vm587_vm9 = vcmp.eq.f32.partialorder %v586_v19, 8.507059e+37 }
 0x348   :  { %v520_v54 = vmul.f32 %v3085_v45, %v519_v51 }
 0x34a   :  { %v521_v56 = vadd.f32 %v3085_v45, %v520_v54 }
 0x34b   :  { %v3087_v37 = vpop.eup %3086 }
 0x34c   :  { %v525_v59 = vsel %vm524_vm4, %v3085_v45, %v521_v56  ;;  %v578_v60 = vmul.f32 %v3087_v37, %v495_v49  ;;  %v498_v61 = vpop.xlane.xlu1 %497  ;;  %vm583_vm6 = vweird.f32 %v3087_v37 }
 0x34d   :  { %v530_v62 = vsel %vm527_vm5, %v529_v58, %v525_v59  ;;  %3088 = vrcp.f32 %v498_v61  ;;  %vm584_vm8 = vmor %vm582_vm7, %vm583_vm6  ;;  %v603_v11 = vand.u32 2147483648, %v498_v61  ;;  %v601_v14 = vand.u32 2147483647, %v498_v61 }
 0x34e   :  { %v531_v29 = vmul.f32 %v3660_v47, %v530_v62  ;;  %v579_v36 = vsub.f32 1.0, %v578_v60  ;;  %vm597_vm11 = vweird.f32 %v498_v61 }
 0x34f   :  { %v604_v17 = vor.u32 1.1754944e-38, %v603_v11  ;;  %vm602_vm13 = vcmp.eq.f32.partialorder %v601_v14, 8.507059e+37 }
 0x350   :  { %623 = vst.msk [vmem:[#allocation17 + $0x8] sm:$0xff] %vm242_vm1, %v531_v29  ;;  %v580_v0 = vmul.f32 %v3087_v37, %v579_v36  ;;  %v631_v4 = vpack.c.bf16 %v531_v29, %v531_v29 }
 0x352   :  { %v581_v35 = vadd.f32 %v3087_v37, %v580_v0  ;;  %2839 = vmatmul.msk.bf16.vlgmr.msra.gmra.mxu2 %vm242_vm1, %v631_v4 }
 0x353   :  { %v3089_v1 = vpop.eup %3088 }
 0x354   :  { %v585_v39 = vsel %vm584_vm8, %v3087_v37, %v581_v35  ;;  %v593_v6 = vmul.f32 %v3089_v1, %v498_v61  ;;  %vm598_vm10 = vweird.f32 %v3089_v1 }
 0x355   :  { %v590_v7 = vsel %vm587_vm9, %v589_v5, %v585_v39  ;;  %vm599_vm12 = vmor %vm597_vm11, %vm598_vm10  ;;  %vm820_vm9 = vcmask 130048   ;;  %vm822_vm10 = vcmask 195584  }
 0x356   :  { %v591_v47 = vmul.f32 %v3664_v52, %v590_v7  ;;  %v594_v8 = vsub.f32 1.0, %v593_v6 }
 0x357   :  { %v745_v12 = vpop.permute.xlu0 %744 }
 0x358   :  { %627 = vst.msk [vmem:[#allocation17 + $0x28] sm:$0xff] %vm242_vm1, %v591_v47  ;;  %v595_v13 = vmul.f32 %v3089_v1, %v594_v8  ;;  %v750_v15 = vsel %vm643_vm2, %v745_v12, 0  ;;  %v635_v23 = vpack.c.bf16 %v591_v47, %v591_v47 }
 0x359   :  { %759 = vmatpush.bf16.msrb.mxu2 %v750_v15 }
 0x35a   :  { %v596_v16 = vadd.f32 %v3089_v1, %v595_v13 }
 0x35c   :  { %v600_v18 = vsel %vm599_vm12, %v3089_v1, %v596_v16  ;;  %v2959_v16 = vld [vmem:[#allocation8 + $0x8] sm:$0xff] }
 0x35d   :  { %v605_v21 = vsel %vm602_vm13, %v604_v17, %v600_v18  ;;  %v2958_v17 = vld [vmem:[#allocation8] sm:$0xff] }
 0x35e   :  { %v606_v52 = vmul.f32 %v3669_v57, %v605_v21  ;;  %v633_v57 = vpack.c.bf16 %v3693_v9, %v3693_v9 }
 0x35f   :  { %v787_v22 = vpop.permute.xlu0 %786 }
 0x360   :  { %628 = vst.msk [vmem:[#allocation17 + $0x30] sm:$0xff] %vm242_vm1, %v606_v52  ;;  %v636_v24 = vpack.c.bf16 %v606_v52, %v606_v52  ;;  %v792_v27 = vsel %vm643_vm2, %v787_v22, 0 }
 0x362   :  { %2843 = vmatmul.msk.bf16.vlgmr.msrb.gmra.mxu2 %vm242_vm1, %v635_v23  ;;  %2844 = vmatmul.msk.bf16.vlgmr.msrb.gmra.mxu3 %vm242_vm1, %v636_v24 }
 0x364   :  { %v703_v25 = vpop.permute.xlu1 %702 }
 0x365   :  { %v708_v26 = vsel %vm643_vm2, %v703_v25, 0 }
 0x366   :  { %717 = vmatpush.bf16.msrb.mxu0 %v708_v26 }
 0x367   :  { %v639_v30 = vpop.permute.xlu0 %638 }
 0x368   :  { %v645_v31 = vsel %vm643_vm2, %v639_v30, 0 }
 0x369   :  { %654 = vmatpush.bf16.msra.mxu1 %v645_v31  ;;  %2841 = vmatmul.msk.bf16.vlgmr.msrb.gmra.mxu0 %vm242_vm1, %v633_v57 }
 0x36a   :  { %801 = vmatpush.bf16.msra.mxu0 %v792_v27 }
 0x36f   :  { %v724_v33 = vpop.permute.xlu0 %723 }
 0x370   :  { %v729_v20 = vsel %vm643_vm2, %v724_v33, 0 }
 0x371   :  { %738 = vmatpush.bf16.msrb.mxu1 %v729_v20 }
 0x379   :  { %2845 = vmatmul.msk.bf16.vlgmr.msra.gmra.mxu0 %vm242_vm1, %v637_v34 }
 0x37d   :  { %v480_v38 = vpop.xlane.xlu2 %479 }
 0x37e   :  { %3090 = vrcp.f32 %v480_v38  ;;  %v513_v9 = vand.u32 2147483648, %v480_v38  ;;  %v511_v44 = vand.u32 2147483647, %v480_v38  ;;  %vm507_vm15 = vweird.f32 %v480_v38 }
 0x380   :  { %v514_v46 = vor.u32 1.1754944e-38, %v513_v9  ;;  %vm512_vm4 = vcmp.eq.f32.partialorder %v511_v44, 8.507059e+37 }
 0x384   :  { %v3091_v40 = vpop.eup %3090 }
 0x385   :  { %v503_v41 = vmul.f32 %v3091_v40, %v480_v38  ;;  %vm508_vm14 = vweird.f32 %v3091_v40 }
 0x386   :  { %vm509_vm3 = vmor %vm507_vm15, %vm508_vm14 }
 0x387   :  { %v504_v42 = vsub.f32 1.0, %v503_v41 }
 0x389   :  { %v505_v43 = vmul.f32 %v3091_v40, %v504_v42 }
 0x38b   :  { %v506_v45 = vadd.f32 %v3091_v40, %v505_v43 }
 0x38d   :  { %v510_v48 = vsel %vm509_vm3, %v3091_v40, %v506_v45  ;;  %v3042_v40 = vld [vmem:[%s4206_s4] ss:$0 sm:$0xff] }
 0x38e   :  { %v515_v49 = vsel %vm512_vm4, %v514_v46, %v510_v48 }
 0x38f   :  { %v516_v32 = vmul.f32 %v3686_v63, %v515_v49  ;;  %v492_v50 = vpop.xlane.xlu1 %491  ;;  %v3457_v49 = vmov 32.0  }
 0x390   :  { %3092 = vrcp.f32 %v492_v50  ;;  %v573_v56 = vand.u32 2147483648, %v492_v50  ;;  %v571_v58 = vand.u32 2147483647, %v492_v50  ;;  %vm567_vm6 = vweird.f32 %v492_v50 }
 0x391   :  { %622 = vst.msk [vmem:[#allocation17] sm:$0xff] %vm242_vm1, %v516_v32  ;;  %v630_v51 = vpack.c.bf16 %v516_v32, %v516_v32  ;;  %3094 = vrcp.f32 %v3457_v49 }
 0x392   :  { %v574_v60 = vor.u32 1.1754944e-38, %v573_v56  ;;  %vm572_vm8 = vcmp.eq.f32.partialorder %v571_v58, 8.507059e+37 }
 0x393   :  { %2838 = vmatmul.msk.bf16.vlgmr.msra.gmra.mxu1 %vm242_vm1, %v630_v51 }
 0x394   :  { %869 = vmatpush.bf16.msra.mxu1 %v2959_v16  ;;  %v3043_v16 = vld [vmem:[#allocation10] ss:$0 sm:$0xff] }
 0x396   :  { %v3093_v53 = vpop.eup %3092 }
 0x397   :  { %v563_v54 = vmul.f32 %v3093_v53, %v492_v50  ;;  %vm568_vm5 = vweird.f32 %v3093_v53  ;;  %v3095_v32 = vpop.eup %3094 }
 0x398   :  { %vm569_vm7 = vmor %vm567_vm6, %vm568_vm5  ;;  %870 = vmatpush.bf16.msra.mxu1 %v2958_v17  ;;  %v886_v50 = vmul.f32 32.0, %v3095_v32  ;;  %vm890_vm11 = vweird.f32 %v3095_v32 }
 0x399   :  { %v564_v55 = vsub.f32 1.0, %v563_v54 }
 0x39a   :  { %v887_v51 = vsub.f32 1.0, %v886_v50 }
 0x39b   :  { %v565_v37 = vmul.f32 %v3093_v53, %v564_v55 }
 0x39d   :  { %v566_v59 = vadd.f32 %v3093_v53, %v565_v37 }
 0x39f   :  { %v570_v61 = vsel %vm569_vm7, %v3093_v53, %v566_v59  ;;  %v888_v53 = vmul.f32 %v3095_v32, %v887_v51  ;;  %v2963_v51 = vld [vmem:[#allocation5 + $0x18] sm:$0xff] }
 0x3a0   :  { %v575_v63 = vsel %vm572_vm8, %v574_v60, %v570_v61  ;;  %1072 = vmatpush.bf16.msra.mxu3 %v2963_v51 }
 0x3a1   :  { %v576_v62 = vmul.f32 %v3697_v10, %v575_v63  ;;  %v889_v54 = vadd.f32 %v3095_v32, %v888_v53 }
 0x3a3   :  { %626 = vst.msk [vmem:[#allocation17 + $0x20] sm:$0xff] %vm242_vm1, %v576_v62  ;;  %v634_v29 = vpack.c.bf16 %v576_v62, %v576_v62  ;;  %v3753_v55 = vsel %vm890_vm11, %v3095_v32, %v889_v54 }
 0x3a5   :  { %2842 = vmatmul.msk.bf16.vlgmr.msrb.gmra.mxu1 %vm242_vm1, %v634_v29  ;;  %v2961_v29 = vld [vmem:[#allocation11 + $0x8] sm:$0xff] }
 0x3a6   :  { %972 = vmatpush.bf16.msra.mxu2 %v2961_v29 }
 0x3bc   :  { %v698_v36 = vpop.f32.mrf.mxu3 }
 0x3c4   :  { %v700_v28 = vpop.f32.mrf.mxu3 }
 0x3d5   :  { %v677_v0 = vpop.f32.mrf.mxu2 }
 0x3dd   :  { %v679_v19 = vpop.f32.mrf.mxu2 }
 0x3de   :  { %v2960_v19 = vld [vmem:[#allocation11] sm:$0xff] }
 0x3df   :  { %973 = vmatpush.bf16.msra.mxu2 %v2960_v19 }
 0x3e5   :  { %v761_v4 = vpop.f32.mrf.mxu2  ;;  %v782_v35 = vpop.f32.mrf.mxu3 }
 0x3e6   :  { %v2996_v1 = vpack.i.bf16 %v761_v4, %v677_v0  ;;  %v719_v5 = vpop.f32.mrf.mxu0  ;;  %v3001_v7 = vpack.i.bf16 %v782_v35, %v698_v36 }
 0x3e8   :  { %2997 = vrot.lane.b32.xlu0 %v2996_v1, %s3445_s23 }
 0x3ed   :  { %v763_v39 = vpop.f32.mrf.mxu2  ;;  %v784_v6 = vpop.f32.mrf.mxu3 }
 0x3ee   :  { %v721_v47 = vpop.f32.mrf.mxu0 }
 0x3f0   :  { %3002 = vrot.lane.b32.xlu0 %v3001_v7, %s3447_s14 }
 0x3f6   :  { %v803_v10 = vpop.f32.mrf.mxu0 }
 0x3f7   :  { %v3006_v8 = vpack.i.bf16 %v803_v10, %v719_v5 }
 0x3f9   :  { %3007 = vrot.lane.b32.xlu0 %v3006_v8, %s3456_s26 }
 0x3fe   :  { %v805_v11 = vpop.f32.mrf.mxu0 }
 0x410   :  { %v656_v12 = vpop.f32.mrf.mxu1 }
 0x418   :  { %v658_v13 = vpop.f32.mrf.mxu1 }
 0x422   :  { %v740_v14 = vpop.f32.mrf.mxu1 }
 0x42a   :  { %v742_v15 = vpop.f32.mrf.mxu1 }
 0x45a   :  { %v2998_v18 = vpop.permute.xlu0 %2997 }
 0x45b   :  { %v3000_v52 = vunpack.i.h.bf16 %v2998_v18  ;;  %v2999_v22 = vunpack.i.l.bf16 %v2998_v18 }
 0x45d   :  { %v836_v26 = vsel %vm242_vm1, %v740_v14, %v3000_v52  ;;  %v819_v27 = vsel %vm242_vm1, %v656_v12, %v2999_v22  ;;  %v3044_v52 = vld [vmem:[%s4208_s6] ss:$0 sm:$0xff] }
 0x462   :  { %v3003_v21 = vpop.permute.xlu0 %3002 }
 0x463   :  { %v3005_v23 = vunpack.i.h.bf16 %v3003_v21  ;;  %v3004_v24 = vunpack.i.l.bf16 %v3003_v21 }
 0x465   :  { %v821_v31 = vsel %vm820_vm9, %v819_v27, %v3004_v24  ;;  %v837_v33 = vsel %vm820_vm9, %v836_v26, %v3005_v23 }
 0x46b   :  { %v3008_v25 = vpop.permute.xlu0 %3007 }
 0x46c   :  { %v3010_v30 = vunpack.i.h.bf16 %v3008_v25  ;;  %v3009_v57 = vunpack.i.l.bf16 %v3008_v25 }
 0x46e   :  { %v823_v20 = vsel %vm822_vm10, %v821_v31, %v3009_v57  ;;  %v838_v34 = vsel %vm822_vm10, %v837_v33, %v3010_v30  ;;  %v3045_v30 = vld [vmem:[#allocation13] ss:$0 sm:$0xff] }
 0x46f   :  { %v839_v38 = vpack.c.bf16 %v838_v34, %v823_v20 }
 0x471   :  { %2854 = vmatmul.msk.bf16.vlgmr.msra.gmra.mxu1 %vm191_vm0, %v839_v38 }
 0x4ee   :  { %v872_v41 = vpop.f32.mrf.mxu1 }
 0x4ef   :  { %v873_v42 = vadd.f32 %v3042_v40, %v872_v41 }
 0x4f1   :  { %v877_v9 = vadd.f32 %v873_v42, %v3566_v2 }
 0x4f3   :  { %v879_v43 = vsel %vm191_vm0, %v877_v9, 0.0 }
 0x4f4   :  { %880 = vadd.xlane.f32.xlu2 %v879_v43 }
 0x4f6   :  { %v874_v44 = vpop.f32.mrf.mxu1 }
 0x4f7   :  { %v875_v45 = vadd.f32 %v3042_v40, %v874_v44 }
 0x4f9   :  { %v878_v46 = vadd.f32 %v875_v45, %v3568_v3 }
 0x4fb   :  { %v882_v48 = vsel %vm191_vm0, %v878_v46, 0.0 }
 0x4fc   :  { %883 = vadd.xlane.f32.xlu1 %v882_v48 }
 0x567   :  { %v881_v2 = vpop.xlane.xlu2 %880 }
 0x568   :  { %v892_v56 = vmul.f32 %v3753_v55, %v881_v2 }
 0x56a   :  { %v894_v37 = vsub.f32 %v877_v9, %v892_v56  ;;  %v2962_v56 = vld [vmem:[#allocation5 + $0x10] sm:$0xff] }
 0x56b   :  { %1073 = vmatpush.bf16.msra.mxu3 %v2962_v56 }
 0x56c   :  { %v896_v58 = vmul.f32 %v894_v37, %v894_v37 }
 0x56e   :  { %v898_v3 = vsel %vm191_vm0, %v896_v58, 0.0 }
 0x56f   :  { %v884_v59 = vpop.xlane.xlu1 %883  ;;  %899 = vadd.xlane.f32.xlu0 %v898_v3 }
 0x570   :  { %v893_v60 = vmul.f32 %v3753_v55, %v884_v59 }
 0x572   :  { %v895_v61 = vsub.f32 %v878_v46, %v893_v60 }
 0x574   :  { %v897_v63 = vmul.f32 %v895_v61, %v895_v61 }
 0x576   :  { %v901_v62 = vsel %vm191_vm0, %v897_v63, 0.0 }
 0x577   :  { %902 = vadd.xlane.f32.xlu2 %v901_v62 }
 0x5e2   :  { %v900_v36 = vpop.xlane.xlu0 %899 }
 0x5e3   :  { %v904_v28 = vmul.f32 %v900_v36, %v3753_v55 }
 0x5e5   :  { %v906_v0 = vadd.f32 1e-05, %v904_v28 }
 0x5e7   :  { %3096 = vrsqrt.f32 %v906_v0  ;;  %vm914_vm13 = vweird.f32 %v906_v0 }
 0x5ea   :  { %v903_v4 = vpop.xlane.xlu2 %902 }
 0x5eb   :  { %v905_v35 = vmul.f32 %v903_v4, %v3753_v55 }
 0x5ed   :  { %v3097_v1 = vpop.eup %3096  ;;  %v907_v5 = vadd.f32 1e-05, %v905_v35  ;;  %v3047_v35 = vld [vmem:[#allocation14] ss:$0 sm:$0xff] }
 0x5ee   :  { %v909_v39 = vmul.f32 %v3097_v1, %v906_v0  ;;  %vm915_vm12 = vweird.f32 %v3097_v1  ;;  %v3046_v0 = vld [vmem:[%s4211_s9] ss:$0 sm:$0xff] }
 0x5ef   :  { %3098 = vrsqrt.f32 %v907_v5  ;;  %vm916_vm14 = vmor %vm914_vm13, %vm915_vm12  ;;  %vm924_vm3 = vweird.f32 %v907_v5 }
 0x5f0   :  { %v910_v6 = vmul.f32 %v3097_v1, %v909_v39 }
 0x5f2   :  { %v911_v7 = vmul.f32 0.5, %v910_v6 }
 0x5f4   :  { %v912_v47 = vsub.f32 1.5, %v911_v7 }
 0x5f5   :  { %v3099_v10 = vpop.eup %3098 }
 0x5f6   :  { %v913_v8 = vmul.f32 %v3097_v1, %v912_v47  ;;  %v919_v11 = vmul.f32 %v3099_v10, %v907_v5  ;;  %vm925_vm15 = vweird.f32 %v3099_v10 }
 0x5f7   :  { %vm926_vm4 = vmor %vm924_vm3, %vm925_vm15 }
 0x5f8   :  { %v920_v12 = vmul.f32 %v3099_v10, %v919_v11  ;;  %v917_v13 = vsel %vm916_vm14, %v3097_v1, %v913_v8 }
 0x5f9   :  { %v928_v17 = vmul.f32 %v917_v13, %v894_v37 }
 0x5fa   :  { %v921_v14 = vmul.f32 0.5, %v920_v12 }
 0x5fb   :  { %v934_v22 = vmul.f32 %v3043_v16, %v928_v17 }
 0x5fc   :  { %v922_v15 = vsub.f32 1.5, %v921_v14  ;;  %v3048_v14 = vld [vmem:[#allocation7 + $0x1] ss:$0 sm:$0xff] }
 0x5fd   :  { %v940_v25 = vadd.f32 %v3044_v52, %v934_v22 }
 0x5fe   :  { %v923_v18 = vmul.f32 %v3099_v10, %v922_v15 }
 0x600   :  { %v927_v21 = vsel %vm926_vm4, %v3099_v10, %v923_v18 }
 0x601   :  { %v929_v23 = vmul.f32 %v927_v21, %v895_v61 }
 0x603   :  { %v935_v24 = vmul.f32 %v3043_v16, %v929_v23 }
 0x605   :  { %v941_v26 = vadd.f32 %v3044_v52, %v935_v24 }
 0x607   :  { %v942_v27 = vpack.c.bf16 %v941_v26, %v940_v25 }
 0x609   :  { %2863 = vmatmul.msk.bf16.vlgmr.msra.gmra.mxu2 %vm191_vm0, %v942_v27 }
 0x68c   :  { %v975_v57 = vpop.f32.mrf.mxu2 }
 0x68d   :  { %v976_v31 = vadd.f32 %v3045_v30, %v975_v57 }
 0x68f   :  { %v980_v33 = vadd.f32 %v976_v31, %v940_v25 }
 0x691   :  { %v982_v20 = vsel %vm191_vm0, %v980_v33, 0.0 }
 0x692   :  { %983 = vadd.xlane.f32.xlu1 %v982_v20 }
 0x694   :  { %v977_v34 = vpop.f32.mrf.mxu2 }
 0x695   :  { %v978_v38 = vadd.f32 %v3045_v30, %v977_v34 }
 0x697   :  { %v981_v40 = vadd.f32 %v978_v38, %v941_v26 }
 0x699   :  { %v985_v41 = vsel %vm191_vm0, %v981_v40, 0.0 }
 0x69a   :  { %986 = vadd.xlane.f32.xlu2 %v985_v41 }
 0x705   :  { %v984_v42 = vpop.xlane.xlu1 %983 }
 0x706   :  { %v988_v9 = vmul.f32 %v984_v42, %v3753_v55 }
 0x708   :  { %v990_v43 = vsub.f32 %v980_v33, %v988_v9 }
 0x70a   :  { %v992_v44 = vmul.f32 %v990_v43, %v990_v43 }
 0x70c   :  { %v994_v45 = vsel %vm191_vm0, %v992_v44, 0.0 }
 0x70d   :  { %v987_v46 = vpop.xlane.xlu2 %986  ;;  %995 = vadd.xlane.f32.xlu1 %v994_v45 }
 0x70e   :  { %v989_v48 = vmul.f32 %v987_v46, %v3753_v55 }
 0x710   :  { %v991_v49 = vsub.f32 %v981_v40, %v989_v48 }
 0x712   :  { %v993_v32 = vmul.f32 %v991_v49, %v991_v49 }
 0x714   :  { %v997_v50 = vsel %vm191_vm0, %v993_v32, 0.0 }
 0x715   :  { %998 = vadd.xlane.f32.xlu2 %v997_v50 }
 0x780   :  { %v996_v53 = vpop.xlane.xlu1 %995 }
 0x781   :  { %v1000_v54 = vmul.f32 %v996_v53, %v3753_v55 }
 0x783   :  { %v1002_v2 = vadd.f32 1e-05, %v1000_v54 }
 0x785   :  { %3100 = vrsqrt.f32 %v1002_v2  ;;  %vm1010_vm6 = vweird.f32 %v1002_v2 }
 0x788   :  { %v999_v37 = vpop.xlane.xlu2 %998 }
 0x789   :  { %v1001_v58 = vmul.f32 %v999_v37, %v3753_v55 }
 0x78b   :  { %v3101_v3 = vpop.eup %3100  ;;  %v1003_v59 = vadd.f32 1e-05, %v1001_v58 }
 0x78c   :  { %v1005_v60 = vmul.f32 %v3101_v3, %v1002_v2  ;;  %vm1011_vm5 = vweird.f32 %v3101_v3 }
 0x78d   :  { %3102 = vrsqrt.f32 %v1003_v59  ;;  %vm1012_vm7 = vmor %vm1010_vm6, %vm1011_vm5  ;;  %vm1020_vm11 = vweird.f32 %v1003_v59 }
 0x78e   :  { %v1006_v61 = vmul.f32 %v3101_v3, %v1005_v60 }
 0x790   :  { %v1007_v63 = vmul.f32 0.5, %v1006_v61 }
 0x792   :  { %v1008_v62 = vsub.f32 1.5, %v1007_v63 }
 0x793   :  { %v3103_v29 = vpop.eup %3102 }
 0x794   :  { %v1009_v36 = vmul.f32 %v3101_v3, %v1008_v62  ;;  %v1015_v28 = vmul.f32 %v3103_v29, %v1003_v59  ;;  %vm1021_vm8 = vweird.f32 %v3103_v29 }
 0x795   :  { %vm1022_vm12 = vmor %vm1020_vm11, %vm1021_vm8 }
 0x796   :  { %v1013_v19 = vsel %vm1012_vm7, %v3101_v3, %v1009_v36  ;;  %v1016_v4 = vmul.f32 %v3103_v29, %v1015_v28 }
 0x797   :  { %v1024_v1 = vmul.f32 %v1013_v19, %v990_v43 }
 0x798   :  { %v1017_v5 = vmul.f32 0.5, %v1016_v4 }
 0x799   :  { %v1030_v39 = vmul.f32 %v3046_v0, %v1024_v1 }
 0x79a   :  { %v1018_v6 = vsub.f32 1.5, %v1017_v5 }
 0x79b   :  { %v3776_v7 = vadd.f32 %v3047_v35, %v1030_v39 }
 0x79c   :  { %v1019_v47 = vmul.f32 %v3103_v29, %v1018_v6 }
 0x79d   :  { %1038 = vst.msk [vmem:[#allocation16] sm:$0xff] %vm191_vm0, %v3776_v7 }
 0x79e   :  { %v1023_v10 = vsel %vm1022_vm12, %v3103_v29, %v1019_v47 }
 0x79f   :  { %v1025_v8 = vmul.f32 %v1023_v10, %v991_v49 }
 0x7a1   :  { %v1031_v11 = vmul.f32 %v3046_v0, %v1025_v8 }
 0x7a3   :  { %v3780_v12 = vadd.f32 %v3047_v35, %v1031_v11 }
 0x7a5   :  { %1039 = vst.msk [vmem:[#allocation16 + $0x8] sm:$0xff] %vm191_vm0, %v3780_v12  ;;  %v1040_v13 = vpack.c.bf16 %v3780_v12, %v3776_v7 }
 0x7a7   :  { %2872 = vmatmul.msk.bf16.vlgmr.msra.gmra.mxu3 %vm191_vm0, %v1040_v13 }
 0x82a   :  { %v1075_v15 = vpop.f32.mrf.mxu3 }
 0x82b   :  { %v1076_v16 = vadd.f32 %v3048_v14, %v1075_v15 }
 0x82d   :  { %1081 = vrot.lane.b32.xlu0 %v1076_v16, %s3453_s10  ;;  %1087 = vrot.lane.b32.xlu2 %v1076_v16, %s3452_s8  ;;  %v1100_v48 = vpack.c.bf16 %v1076_v16, %v1076_v16 }
 0x82e   :  { %1084 = vrot.lane.b32.xlu1 %v1076_v16, %s3454_s25 }
 0x82f   :  { %v1109_v50 = vunpack.c.l.b16 %v1100_v48 }
 0x831   :  { %v3819_v54 = vpack.c.b16 %v1109_v50, %v1109_v50 }
 0x832   :  { %v1077_v17 = vpop.f32.mrf.mxu3 }
 0x833   :  { %v1078_v18 = vadd.f32 %v3048_v14, %v1077_v17 }
 0x835   :  { %1097 = vrot.lane.b32.xlu2 %v1078_v18, %s3452_s8  ;;  %v1104_v30 = vpack.c.bf16 %v1078_v18, %v1078_v18 }
 0x836   :  { %1094 = vrot.lane.b32.xlu1 %v1078_v18, %s3454_s25 }
 0x837   :  { %v1205_v57 = vunpack.c.l.b16 %v1104_v30 }
 0x839   :  { %v3801_v31 = vpack.c.b16 %v1205_v57, %v1205_v57 }
 0x83e   :  { %1091 = vrot.lane.b32.xlu1 %v1078_v18, %s3453_s10 }
 0x887   :  { %v1088_v21 = vpop.permute.xlu2 %1087 }
 0x888   :  { %v1103_v52 = vpack.c.bf16 %v1088_v21, %v1088_v21 }
 0x88a   :  { %v1181_v22 = vunpack.c.l.b16 %v1103_v52 }
 0x88c   :  { %v3793_v23 = vpack.c.b16 %v1181_v22, %v1181_v22 }
 0x88e   :  { %1183 = vrot.lane.b32.xlu0 %v3793_v23, %s3455_s0 }
 0x88f   :  { %v1098_v24 = vpop.permute.xlu2 %1097 }
 0x890   :  { %v1107_v25 = vpack.c.bf16 %v1098_v24, %v1098_v24 }
 0x892   :  { %v1277_v26 = vunpack.c.l.b16 %v1107_v25 }
 0x894   :  { %v3797_v27 = vpack.c.b16 %v1277_v26, %v1277_v26 }
 0x896   :  { %1279 = vrot.lane.b32.xlu0 %v3797_v27, %s3455_s0 }
 0x89e   :  { %1207 = vrot.lane.b32.xlu0 %v3801_v31, %s3455_s0 }
 0x89f   :  { %v1082_v33 = vpop.permute.xlu0 %1081 }
 0x8a0   :  { %v1101_v20 = vpack.c.bf16 %v1082_v33, %v1082_v33  ;;  %v1085_v34 = vpop.permute.xlu1 %1084 }
 0x8a1   :  { %v1102_v38 = vpack.c.bf16 %v1085_v34, %v1085_v34 }
 0x8a2   :  { %v1133_v40 = vunpack.c.l.b16 %v1101_v20 }
 0x8a3   :  { %v1157_v41 = vunpack.c.l.b16 %v1102_v38 }
 0x8a4   :  { %v3805_v42 = vpack.c.b16 %v1133_v40, %v1133_v40 }
 0x8a5   :  { %v3807_v9 = vpack.c.b16 %v1157_v41, %v1157_v41 }
 0x8a6   :  { %1135 = vrot.lane.b32.xlu1 %v3805_v42, %s3455_s0 }
 0x8a7   :  { %1159 = vrot.lane.b32.xlu2 %v3807_v9, %s3455_s0 }
 0x8a8   :  { %v1095_v43 = vpop.permute.xlu1 %1094 }
 0x8a9   :  { %v1106_v44 = vpack.c.bf16 %v1095_v43, %v1095_v43 }
 0x8ab   :  { %v1253_v45 = vunpack.c.l.b16 %v1106_v44 }
 0x8ad   :  { %v3813_v46 = vpack.c.b16 %v1253_v45, %v1253_v45 }
 0x8af   :  { %1255 = vrot.lane.b32.xlu2 %v3813_v46, %s3455_s0 }
 0x8b0   :  { %v1092_v49 = vpop.permute.xlu1 %1091 }
 0x8b1   :  { %v1105_v32 = vpack.c.bf16 %v1092_v49, %v1092_v49 }
 0x8b3   :  { %v1229_v51 = vunpack.c.l.b16 %v1105_v32 }
 0x8b5   :  { %v3817_v53 = vpack.c.b16 %v1229_v51, %v1229_v51 }
 0x8b7   :  { %1231 = vrot.lane.b32.xlu1 %v3817_v53, %s3455_s0  ;;  %1111 = vrot.lane.b32.xlu2 %v3819_v54, %s3455_s0 }
 0x900   :  { %v1184_v2 = vpop.permute.xlu0 %1183 }
 0x901   :  { %v1189_v56 = vsel %vm242_vm1, %v1184_v2, 0  ;;  %v1160_v37 = vpop.permute.xlu2 %1159 }
 0x902   :  { %v1165_v58 = vsel %vm242_vm1, %v1160_v37, 0  ;;  %1198 = vmatpush.bf16.xpose.msrb.mxu3 %v1189_v56 }
 0x903   :  { %1174 = vmatpush.bf16.xpose.msrb.mxu2 %v1165_v58 }
 0x908   :  { %v1280_v3 = vpop.permute.xlu0 %1279 }
 0x909   :  { %v1285_v59 = vsel %vm242_vm1, %v1280_v3, 0  ;;  %v1256_v60 = vpop.permute.xlu2 %1255  ;;  %2876 = vmatmul.msk.bf16.vlgmr.msrb.gmra.mxu3 %vm242_vm1, %v1103_v52 }
 0x90a   :  { %v1261_v61 = vsel %vm242_vm1, %v1256_v60, 0  ;;  %2875 = vmatmul.msk.bf16.vlgmr.msrb.gmra.mxu2 %vm242_vm1, %v1102_v38  ;;  %1294 = vmatpush.bf16.xpose.msra.mxu3 %v1285_v59 }
 0x90b   :  { %1270 = vmatpush.bf16.xpose.msra.mxu2 %v1261_v61 }
 0x910   :  { %v1208_v63 = vpop.permute.xlu0 %1207 }
 0x911   :  { %v1213_v62 = vsel %vm242_vm1, %v1208_v63, 0  ;;  %v1112_v29 = vpop.permute.xlu2 %1111 }
 0x912   :  { %v1117_v36 = vsel %vm242_vm1, %v1112_v29, 0 }
 0x913   :  { %1126 = vmatpush.bf16.xpose.msrb.mxu0 %v1117_v36 }
 0x918   :  { %v1136_v28 = vpop.permute.xlu1 %1135 }
 0x919   :  { %v1141_v0 = vsel %vm242_vm1, %v1136_v28, 0  ;;  %2880 = vmatmul.msk.bf16.vlgmr.msra.gmra.mxu3 %vm242_vm1, %v1107_v25 }
 0x91a   :  { %2873 = vmatmul.msk.bf16.vlgmr.msrb.gmra.mxu0 %vm242_vm1, %v1100_v48  ;;  %2879 = vmatmul.msk.bf16.vlgmr.msra.gmra.mxu2 %vm242_vm1, %v1106_v44 }
 0x91b   :  { %1222 = vmatpush.bf16.xpose.msra.mxu0 %v1213_v62  ;;  %1150 = vmatpush.bf16.xpose.msrb.mxu1 %v1141_v0 }
 0x922   :  { %2874 = vmatmul.msk.bf16.vlgmr.msrb.gmra.mxu1 %vm242_vm1, %v1101_v20 }
 0x929   :  { %v1232_v19 = vpop.permute.xlu1 %1231 }
 0x92a   :  { %v1237_v4 = vsel %vm242_vm1, %v1232_v19, 0  ;;  %2877 = vmatmul.msk.bf16.vlgmr.msra.gmra.mxu0 %vm242_vm1, %v1104_v30 }
 0x92b   :  { %1246 = vmatpush.bf16.xpose.msra.mxu1 %v1237_v4 }
 0x932   :  { %2878 = vmatmul.msk.bf16.vlgmr.msra.gmra.mxu1 %vm242_vm1, %v1105_v32 }
 0x98c   :  { %v1200_v35 = vpop.f32.mrf.mxu3 }
 0x98d   :  { %v1176_v1 = vpop.f32.mrf.mxu2  ;;  %v1309_v30 = vsel %vm242_vm1, %v1200_v35, -inf }
 0x98e   :  { %v1306_v5 = vsel %vm242_vm1, %v1176_v1, -inf }
 0x98f   :  { %1307 = vmax.xlane.f32.xlu1 %v1306_v5 }
 0x994   :  { %v1202_v39 = vpop.f32.mrf.mxu3 }
 0x995   :  { %v1178_v6 = vpop.f32.mrf.mxu2 }
 0x997   :  { %v3842_v47 = vpop.f32.mrf.mxu0 }
 0x998   :  { %v1300_v10 = vsel %vm242_vm1, %v3842_v47, -inf }
 0x999   :  { %1301 = vmax.xlane.f32.xlu1 %v1300_v10 }
 0x99c   :  { %v1296_v8 = vpop.f32.mrf.mxu3 }
 0x99d   :  { %v1272_v11 = vpop.f32.mrf.mxu2  ;;  %v1321_v33 = vsel %vm242_vm1, %v1296_v8, -inf }
 0x99e   :  { %v1318_v16 = vsel %vm242_vm1, %v1272_v11, -inf }
 0x99f   :  { %v1130_v13 = vpop.f32.mrf.mxu0  ;;  %v1152_v14 = vpop.f32.mrf.mxu1 }
 0x9a0   :  { %v1303_v15 = vsel %vm242_vm1, %v1152_v14, -inf }
 0x9a1   :  { %1304 = vmax.xlane.f32.xlu0 %v1303_v15  ;;  %1319 = vmax.xlane.f32.xlu1 %v1318_v16 }
 0x9a4   :  { %v1298_v17 = vpop.f32.mrf.mxu3 }
 0x9a5   :  { %v1274_v18 = vpop.f32.mrf.mxu2 }
 0x9a7   :  { %v1154_v21 = vpop.f32.mrf.mxu1  ;;  %v3848_v52 = vpop.f32.mrf.mxu0 }
 0x9a8   :  { %v1312_v22 = vsel %vm242_vm1, %v3848_v52, -inf }
 0x9a9   :  { %1313 = vmax.xlane.f32.xlu2 %v1312_v22 }
 0x9af   :  { %v1226_v24 = vpop.f32.mrf.mxu0  ;;  %v1248_v25 = vpop.f32.mrf.mxu1 }
 0x9b0   :  { %v1315_v26 = vsel %vm242_vm1, %v1248_v25, -inf }
 0x9b1   :  { %1316 = vmax.xlane.f32.xlu0 %v1315_v26  ;;  %1310 = vmax.xlane.f32.xlu2 %v1309_v30 }
 0x9b7   :  { %v1250_v57 = vpop.f32.mrf.mxu1 }
 0x9b9   :  { %1322 = vmax.xlane.f32.xlu2 %v1321_v33 }
 0x9c5   :  { %1572 = vrot.lane.b32.xlu0 %v3793_v23, %s3439_s29 }
 0x9d1   :  { %1551 = vrot.lane.b32.xlu2 %v3807_v9, %s3439_s29 }
 0xa02   :  { %v1308_v20 = vpop.xlane.xlu1 %1307 }
 0xa03   :  { %v1326_v34 = vsub.f32 %v1176_v1, %v1308_v20 }
 0xa05   :  { %v1336_v38 = vmul.f32 1.442695, %v1326_v34 }
 0xa07   :  { %3104 = vpow2.f32 %v1336_v38 }
 0xa0c   :  { %v1302_v48 = vpop.xlane.xlu1 %1301 }
 0xa0d   :  { %v3859_v40 = vpop.eup %3104  ;;  %v1324_v6 = vsub.f32 %v3842_v47, %v1302_v48 }
 0xa0e   :  { %v1354_v41 = vsel %vm242_vm1, %v3859_v40, 0.0 }
 0xa0f   :  { %1355 = vadd.xlane.f32.xlu2 %v1354_v41  ;;  %v1332_v10 = vmul.f32 1.442695, %v1324_v6 }
 0xa14   :  { %v1305_v43 = vpop.xlane.xlu0 %1304  ;;  %v1320_v51 = vpop.xlane.xlu1 %1319 }
 0xa15   :  { %v1325_v44 = vsub.f32 %v1152_v14, %v1305_v43  ;;  %v1330_v3 = vsub.f32 %v1272_v11, %v1320_v51 }
 0xa17   :  { %v1334_v45 = vmul.f32 1.442695, %v1325_v44  ;;  %v1344_v59 = vmul.f32 1.442695, %v1330_v3 }
 0xa19   :  { %3106 = vpow2.f32 %v1334_v45 }
 0xa1c   :  { %v1314_v49 = vpop.xlane.xlu2 %1313 }
 0xa1d   :  { %v1328_v47 = vsub.f32 %v3848_v52, %v1314_v49 }
 0xa1f   :  { %v3863_v23 = vpop.eup %3106  ;;  %v1340_v13 = vmul.f32 1.442695, %v1328_v47 }
 0xa20   :  { %v1351_v9 = vsel %vm242_vm1, %v3863_v23, 0.0 }
 0xa21   :  { %1352 = vadd.xlane.f32.xlu1 %v1351_v9 }
 0xa24   :  { %v1317_v32 = vpop.xlane.xlu0 %1316  ;;  %v1311_v50 = vpop.xlane.xlu2 %1310 }
 0xa25   :  { %v1329_v2 = vsub.f32 %v1248_v25, %v1317_v32  ;;  %v1327_v56 = vsub.f32 %v1200_v35, %v1311_v50 }
 0xa27   :  { %v1342_v37 = vmul.f32 1.442695, %v1329_v2  ;;  %v1338_v58 = vmul.f32 1.442695, %v1327_v56  ;;  %1656 = vrot.lane.b32.xlu2 %v3797_v27, %s3439_s29 }
 0xa29   :  { %3108 = vpow2.f32 %v1342_v37 }
 0xa2a   :  { %3110 = vpow2.f32 %v1338_v58 }
 0xa2b   :  { %3112 = vpow2.f32 %v1344_v59 }
 0xa2c   :  { %v1323_v60 = vpop.xlane.xlu2 %1322 }
 0xa2d   :  { %v1331_v61 = vsub.f32 %v1296_v8, %v1323_v60 }
 0xa2f   :  { %v3869_v63 = vpop.eup %3108  ;;  %v1346_v62 = vmul.f32 1.442695, %v1331_v61 }
 0xa30   :  { %v3871_v29 = vpop.eup %3110  ;;  %v1363_v36 = vsel %vm242_vm1, %v3869_v63, 0.0 }
 0xa31   :  { %3114 = vpow2.f32 %v1346_v62  ;;  %1364 = vadd.xlane.f32.xlu1 %v1363_v36  ;;  %v1357_v27 = vsel %vm242_vm1, %v3871_v29, 0.0  ;;  %v3878_v19 = vpop.eup %3112 }
 0xa32   :  { %1358 = vadd.xlane.f32.xlu0 %v1357_v27  ;;  %v1366_v39 = vsel %vm242_vm1, %v3878_v19, 0.0  ;;  %3116 = vpow2.f32 %v1332_v10 }
 0xa33   :  { %3118 = vpow2.f32 %v1340_v13 }
 0xa34   :  { %v1552_v28 = vpop.permute.xlu2 %1551 }
 0xa35   :  { %v1557_v0 = vsel %vm643_vm2, %v1552_v28, 0 }
 0xa36   :  { %1566 = vmatpush.bf16.msrb.mxu2 %v1557_v0 }
 0xa37   :  { %v3880_v4 = vpop.eup %3114  ;;  %v1573_v35 = vpop.permute.xlu0 %1572 }
 0xa38   :  { %v1578_v1 = vsel %vm643_vm2, %v1573_v35, 0  ;;  %v1369_v5 = vsel %vm242_vm1, %v3880_v4, 0.0  ;;  %v3888_v8 = vpop.eup %3116 }
 0xa39   :  { %1587 = vmatpush.bf16.msrb.mxu3 %v1578_v1  ;;  %1370 = vadd.xlane.f32.xlu1 %v1369_v5  ;;  %v1348_v11 = vsel %vm242_vm1, %v3888_v8, 0.0 }
 0xa3a   :  { %1367 = vadd.xlane.f32.xlu0 %v1366_v39 }
 0xa4e   :  { %1635 = vrot.lane.b32.xlu0 %v3813_v46, %s3439_s29  ;;  %v3903_v46 = vpop.eup %3118 }
 0xa4f   :  { %v1360_v14 = vsel %vm242_vm1, %v3903_v46, 0.0 }
 0xa50   :  { %1349 = vadd.xlane.f32.xlu2 %v1348_v11 }
 0xa52   :  { %1530 = vrot.lane.b32.xlu1 %v3805_v42, %s3439_s29 }
 0xa56   :  { %1614 = vrot.lane.b32.xlu0 %v3817_v53, %s3439_s29 }
 0xa5e   :  { %1509 = vrot.lane.b32.xlu0 %v3819_v54, %s3439_s29 }
 0xa66   :  { %1593 = vrot.lane.b32.xlu0 %v3801_v31, %s3439_s29 }
 0xa7c   :  { %1361 = vadd.xlane.f32.xlu1 %v1360_v14 }
 0xa82   :  { %v1356_v42 = vpop.xlane.xlu2 %1355 }
 0xa83   :  { %3120 = vrcp.f32 %v1356_v42  ;;  %v1413_v31 = vand.u32 2147483648, %v1356_v42  ;;  %v1411_v21 = vand.u32 2147483647, %v1356_v42  ;;  %vm1407_vm14 = vweird.f32 %v1356_v42 }
 0xa85   :  { %v1414_v22 = vor.u32 1.1754944e-38, %v1413_v31  ;;  %vm1412_vm3 = vcmp.eq.f32.partialorder %v1411_v21, 8.507059e+37 }
 0xa89   :  { %v3121_v15 = vpop.eup %3120 }
 0xa8a   :  { %v1403_v53 = vmul.f32 %v3121_v15, %v1356_v42  ;;  %v1657_v16 = vpop.permute.xlu2 %1656  ;;  %vm1408_vm13 = vweird.f32 %v3121_v15 }
 0xa8b   :  { %v1662_v54 = vsel %vm643_vm2, %v1657_v16, 0  ;;  %vm1409_vm15 = vmor %vm1407_vm14, %vm1408_vm13 }
 0xa8c   :  { %v1404_v17 = vsub.f32 1.0, %v1403_v53  ;;  %1671 = vmatpush.bf16.msra.mxu3 %v1662_v54 }
 0xa8e   :  { %v1405_v18 = vmul.f32 %v3121_v15, %v1404_v17 }
 0xa90   :  { %v1406_v52 = vadd.f32 %v3121_v15, %v1405_v18 }
 0xa92   :  { %v1410_v24 = vsel %vm1409_vm15, %v3121_v15, %v1406_v52 }
 0xa93   :  { %v1415_v25 = vsel %vm1412_vm3, %v1414_v22, %v1410_v24 }
 0xa94   :  { %v1416_v26 = vmul.f32 %v3859_v40, %v1415_v25  ;;  %v1353_v30 = vpop.xlane.xlu1 %1352 }
 0xa95   :  { %3122 = vrcp.f32 %v1353_v30  ;;  %v1398_v38 = vand.u32 2147483648, %v1353_v30  ;;  %v1396_v43 = vand.u32 2147483647, %v1353_v30  ;;  %vm1392_vm5 = vweird.f32 %v1353_v30 }
 0xa96   :  { %1495 = vst.msk [vmem:[#allocation17 + $0x50] sm:$0xff] %vm242_vm1, %v1416_v26  ;;  %v1503_v57 = vpack.c.bf16 %v1416_v26, %v1416_v26 }
 0xa97   :  { %v1399_v45 = vor.u32 1.1754944e-38, %v1398_v38  ;;  %vm1397_vm7 = vcmp.eq.f32.partialorder %v1396_v43, 8.507059e+37 }
 0xa98   :  { %2883 = vmatmul.msk.bf16.vlgmr.msrb.gmra.mxu2 %vm242_vm1, %v1503_v57 }
 0xa9b   :  { %v3123_v33 = vpop.eup %3122 }
 0xa9c   :  { %v1388_v20 = vmul.f32 %v3123_v33, %v1353_v30  ;;  %vm1393_vm4 = vweird.f32 %v3123_v33 }
 0xa9d   :  { %vm1394_vm6 = vmor %vm1392_vm5, %vm1393_vm4 }
 0xa9e   :  { %v1389_v34 = vsub.f32 1.0, %v1388_v20 }
 0xaa0   :  { %v1390_v41 = vmul.f32 %v3123_v33, %v1389_v34 }
 0xaa2   :  { %v1391_v44 = vadd.f32 %v3123_v33, %v1390_v41 }
 0xaa4   :  { %v1395_v48 = vsel %vm1394_vm6, %v3123_v33, %v1391_v44  ;;  %v1365_v40 = vpop.xlane.xlu1 %1364 }
 0xaa5   :  { %v1400_v49 = vsel %vm1397_vm7, %v1399_v45, %v1395_v48  ;;  %3124 = vrcp.f32 %v1365_v40  ;;  %v1359_v9 = vpop.xlane.xlu0 %1358  ;;  %v1458_v59 = vand.u32 2147483648, %v1365_v40  ;;  %v1456_v62 = vand.u32 2147483647, %v1365_v40 }
 0xaa6   :  { %v3912_v32 = vmul.f32 %v3863_v23, %v1400_v49  ;;  %3126 = vrcp.f32 %v1359_v9  ;;  %v1428_v23 = vand.u32 2147483648, %v1359_v9  ;;  %v1426_v27 = vand.u32 2147483647, %v1359_v9 }
 0xaa7   :  { %vm1452_vm12 = vweird.f32 %v1365_v40  ;;  %v1459_v35 = vor.u32 1.1754944e-38, %v1458_v59  ;;  %vm1422_vm14 = vweird.f32 %v1359_v9  ;;  %vm1457_vm15 = vcmp.eq.f32.partialorder %v1456_v62, 8.507059e+37 }
 0xaa8   :  { %1494 = vst.msk [vmem:[#allocation17 + $0x48] sm:$0xff] %vm242_vm1, %v3912_v32  ;;  %v1429_v6 = vor.u32 1.1754944e-38, %v1428_v23  ;;  %vm1427_vm4 = vcmp.eq.f32.partialorder %v1426_v27, 8.507059e+37 }
 0xaab   :  { %v3125_v50 = vpop.eup %3124 }
 0xaac   :  { %v3127_v51 = vpop.eup %3126  ;;  %v1448_v2 = vmul.f32 %v3125_v50, %v1365_v40  ;;  %v1371_v56 = vpop.xlane.xlu1 %1370  ;;  %vm1453_vm8 = vweird.f32 %v3125_v50 }
 0xaad   :  { %v1418_v37 = vmul.f32 %v3127_v51, %v1359_v9  ;;  %v1368_v58 = vpop.xlane.xlu0 %1367  ;;  %3128 = vrcp.f32 %v1371_v56  ;;  %vm1423_vm11 = vweird.f32 %v3127_v51  ;;  %vm1454_vm13 = vmor %vm1452_vm12, %vm1453_vm8  ;;  %v1488_v54 = vand.u32 2147483648, %v1371_v56 }
 0xaae   :  { %v1449_v3 = vsub.f32 1.0, %v1448_v2  ;;  %3130 = vrcp.f32 %v1368_v58  ;;  %vm1424_vm3 = vmor %vm1422_vm14, %vm1423_vm11  ;;  %v1473_v17 = vand.u32 2147483648, %v1368_v58  ;;  %v1486_v18 = vand.u32 2147483647, %v1371_v56 }
 0xaaf   :  { %v1419_v60 = vsub.f32 1.0, %v1418_v37  ;;  %v1471_v52 = vand.u32 2147483647, %v1368_v58  ;;  %vm1482_vm7 = vweird.f32 %v1371_v56  ;;  %vm1467_vm8 = vweird.f32 %v1368_v58 }
 0xab0   :  { %v1450_v61 = vmul.f32 %v3125_v50, %v1449_v3  ;;  %v1474_v25 = vor.u32 1.1754944e-38, %v1473_v17 }
 0xab1   :  { %v1420_v36 = vmul.f32 %v3127_v51, %v1419_v60  ;;  %vm1472_vm14 = vcmp.eq.f32.partialorder %v1471_v52, 8.507059e+37 }
 0xab2   :  { %v1451_v28 = vadd.f32 %v3125_v50, %v1450_v61 }
 0xab3   :  { %v3129_v0 = vpop.eup %3128  ;;  %v1421_v1 = vadd.f32 %v3127_v51, %v1420_v36 }
 0xab4   :  { %v3131_v5 = vpop.eup %3130  ;;  %v1455_v39 = vsel %vm1454_vm13, %v3125_v50, %v1451_v28  ;;  %v1478_v10 = vmul.f32 %v3129_v0, %v1371_v56  ;;  %vm1483_vm5 = vweird.f32 %v3129_v0  ;;  %vm1487_vm13 = vcmp.eq.f32.partialorder %v1486_v18, 8.507059e+37 }
 0xab5   :  { %v1460_v11 = vsel %vm1457_vm15, %v1459_v35, %v1455_v39  ;;  %v1425_v47 = vsel %vm1424_vm3, %v3127_v51, %v1421_v1  ;;  %v1463_v13 = vmul.f32 %v3131_v5, %v1368_v58  ;;  %vm1468_vm6 = vweird.f32 %v3131_v5  ;;  %vm1484_vm11 = vmor %vm1482_vm7, %vm1483_vm5 }
 0xab6   :  { %v3917_v14 = vmul.f32 %v3869_v63, %v1460_v11  ;;  %v1430_v42 = vsel %vm1427_vm4, %v1429_v6, %v1425_v47  ;;  %v1479_v15 = vsub.f32 1.0, %v1478_v10  ;;  %vm1469_vm12 = vmor %vm1467_vm8, %vm1468_vm6 }
 0xab7   :  { %v1431_v53 = vmul.f32 %v3871_v29, %v1430_v42  ;;  %v1464_v16 = vsub.f32 1.0, %v1463_v13  ;;  %v1489_v29 = vor.u32 1.1754944e-38, %v1488_v54 }
 0xab8   :  { %1498 = vst.msk [vmem:[#allocation17 + $0x68] sm:$0xff] %vm242_vm1, %v3917_v14  ;;  %v1480_v31 = vmul.f32 %v3129_v0, %v1479_v15  ;;  %v1506_v36 = vpack.c.bf16 %v3917_v14, %v3917_v14 }
 0xab9   :  { %1496 = vst.msk [vmem:[#allocation17 + $0x58] sm:$0xff] %vm242_vm1, %v1431_v53  ;;  %v1465_v21 = vmul.f32 %v3131_v5, %v1464_v16  ;;  %v1504_v63 = vpack.c.bf16 %v1431_v53, %v1431_v53 }
 0xaba   :  { %v1481_v22 = vadd.f32 %v3129_v0, %v1480_v31 }
 0xabb   :  { %v1466_v24 = vadd.f32 %v3131_v5, %v1465_v21  ;;  %2884 = vmatmul.msk.bf16.vlgmr.msrb.gmra.mxu3 %vm242_vm1, %v1504_v63 }
 0xabc   :  { %v1485_v26 = vsel %vm1484_vm11, %v3129_v0, %v1481_v22 }
 0xabd   :  { %v1470_v30 = vsel %vm1469_vm12, %v3131_v5, %v1466_v24  ;;  %v1490_v57 = vsel %vm1487_vm13, %v1489_v29, %v1485_v26 }
 0xabe   :  { %v1475_v33 = vsel %vm1472_vm14, %v1474_v25, %v1470_v30  ;;  %v1491_v20 = vmul.f32 %v3880_v4, %v1490_v57 }
 0xabf   :  { %v1476_v34 = vmul.f32 %v3878_v19, %v1475_v33  ;;  %v1502_v19 = vpack.c.bf16 %v3912_v32, %v3912_v32 }
 0xac0   :  { %1500 = vst.msk [vmem:[#allocation17 + $0x78] sm:$0xff] %vm242_vm1, %v1491_v20  ;;  %v1636_v38 = vpop.permute.xlu0 %1635  ;;  %v1508_v49 = vpack.c.bf16 %v1491_v20, %v1491_v20  ;;  %v2965_v20 = vld [vmem:[#allocation8 + $0x18] sm:$0xff] }
 0xac1   :  { %1499 = vst.msk [vmem:[#allocation17 + $0x70] sm:$0xff] %vm242_vm1, %v1476_v34  ;;  %v1641_v41 = vsel %vm643_vm2, %v1636_v38, 0  ;;  %v1507_v44 = vpack.c.bf16 %v1476_v34, %v1476_v34  ;;  %v2964_v34 = vld [vmem:[#allocation8 + $0x10] sm:$0xff] }
 0xac2   :  { %1650 = vmatpush.bf16.msra.mxu2 %v1641_v41 }
 0xac3   :  { %v1350_v43 = vpop.xlane.xlu2 %1349 }
 0xac4   :  { %3132 = vrcp.f32 %v1350_v43  ;;  %v1531_v45 = vpop.permute.xlu1 %1530  ;;  %v1383_v2 = vand.u32 2147483648, %v1350_v43  ;;  %v1381_v37 = vand.u32 2147483647, %v1350_v43  ;;  %vm1377_vm3 = vweird.f32 %v1350_v43 }
 0xac5   :  { %v1536_v48 = vsel %vm643_vm2, %v1531_v45, 0  ;;  %2887 = vmatmul.msk.bf16.vlgmr.msra.gmra.mxu2 %vm242_vm1, %v1507_v44 }
 0xac6   :  { %1545 = vmatpush.bf16.msrb.mxu1 %v1536_v48  ;;  %v1384_v59 = vor.u32 1.1754944e-38, %v1383_v2  ;;  %vm1382_vm5 = vcmp.eq.f32.partialorder %v1381_v37, 8.507059e+37 }
 0xac8   :  { %v1615_v4 = vpop.permute.xlu0 %1614 }
 0xac9   :  { %v1620_v40 = vsel %vm643_vm2, %v1615_v4, 0  ;;  %2882 = vmatmul.msk.bf16.vlgmr.msrb.gmra.mxu1 %vm242_vm1, %v1502_v19 }
 0xaca   :  { %v3133_v9 = vpop.eup %3132  ;;  %1629 = vmatpush.bf16.msra.mxu1 %v1620_v40 }
 0xacb   :  { %v1373_v50 = vmul.f32 %v3133_v9, %v1350_v43  ;;  %2888 = vmatmul.msk.bf16.vlgmr.msra.gmra.mxu3 %vm242_vm1, %v1508_v49  ;;  %vm1378_vm15 = vweird.f32 %v3133_v9 }
 0xacc   :  { %vm1379_vm4 = vmor %vm1377_vm3, %vm1378_vm15 }
 0xacd   :  { %v1374_v51 = vsub.f32 1.0, %v1373_v50 }
 0xacf   :  { %v1375_v56 = vmul.f32 %v3133_v9, %v1374_v51 }
 0xad0   :  { %v1510_v58 = vpop.permute.xlu0 %1509 }
 0xad1   :  { %v1376_v3 = vadd.f32 %v3133_v9, %v1375_v56  ;;  %v1515_v32 = vsel %vm643_vm2, %v1510_v58, 0  ;;  %v3049_v58 = vld [vmem:[%s4206_s4 + $0x1] ss:$0 sm:$0xff] }
 0xad2   :  { %1524 = vmatpush.bf16.msrb.mxu0 %v1515_v32 }
 0xad3   :  { %v1380_v60 = vsel %vm1379_vm4, %v3133_v9, %v1376_v3 }
 0xad4   :  { %v1385_v61 = vsel %vm1382_vm5, %v1384_v59, %v1380_v60 }
 0xad5   :  { %v1386_v62 = vmul.f32 %v3888_v8, %v1385_v61 }
 0xad7   :  { %1493 = vst.msk [vmem:[#allocation17 + $0x40] sm:$0xff] %vm242_vm1, %v1386_v62  ;;  %v1501_v23 = vpack.c.bf16 %v1386_v62, %v1386_v62 }
 0xad8   :  { %v1594_v27 = vpop.permute.xlu0 %1593 }
 0xad9   :  { %v1599_v28 = vsel %vm643_vm2, %v1594_v27, 0  ;;  %2881 = vmatmul.msk.bf16.vlgmr.msrb.gmra.mxu0 %vm242_vm1, %v1501_v23  ;;  %2886 = vmatmul.msk.bf16.vlgmr.msra.gmra.mxu1 %vm242_vm1, %v1506_v36 }
 0xada   :  { %1608 = vmatpush.bf16.msra.mxu0 %v1599_v28 }
 0xade   :  { %1739 = vmatpush.bf16.msrb.mxu0 %v2965_v20 }
 0xae2   :  { %1740 = vmatpush.bf16.msrb.mxu0 %v2964_v34 }
 0xaef   :  { %v1362_v0 = vpop.xlane.xlu1 %1361 }
 0xaf0   :  { %3134 = vrcp.f32 %v1362_v0  ;;  %v1443_v8 = vand.u32 2147483648, %v1362_v0  ;;  %v1441_v6 = vand.u32 2147483647, %v1362_v0  ;;  %vm1437_vm7 = vweird.f32 %v1362_v0 }
 0xaf2   :  { %v1444_v11 = vor.u32 1.1754944e-38, %v1443_v8  ;;  %vm1442_vm11 = vcmp.eq.f32.partialorder %v1441_v6, 8.507059e+37 }
 0xaf6   :  { %v3135_v35 = vpop.eup %3134 }
 0xaf7   :  { %v1433_v1 = vmul.f32 %v3135_v35, %v1362_v0  ;;  %vm1438_vm6 = vweird.f32 %v3135_v35 }
 0xaf8   :  { %vm1439_vm8 = vmor %vm1437_vm7, %vm1438_vm6 }
 0xaf9   :  { %v1434_v5 = vsub.f32 1.0, %v1433_v1 }
 0xafb   :  { %v1435_v39 = vmul.f32 %v3135_v35, %v1434_v5 }
 0xafd   :  { %v1436_v10 = vadd.f32 %v3135_v35, %v1435_v39 }
 0xaff   :  { %v1440_v47 = vsel %vm1439_vm8, %v3135_v35, %v1436_v10 }
 0xb00   :  { %v1445_v13 = vsel %vm1442_vm11, %v1444_v11, %v1440_v47 }
 0xb01   :  { %v1446_v14 = vmul.f32 %v3903_v46, %v1445_v13  ;;  %v2966_v13 = vld [vmem:[#allocation11 + $0x10] sm:$0xff] }
 0xb03   :  { %1497 = vst.msk [vmem:[#allocation17 + $0x60] sm:$0xff] %vm242_vm1, %v1446_v14  ;;  %v1505_v42 = vpack.c.bf16 %v1446_v14, %v1446_v14 }
 0xb05   :  { %2885 = vmatmul.msk.bf16.vlgmr.msra.gmra.mxu0 %vm242_vm1, %v1505_v42 }
 0xb1b   :  { %v1568_v15 = vpop.f32.mrf.mxu2 }
 0xb23   :  { %v1570_v53 = vpop.f32.mrf.mxu2 }
 0xb3e   :  { %v1589_v16 = vpop.f32.mrf.mxu3 }
 0xb46   :  { %v1591_v54 = vpop.f32.mrf.mxu3  ;;  %v1547_v17 = vpop.f32.mrf.mxu1 }
 0xb48   :  { %v1652_v31 = vpop.f32.mrf.mxu2 }
 0xb49   :  { %v3016_v26 = vpack.i.bf16 %v1652_v31, %v1568_v15 }
 0xb4e   :  { %v1673_v18 = vpop.f32.mrf.mxu3  ;;  %v1549_v21 = vpop.f32.mrf.mxu1 }
 0xb4f   :  { %v3021_v30 = vpack.i.bf16 %v1673_v18, %v1589_v16 }
 0xb50   :  { %v1654_v52 = vpop.f32.mrf.mxu2 }
 0xb56   :  { %v1675_v63 = vpop.f32.mrf.mxu3  ;;  %v1526_v22 = vpop.f32.mrf.mxu0 }
 0xb57   :  { %v1631_v24 = vpop.f32.mrf.mxu1 }
 0xb58   :  { %v3011_v29 = vpack.i.bf16 %v1631_v24, %v1547_v17 }
 0xb5a   :  { %3012 = vrot.lane.b32.xlu0 %v3011_v29, %s3445_s23 }
 0xb5e   :  { %v1528_v46 = vpop.f32.mrf.mxu0 }
 0xb5f   :  { %v1633_v25 = vpop.f32.mrf.mxu1  ;;  %v3050_v46 = vld [vmem:[#allocation10 + $0x1] ss:$0 sm:$0xff] }
 0xb62   :  { %3017 = vrot.lane.b32.xlu0 %v3016_v26, %s3447_s14 }
 0xb6a   :  { %3022 = vrot.lane.b32.xlu0 %v3021_v30, %s3456_s26 }
 0xb82   :  { %v1610_v57 = vpop.f32.mrf.mxu0 }
 0xb8a   :  { %v1612_v33 = vpop.f32.mrf.mxu0 }
 0xbcc   :  { %v3013_v38 = vpop.permute.xlu0 %3012 }
 0xbcd   :  { %v3015_v43 = vunpack.i.h.bf16 %v3013_v38  ;;  %v3014_v44 = vunpack.i.l.bf16 %v3013_v38 }
 0xbcf   :  { %v1689_v4 = vsel %vm242_vm1, %v1526_v22, %v3014_v44  ;;  %v1704_v40 = vsel %vm242_vm1, %v1610_v57, %v3015_v43  ;;  %v3051_v57 = vld [vmem:[%s4208_s6 + $0x1] ss:$0 sm:$0xff]  ;;  %v3052_v44 = vld [vmem:[#allocation13 + $0x1] ss:$0 sm:$0xff] }
 0xbd4   :  { %v3018_v41 = vpop.permute.xlu0 %3017 }
 0xbd5   :  { %v3020_v45 = vunpack.i.h.bf16 %v3018_v41  ;;  %v3019_v48 = vunpack.i.l.bf16 %v3018_v41 }
 0xbd7   :  { %v1690_v50 = vsel %vm820_vm9, %v1689_v4, %v3019_v48  ;;  %v1705_v51 = vsel %vm820_vm9, %v1704_v40, %v3020_v45 }
 0xbdc   :  { %v3023_v19 = vpop.permute.xlu0 %3022 }
 0xbdd   :  { %v3025_v49 = vunpack.i.h.bf16 %v3023_v19  ;;  %v3024_v9 = vunpack.i.l.bf16 %v3023_v19 }
 0xbdf   :  { %v1691_v2 = vsel %vm822_vm10, %v1690_v50, %v3024_v9  ;;  %v1706_v56 = vsel %vm822_vm10, %v1705_v51, %v3025_v49 }
 0xbe0   :  { %v1707_v37 = vpack.c.bf16 %v1706_v56, %v1691_v2 }
 0xbe2   :  { %2898 = vmatmul.msk.bf16.vlgmr.msrb.gmra.mxu0 %vm191_vm0, %v1707_v37 }
 0xc5f   :  { %v1742_v3 = vpop.f32.mrf.mxu0 }
 0xc60   :  { %v1743_v32 = vadd.f32 %v3049_v58, %v1742_v3 }
 0xc62   :  { %v1747_v59 = vadd.f32 %v1743_v32, %v3776_v7 }
 0xc64   :  { %v1749_v60 = vsel %vm191_vm0, %v1747_v59, 0.0 }
 0xc65   :  { %1750 = vadd.xlane.f32.xlu2 %v1749_v60 }
 0xc67   :  { %v1744_v61 = vpop.f32.mrf.mxu0 }
 0xc68   :  { %v1745_v62 = vadd.f32 %v3049_v58, %v1744_v61 }
 0xc6a   :  { %v1748_v23 = vadd.f32 %v1745_v62, %v3780_v12  ;;  %v2967_v12 = vld [vmem:[#allocation11 + $0x18] sm:$0xff]  ;;  %v2969_v62 = vld [vmem:[#allocation5 + $0x28] sm:$0xff] }
 0xc6b   :  { %1839 = vmatpush.bf16.msrb.mxu1 %v2967_v12  ;;  %1942 = vmatpush.bf16.msrb.mxu2 %v2969_v62 }
 0xc6c   :  { %v1752_v36 = vsel %vm191_vm0, %v1748_v23, 0.0 }
 0xc6d   :  { %1753 = vadd.xlane.f32.xlu0 %v1752_v36 }
 0xc6f   :  { %1840 = vmatpush.bf16.msrb.mxu1 %v2966_v13 }
 0xcd8   :  { %v1751_v27 = vpop.xlane.xlu2 %1750 }
 0xcd9   :  { %v1755_v28 = vmul.f32 %v1751_v27, %v3753_v55 }
 0xcdb   :  { %v1757_v0 = vsub.f32 %v1747_v59, %v1755_v28  ;;  %v2968_v28 = vld [vmem:[#allocation5 + $0x20] sm:$0xff] }
 0xcdc   :  { %1943 = vmatpush.bf16.msrb.mxu2 %v2968_v28 }
 0xcdd   :  { %v1759_v35 = vmul.f32 %v1757_v0, %v1757_v0 }
 0xcdf   :  { %v1761_v1 = vsel %vm191_vm0, %v1759_v35, 0.0 }
 0xce0   :  { %v1754_v5 = vpop.xlane.xlu0 %1753  ;;  %1762 = vadd.xlane.f32.xlu1 %v1761_v1 }
 0xce1   :  { %v1756_v7 = vmul.f32 %v1754_v5, %v3753_v55 }
 0xce3   :  { %v1758_v8 = vsub.f32 %v1748_v23, %v1756_v7 }
 0xce5   :  { %v1760_v39 = vmul.f32 %v1758_v8, %v1758_v8 }
 0xce7   :  { %v1764_v6 = vsel %vm191_vm0, %v1760_v39, 0.0 }
 0xce8   :  { %1765 = vadd.xlane.f32.xlu2 %v1764_v6 }
 0xd53   :  { %v1763_v10 = vpop.xlane.xlu1 %1762 }
 0xd54   :  { %v1767_v11 = vmul.f32 %v1763_v10, %v3753_v55 }
 0xd56   :  { %v1769_v47 = vadd.f32 1e-05, %v1767_v11 }
 0xd58   :  { %3136 = vrsqrt.f32 %v1769_v47  ;;  %vm1777_vm13 = vweird.f32 %v1769_v47 }
 0xd5b   :  { %v1766_v14 = vpop.xlane.xlu2 %1765 }
 0xd5c   :  { %v1768_v42 = vmul.f32 %v1766_v14, %v3753_v55 }
 0xd5e   :  { %v3137_v15 = vpop.eup %3136  ;;  %v1770_v53 = vadd.f32 1e-05, %v1768_v42  ;;  %v3054_v42 = vld [vmem:[#allocation14 + $0x1] ss:$0 sm:$0xff] }
 0xd5f   :  { %v1772_v16 = vmul.f32 %v3137_v15, %v1769_v47  ;;  %vm1778_vm12 = vweird.f32 %v3137_v15  ;;  %v3053_v47 = vld [vmem:[%s4211_s9 + $0x1] ss:$0 sm:$0xff] }
 0xd60   :  { %3138 = vrsqrt.f32 %v1770_v53  ;;  %vm1779_vm14 = vmor %vm1777_vm13, %vm1778_vm12  ;;  %vm1787_vm3 = vweird.f32 %v1770_v53 }
 0xd61   :  { %v1773_v54 = vmul.f32 %v3137_v15, %v1772_v16 }
 0xd63   :  { %v1774_v17 = vmul.f32 0.5, %v1773_v54 }
 0xd65   :  { %v1775_v31 = vsub.f32 1.5, %v1774_v17 }
 0xd66   :  { %v3139_v18 = vpop.eup %3138 }
 0xd67   :  { %v1776_v21 = vmul.f32 %v3137_v15, %v1775_v31  ;;  %v1782_v52 = vmul.f32 %v3139_v18, %v1770_v53  ;;  %vm1788_vm15 = vweird.f32 %v3139_v18 }
 0xd68   :  { %vm1789_vm4 = vmor %vm1787_vm3, %vm1788_vm15 }
 0xd69   :  { %v1783_v63 = vmul.f32 %v3139_v18, %v1782_v52  ;;  %v1780_v22 = vsel %vm1779_vm14, %v3137_v15, %v1776_v21 }
 0xd6a   :  { %v1791_v25 = vmul.f32 %v1780_v22, %v1757_v0 }
 0xd6b   :  { %v1784_v24 = vmul.f32 0.5, %v1783_v63 }
 0xd6c   :  { %v1798_v33 = vmul.f32 %v3050_v46, %v1791_v25 }
 0xd6d   :  { %v1785_v29 = vsub.f32 1.5, %v1784_v24  ;;  %v3055_v24 = vld [vmem:[#allocation7 + $0x2] ss:$0 sm:$0xff] }
 0xd6e   :  { %v1805_v38 = vadd.f32 %v3051_v57, %v1798_v33 }
 0xd6f   :  { %v1786_v26 = vmul.f32 %v3139_v18, %v1785_v29 }
 0xd71   :  { %v1790_v30 = vsel %vm1789_vm4, %v3139_v18, %v1786_v26 }
 0xd72   :  { %v1792_v20 = vmul.f32 %v1790_v30, %v1758_v8 }
 0xd74   :  { %v1799_v34 = vmul.f32 %v3050_v46, %v1792_v20 }
 0xd76   :  { %v1806_v41 = vadd.f32 %v3051_v57, %v1799_v34 }
 0xd78   :  { %v1807_v43 = vpack.c.bf16 %v1806_v41, %v1805_v38 }
 0xd7a   :  { %2908 = vmatmul.msk.bf16.vlgmr.msrb.gmra.mxu1 %vm191_vm0, %v1807_v43 }
 0xdf7   :  { %v1842_v45 = vpop.f32.mrf.mxu1 }
 0xdf8   :  { %v1843_v48 = vadd.f32 %v3052_v44, %v1842_v45 }
 0xdfa   :  { %v1847_v19 = vadd.f32 %v1843_v48, %v1805_v38 }
 0xdfc   :  { %v1849_v4 = vsel %vm191_vm0, %v1847_v19, 0.0 }
 0xdfd   :  { %1850 = vadd.xlane.f32.xlu1 %v1849_v4 }
 0xdff   :  { %v1844_v40 = vpop.f32.mrf.mxu1 }
 0xe00   :  { %v1845_v49 = vadd.f32 %v3052_v44, %v1844_v40 }
 0xe02   :  { %v1848_v9 = vadd.f32 %v1845_v49, %v1806_v41 }
 0xe04   :  { %v1852_v50 = vsel %vm191_vm0, %v1848_v9, 0.0 }
 0xe05   :  { %1853 = vadd.xlane.f32.xlu2 %v1852_v50 }
 0xe70   :  { %v1851_v51 = vpop.xlane.xlu1 %1850 }
 0xe71   :  { %v1855_v2 = vmul.f32 %v1851_v51, %v3753_v55 }
 0xe73   :  { %v1857_v56 = vsub.f32 %v1847_v19, %v1855_v2 }
 0xe75   :  { %v1859_v37 = vmul.f32 %v1857_v56, %v1857_v56 }
 0xe77   :  { %v1861_v58 = vsel %vm191_vm0, %v1859_v37, 0.0 }
 0xe78   :  { %v1854_v3 = vpop.xlane.xlu2 %1853  ;;  %1862 = vadd.xlane.f32.xlu1 %v1861_v58 }
 0xe79   :  { %v1856_v32 = vmul.f32 %v1854_v3, %v3753_v55 }
 0xe7b   :  { %v1858_v59 = vsub.f32 %v1848_v9, %v1856_v32 }
 0xe7d   :  { %v1860_v60 = vmul.f32 %v1858_v59, %v1858_v59 }
 0xe7f   :  { %v1864_v61 = vsel %vm191_vm0, %v1860_v60, 0.0 }
 0xe80   :  { %1865 = vadd.xlane.f32.xlu2 %v1864_v61 }
 0xeeb   :  { %v1863_v23 = vpop.xlane.xlu1 %1862 }
 0xeec   :  { %v1867_v36 = vmul.f32 %v1863_v23, %v3753_v55 }
 0xeee   :  { %v1869_v27 = vadd.f32 1e-05, %v1867_v36 }
 0xef0   :  { %3140 = vrsqrt.f32 %v1869_v27  ;;  %vm1877_vm6 = vweird.f32 %v1869_v27 }
 0xef3   :  { %v1866_v0 = vpop.xlane.xlu2 %1865 }
 0xef4   :  { %v1868_v35 = vmul.f32 %v1866_v0, %v3753_v55 }
 0xef6   :  { %v3141_v1 = vpop.eup %3140  ;;  %v1870_v5 = vadd.f32 1e-05, %v1868_v35 }
 0xef7   :  { %v1872_v7 = vmul.f32 %v3141_v1, %v1869_v27  ;;  %vm1878_vm5 = vweird.f32 %v3141_v1 }
 0xef8   :  { %3142 = vrsqrt.f32 %v1870_v5  ;;  %vm1879_vm7 = vmor %vm1877_vm6, %vm1878_vm5  ;;  %vm1887_vm11 = vweird.f32 %v1870_v5 }
 0xef9   :  { %v1873_v8 = vmul.f32 %v3141_v1, %v1872_v7 }
 0xefb   :  { %v1874_v39 = vmul.f32 0.5, %v1873_v8 }
 0xefd   :  { %v1875_v6 = vsub.f32 1.5, %v1874_v39 }
 0xefe   :  { %v3143_v12 = vpop.eup %3142 }
 0xeff   :  { %v1876_v10 = vmul.f32 %v3141_v1, %v1875_v6  ;;  %v1882_v11 = vmul.f32 %v3143_v12, %v1870_v5  ;;  %vm1888_vm8 = vweird.f32 %v3143_v12 }
 0xf00   :  { %vm1889_vm12 = vmor %vm1887_vm11, %vm1888_vm8 }
 0xf01   :  { %v1880_v13 = vsel %vm1879_vm7, %v3141_v1, %v1876_v10  ;;  %v1883_v14 = vmul.f32 %v3143_v12, %v1882_v11 }
 0xf02   :  { %v1891_v15 = vmul.f32 %v1880_v13, %v1857_v56 }
 0xf03   :  { %v1884_v53 = vmul.f32 0.5, %v1883_v14 }
 0xf04   :  { %v1898_v16 = vmul.f32 %v3053_v47, %v1891_v15 }
 0xf05   :  { %v1885_v54 = vsub.f32 1.5, %v1884_v53 }
 0xf06   :  { %v3985_v17 = vadd.f32 %v3054_v42, %v1898_v16 }
 0xf07   :  { %v1886_v31 = vmul.f32 %v3143_v12, %v1885_v54 }
 0xf08   :  { %1908 = vst.msk [vmem:[#allocation16 + $0x10] sm:$0xff] %vm191_vm0, %v3985_v17 }
 0xf09   :  { %v1890_v18 = vsel %vm1889_vm12, %v3143_v12, %v1886_v31 }
 0xf0a   :  { %v1892_v21 = vmul.f32 %v1890_v18, %v1858_v59 }
 0xf0c   :  { %v1899_v52 = vmul.f32 %v3053_v47, %v1892_v21 }
 0xf0e   :  { %v3989_v63 = vadd.f32 %v3054_v42, %v1899_v52 }
 0xf10   :  { %1909 = vst.msk [vmem:[#allocation16 + $0x18] sm:$0xff] %vm191_vm0, %v3989_v63  ;;  %v1910_v22 = vpack.c.bf16 %v3989_v63, %v3985_v17 }
 0xf12   :  { %2918 = vmatmul.msk.bf16.vlgmr.msrb.gmra.mxu2 %vm191_vm0, %v1910_v22 }
 0xf95   :  { %v1945_v29 = vpop.f32.mrf.mxu2 }
 0xf96   :  { %v1946_v46 = vadd.f32 %v3055_v24, %v1945_v29 }
 0xf98   :  { %1954 = vrot.lane.b32.xlu0 %v1946_v46, %s3454_s25  ;;  %1951 = vrot.lane.b32.xlu2 %v1946_v46, %s3453_s10  ;;  %v1970_v32 = vpack.c.bf16 %v1946_v46, %v1946_v46 }
 0xf99   :  { %1957 = vrot.lane.b32.xlu1 %v1946_v46, %s3452_s8 }
 0xf9a   :  { %v1979_v61 = vunpack.c.l.b16 %v1970_v32 }
 0xf9c   :  { %v4028_v36 = vpack.c.b16 %v1979_v61, %v1979_v61 }
 0xf9d   :  { %v1947_v25 = vpop.f32.mrf.mxu2 }
 0xf9e   :  { %v1948_v26 = vadd.f32 %v3055_v24, %v1947_v25 }
 0xfa0   :  { %1961 = vrot.lane.b32.xlu2 %v1948_v26, %s3453_s10  ;;  %v1974_v44 = vpack.c.bf16 %v1948_v26, %v1948_v26  ;;  %s3459_s10 = smov [#allocation16]  }
 0xfa1   :  { %1967 = vrot.lane.b32.xlu1 %v1948_v26, %s3452_s8 }
 0xfa2   :  { %v2075_v45 = vunpack.c.l.b16 %v1974_v44 }
 0xfa4   :  { %v4010_v48 = vpack.c.b16 %v2075_v45, %v2075_v45 }
 0xfa9   :  { %1964 = vrot.lane.b32.xlu1 %v1948_v26, %s3454_s25  ;;  %s2784_s25 = sshll.u32 %s3459_s10, 4  ;;  %s2785_s25 = int_to_ptr.vmem [resolvable:$true] %s2784_s25 }
 0xff2   :  { %v1952_v30 = vpop.permute.xlu2 %1951 }
 0xff3   :  { %v1971_v57 = vpack.c.bf16 %v1952_v30, %v1952_v30 }
 0xff5   :  { %v2003_v33 = vunpack.c.l.b16 %v1971_v57 }
 0xff7   :  { %v4002_v20 = vpack.c.b16 %v2003_v33, %v2003_v33 }
 0xff9   :  { %2005 = vrot.lane.b32.xlu0 %v4002_v20, %s3455_s0 }
 0xffa   :  { %v1962_v34 = vpop.permute.xlu2 %1961 }
 0xffb   :  { %v1975_v38 = vpack.c.bf16 %v1962_v34, %v1962_v34 }
 0xffd   :  { %v2099_v41 = vunpack.c.l.b16 %v1975_v38 }
 0xfff   :  { %v4006_v43 = vpack.c.b16 %v2099_v41, %v2099_v41 }
0x1001   :  { %2101 = vrot.lane.b32.xlu0 %v4006_v43, %s3455_s0 }
0x1009   :  { %2077 = vrot.lane.b32.xlu0 %v4010_v48, %s3455_s0 }
0x100a   :  { %v1955_v19 = vpop.permute.xlu0 %1954 }
0x100b   :  { %v1972_v4 = vpack.c.bf16 %v1955_v19, %v1955_v19  ;;  %v1958_v40 = vpop.permute.xlu1 %1957 }
0x100c   :  { %v1973_v49 = vpack.c.bf16 %v1958_v40, %v1958_v40 }
0x100d   :  { %v2027_v9 = vunpack.c.l.b16 %v1972_v4 }
0x100e   :  { %v2051_v50 = vunpack.c.l.b16 %v1973_v49 }
0x100f   :  { %v4014_v51 = vpack.c.b16 %v2027_v9, %v2027_v9 }
0x1010   :  { %v4016_v2 = vpack.c.b16 %v2051_v50, %v2051_v50 }
0x1011   :  { %2029 = vrot.lane.b32.xlu1 %v4014_v51, %s3455_s0 }
0x1012   :  { %2053 = vrot.lane.b32.xlu2 %v4016_v2, %s3455_s0 }
0x1013   :  { %v1968_v56 = vpop.permute.xlu1 %1967 }
0x1014   :  { %v1977_v37 = vpack.c.bf16 %v1968_v56, %v1968_v56 }
0x1016   :  { %v2147_v58 = vunpack.c.l.b16 %v1977_v37 }
0x1018   :  { %v4022_v3 = vpack.c.b16 %v2147_v58, %v2147_v58 }
0x101a   :  { %2149 = vrot.lane.b32.xlu2 %v4022_v3, %s3455_s0 }
0x101b   :  { %v1965_v59 = vpop.permute.xlu1 %1964 }
0x101c   :  { %v1976_v60 = vpack.c.bf16 %v1965_v59, %v1965_v59 }
0x101e   :  { %v2123_v62 = vunpack.c.l.b16 %v1976_v60 }
0x1020   :  { %v4026_v23 = vpack.c.b16 %v2123_v62, %v2123_v62 }
0x1022   :  { %2125 = vrot.lane.b32.xlu1 %v4026_v23, %s3455_s0  ;;  %1981 = vrot.lane.b32.xlu2 %v4028_v36, %s3455_s0 }
0x106b   :  { %v2006_v27 = vpop.permute.xlu0 %2005 }
0x106c   :  { %v2011_v28 = vsel %vm242_vm1, %v2006_v27, 0  ;;  %v2054_v0 = vpop.permute.xlu2 %2053 }
0x106d   :  { %v2059_v35 = vsel %vm242_vm1, %v2054_v0, 0  ;;  %2020 = vmatpush.bf16.xpose.msra.mxu0 %v2011_v28 }
0x106e   :  { %2068 = vmatpush.bf16.xpose.msra.mxu2 %v2059_v35 }
0x1073   :  { %v2102_v1 = vpop.permute.xlu0 %2101 }
0x1074   :  { %v2107_v5 = vsel %vm242_vm1, %v2102_v1, 0  ;;  %v2150_v7 = vpop.permute.xlu2 %2149  ;;  %2920 = vmatmul.msk.bf16.vlgmr.msra.gmra.mxu0 %vm242_vm1, %v1971_v57 }
0x1075   :  { %v2155_v8 = vsel %vm242_vm1, %v2150_v7, 0  ;;  %2922 = vmatmul.msk.bf16.vlgmr.msra.gmra.mxu2 %vm242_vm1, %v1973_v49  ;;  %2116 = vmatpush.bf16.xpose.msrb.mxu0 %v2107_v5 }
0x1076   :  { %2164 = vmatpush.bf16.xpose.msrb.mxu2 %v2155_v8 }
0x107b   :  { %v2078_v39 = vpop.permute.xlu0 %2077 }
0x107c   :  { %v2083_v6 = vsel %vm242_vm1, %v2078_v39, 0  ;;  %v1982_v12 = vpop.permute.xlu2 %1981 }
0x107d   :  { %v1987_v10 = vsel %vm242_vm1, %v1982_v12, 0 }
0x107e   :  { %1996 = vmatpush.bf16.xpose.msrb.mxu3 %v1987_v10 }
0x1083   :  { %v2030_v11 = vpop.permute.xlu1 %2029 }
0x1084   :  { %v2035_v47 = vsel %vm242_vm1, %v2030_v11, 0  ;;  %2924 = vmatmul.msk.bf16.vlgmr.msrb.gmra.mxu0 %vm242_vm1, %v1975_v38 }
0x1085   :  { %2919 = vmatmul.msk.bf16.vlgmr.msrb.gmra.mxu3 %vm242_vm1, %v1970_v32  ;;  %2926 = vmatmul.msk.bf16.vlgmr.msrb.gmra.mxu2 %vm242_vm1, %v1977_v37 }
0x1086   :  { %2092 = vmatpush.bf16.xpose.msra.mxu3 %v2083_v6  ;;  %2044 = vmatpush.bf16.xpose.msra.mxu1 %v2035_v47 }
0x108d   :  { %2921 = vmatmul.msk.bf16.vlgmr.msra.gmra.mxu1 %vm242_vm1, %v1972_v4 }
0x1094   :  { %v2126_v13 = vpop.permute.xlu1 %2125 }
0x1095   :  { %v2131_v14 = vsel %vm242_vm1, %v2126_v13, 0  ;;  %2923 = vmatmul.msk.bf16.vlgmr.msra.gmra.mxu3 %vm242_vm1, %v1974_v44 }
0x1096   :  { %2140 = vmatpush.bf16.xpose.msrb.mxu1 %v2131_v14 }
0x109d   :  { %2925 = vmatmul.msk.bf16.vlgmr.msrb.gmra.mxu1 %vm242_vm1, %v1976_v60 }
0x10f1   :  { %v2022_v42 = vpop.f32.mrf.mxu0 }
0x10f2   :  { %v2173_v26 = vsel %vm242_vm1, %v2022_v42, -inf }
0x10f8   :  { %v2070_v15 = vpop.f32.mrf.mxu2 }
0x10f9   :  { %v2024_v53 = vpop.f32.mrf.mxu0  ;;  %v2179_v16 = vsel %vm242_vm1, %v2070_v15, -inf }
0x10fa   :  { %2180 = vmax.xlane.f32.xlu1 %v2179_v16 }
0x1100   :  { %v2072_v54 = vpop.f32.mrf.mxu2 }
0x1101   :  { %v2118_v31 = vpop.f32.mrf.mxu0 }
0x1102   :  { %v2185_v18 = vsel %vm242_vm1, %v2118_v31, -inf }
0x1103   :  { %2186 = vmax.xlane.f32.xlu1 %v2185_v18 }
0x1108   :  { %v4052_v21 = vpop.f32.mrf.mxu3  ;;  %v4054_v52 = vpop.f32.mrf.mxu2 }
0x1109   :  { %v2120_v22 = vpop.f32.mrf.mxu0  ;;  %v2170_v24 = vsel %vm242_vm1, %v4052_v21, -inf  ;;  %v2191_v19 = vsel %vm242_vm1, %v4054_v52, -inf }
0x110a   :  { %v2046_v29 = vpop.f32.mrf.mxu1  ;;  %2171 = vmax.xlane.f32.xlu2 %v2170_v24 }
0x110b   :  { %v2176_v41 = vsel %vm242_vm1, %v2046_v29, -inf }
0x1110   :  { %v2000_v46 = vpop.f32.mrf.mxu3  ;;  %v2168_v25 = vpop.f32.mrf.mxu2 }
0x1112   :  { %v2048_v30 = vpop.f32.mrf.mxu1  ;;  %2174 = vmax.xlane.f32.xlu2 %v2173_v26 }
0x1118   :  { %v4059_v57 = vpop.f32.mrf.mxu3 }
0x1119   :  { %v2182_v33 = vsel %vm242_vm1, %v4059_v57, -inf }
0x111a   :  { %v2142_v34 = vpop.f32.mrf.mxu1  ;;  %2183 = vmax.xlane.f32.xlu0 %v2182_v33 }
0x111b   :  { %v2188_v45 = vsel %vm242_vm1, %v2142_v34, -inf }
0x111c   :  { %2400 = vrot.lane.b32.xlu1 %v4002_v20, %s3439_s29 }
0x1120   :  { %v2096_v38 = vpop.f32.mrf.mxu3 }
0x1122   :  { %v2144_v44 = vpop.f32.mrf.mxu1  ;;  %2177 = vmax.xlane.f32.xlu0 %v2176_v41 }
0x112a   :  { %2442 = vrot.lane.b32.xlu2 %v4016_v2, %s3439_s29  ;;  %2189 = vmax.xlane.f32.xlu0 %v2188_v45 }
0x113e   :  { %2421 = vrot.lane.b32.xlu0 %v4014_v51, %s3439_s29 }
0x1153   :  { %2192 = vmax.xlane.f32.xlu2 %v2191_v19 }
0x116d   :  { %v2181_v20 = vpop.xlane.xlu1 %2180 }
0x116e   :  { %v2197_v62 = vsub.f32 %v2070_v15, %v2181_v20 }
0x1170   :  { %v2208_v28 = vmul.f32 1.442695, %v2197_v62 }
0x1176   :  { %v2187_v49 = vpop.xlane.xlu1 %2186 }
0x1177   :  { %v2199_v5 = vsub.f32 %v2118_v31, %v2187_v49 }
0x1179   :  { %v2212_v39 = vmul.f32 1.442695, %v2199_v5 }
0x117d   :  { %v2172_v4 = vpop.xlane.xlu2 %2171 }
0x117e   :  { %v2194_v15 = vsub.f32 %v4052_v21, %v2172_v4 }
0x1180   :  { %v2202_v53 = vmul.f32 1.442695, %v2194_v15 }
0x1185   :  { %v2175_v40 = vpop.xlane.xlu2 %2174 }
0x1186   :  { %v2195_v9 = vsub.f32 %v2022_v42, %v2175_v40 }
0x1188   :  { %v2204_v50 = vmul.f32 1.442695, %v2195_v9 }
0x118a   :  { %3144 = vpow2.f32 %v2204_v50 }
0x118d   :  { %v2443_v56 = vpop.permute.xlu2 %2442  ;;  %v2184_v37 = vpop.xlane.xlu0 %2183 }
0x118e   :  { %v2448_v58 = vsel %vm643_vm2, %v2443_v56, 0  ;;  %v2401_v2 = vpop.permute.xlu1 %2400 }
0x118f   :  { %v2406_v32 = vsel %vm643_vm2, %v2401_v2, 0  ;;  %2457 = vmatpush.bf16.msra.mxu2 %v2448_v58 }
0x1190   :  { %v4075_v51 = vpop.eup %3144  ;;  %2415 = vmatpush.bf16.msra.mxu0 %v2406_v32 }
0x1191   :  { %v2221_v59 = vsel %vm242_vm1, %v4075_v51, 0.0 }
0x1192   :  { %2222 = vadd.xlane.f32.xlu2 %v2221_v59 }
0x1195   :  { %v2178_v60 = vpop.xlane.xlu0 %2177 }
0x1196   :  { %v2196_v61 = vsub.f32 %v2046_v29, %v2178_v60 }
0x1198   :  { %v2206_v27 = vmul.f32 1.442695, %v2196_v61 }
0x119a   :  { %3146 = vpow2.f32 %v2206_v27 }
0x119b   :  { %3148 = vpow2.f32 %v2208_v28 }
0x119d   :  { %v2190_v0 = vpop.xlane.xlu0 %2189 }
0x119e   :  { %v2200_v35 = vsub.f32 %v2142_v34, %v2190_v0 }
0x11a0   :  { %v4079_v1 = vpop.eup %3146  ;;  %v2214_v7 = vmul.f32 1.442695, %v2200_v35 }
0x11a1   :  { %v2224_v8 = vsel %vm242_vm1, %v4079_v1, 0.0  ;;  %v4083_v6 = vpop.eup %3148 }
0x11a2   :  { %3150 = vpow2.f32 %v2214_v7  ;;  %2225 = vadd.xlane.f32.xlu1 %v2224_v8  ;;  %v2227_v10 = vsel %vm242_vm1, %v4083_v6, 0.0 }
0x11a3   :  { %3152 = vpow2.f32 %v2212_v39 }
0x11a4   :  { %3154 = vpow2.f32 %v2202_v53 }
0x11a8   :  { %v4085_v12 = vpop.eup %3150 }
0x11a9   :  { %v2236_v11 = vsel %vm242_vm1, %v4085_v12, 0.0  ;;  %v4093_v47 = vpop.eup %3152 }
0x11aa   :  { %2526 = vrot.lane.b32.xlu2 %v4022_v3, %s3439_s29  ;;  %2228 = vadd.xlane.f32.xlu1 %v2227_v10  ;;  %v2233_v42 = vsel %vm242_vm1, %v4093_v47, 0.0  ;;  %v4102_v31 = vpop.eup %3154 }
0x11ab   :  { %2237 = vadd.xlane.f32.xlu0 %v2236_v11  ;;  %v2218_v22 = vsel %vm242_vm1, %v4102_v31, 0.0 }
0x11b0   :  { %v2422_v13 = vpop.permute.xlu0 %2421 }
0x11b1   :  { %v2427_v14 = vsel %vm643_vm2, %v2422_v13, 0 }
0x11b2   :  { %2234 = vadd.xlane.f32.xlu1 %v2233_v42  ;;  %2436 = vmatpush.bf16.msra.mxu1 %v2427_v14 }
0x11c6   :  { %v2193_v16 = vpop.xlane.xlu2 %2192 }
0x11c7   :  { %v2201_v54 = vsub.f32 %v4054_v52, %v2193_v16 }
0x11c9   :  { %v2216_v3 = vmul.f32 1.442695, %v2201_v54 }
0x11cb   :  { %3156 = vpow2.f32 %v2216_v3  ;;  %2505 = vrot.lane.b32.xlu1 %v4026_v23, %s3439_s29  ;;  %v2198_v23 = vsub.f32 %v4059_v57, %v2184_v37 }
0x11cd   :  { %v2210_v52 = vmul.f32 1.442695, %v2198_v23 }
0x11d1   :  { %v4104_v18 = vpop.eup %3156 }
0x11d2   :  { %v2239_v21 = vsel %vm242_vm1, %v4104_v18, 0.0 }
0x11d3   :  { %2219 = vadd.xlane.f32.xlu2 %v2218_v22  ;;  %2379 = vrot.lane.b32.xlu1 %v4028_v36, %s3439_s29 }
0x11d4   :  { %2240 = vadd.xlane.f32.xlu0 %v2239_v21 }
0x11db   :  { %2463 = vrot.lane.b32.xlu1 %v4010_v48, %s3439_s29 }
0x11e8   :  { %2484 = vrot.lane.b32.xlu0 %v4006_v43, %s3439_s29 }
0x1205   :  { %v2223_v24 = vpop.xlane.xlu2 %2222 }
0x1206   :  { %3158 = vrcp.f32 %v2223_v24  ;;  %v2268_v33 = vand.u32 2147483648, %v2223_v24  ;;  %v2266_v34 = vand.u32 2147483647, %v2223_v24  ;;  %vm2262_vm14 = vweird.f32 %v2223_v24 }
0x1207   :  { %3160 = vpow2.f32 %v2210_v52 }
0x1208   :  { %v2269_v38 = vor.u32 1.1754944e-38, %v2268_v33  ;;  %vm2267_vm3 = vcmp.eq.f32.partialorder %v2266_v34, 8.507059e+37 }
0x120c   :  { %v3159_v29 = vpop.eup %3158 }
0x120d   :  { %v2258_v46 = vmul.f32 %v3159_v29, %v2223_v24  ;;  %v2527_v25 = vpop.permute.xlu2 %2526  ;;  %v4117_v26 = vpop.eup %3160  ;;  %vm2263_vm13 = vweird.f32 %v3159_v29 }
0x120e   :  { %v2532_v36 = vsel %vm643_vm2, %v2527_v25, 0  ;;  %v2230_v43 = vsel %vm242_vm1, %v4117_v26, 0.0  ;;  %vm2264_vm15 = vmor %vm2262_vm14, %vm2263_vm13 }
0x120f   :  { %v2259_v30 = vsub.f32 1.0, %v2258_v46  ;;  %2541 = vmatpush.bf16.msrb.mxu2 %v2532_v36 }
0x1211   :  { %v2260_v48 = vmul.f32 %v3159_v29, %v2259_v30 }
0x1212   :  { %2231 = vadd.xlane.f32.xlu0 %v2230_v43 }
0x1213   :  { %v2261_v57 = vadd.f32 %v3159_v29, %v2260_v48 }
0x1215   :  { %v2265_v41 = vsel %vm2264_vm15, %v3159_v29, %v2261_v57  ;;  %v2226_v44 = vpop.xlane.xlu1 %2225 }
0x1216   :  { %v2270_v45 = vsel %vm2267_vm3, %v2269_v38, %v2265_v41  ;;  %3162 = vrcp.f32 %v2226_v44  ;;  %v2283_v56 = vand.u32 2147483648, %v2226_v44  ;;  %v2281_v58 = vand.u32 2147483647, %v2226_v44 }
0x1217   :  { %v2271_v19 = vmul.f32 %v4075_v51, %v2270_v45  ;;  %vm2277_vm5 = vweird.f32 %v2226_v44 }
0x1218   :  { %v2284_v51 = vor.u32 1.1754944e-38, %v2283_v56  ;;  %vm2282_vm7 = vcmp.eq.f32.partialorder %v2281_v58, 8.507059e+37 }
0x1219   :  { %2364 = vst.msk [vmem:[#allocation17 + $0x88] sm:$0xff] %vm242_vm1, %v2271_v19  ;;  %v2372_v4 = vpack.c.bf16 %v2271_v19, %v2271_v19 }
0x121b   :  { %2928 = vmatmul.msk.bf16.vlgmr.msra.gmra.mxu0 %vm242_vm1, %v2372_v4 }
0x121c   :  { %v3163_v20 = vpop.eup %3162 }
0x121d   :  { %v2273_v40 = vmul.f32 %v3163_v20, %v2226_v44  ;;  %v2229_v49 = vpop.xlane.xlu1 %2228  ;;  %vm2278_vm4 = vweird.f32 %v3163_v20 }
0x121e   :  { %3164 = vrcp.f32 %v2229_v49  ;;  %v2238_v9 = vpop.xlane.xlu0 %2237  ;;  %vm2279_vm6 = vmor %vm2277_vm5, %vm2278_vm4  ;;  %v2296_v5 = vand.u32 2147483647, %v2229_v49  ;;  %v2298_v7 = vand.u32 2147483648, %v2229_v49  ;;  %vm2292_vm12 = vweird.f32 %v2229_v49 }
0x121f   :  { %v2274_v50 = vsub.f32 1.0, %v2273_v40  ;;  %3166 = vrcp.f32 %v2238_v9  ;;  %v2343_v11 = vand.u32 2147483648, %v2238_v9  ;;  %v2341_v14 = vand.u32 2147483647, %v2238_v9 }
0x1220   :  { %vm2337_vm14 = vweird.f32 %v2238_v9  ;;  %vm2297_vm15 = vcmp.eq.f32.partialorder %v2296_v5, 8.507059e+37 }
0x1221   :  { %v2275_v37 = vmul.f32 %v3163_v20, %v2274_v50  ;;  %v2344_v54 = vor.u32 1.1754944e-38, %v2343_v11  ;;  %vm2342_vm4 = vcmp.eq.f32.partialorder %v2341_v14, 8.507059e+37 }
0x1223   :  { %v2276_v2 = vadd.f32 %v3163_v20, %v2275_v37 }
0x1224   :  { %v3165_v32 = vpop.eup %3164 }
0x1225   :  { %v3167_v59 = vpop.eup %3166  ;;  %v2280_v60 = vsel %vm2279_vm6, %v3163_v20, %v2276_v2  ;;  %v2288_v61 = vmul.f32 %v3165_v32, %v2229_v49  ;;  %v2235_v62 = vpop.xlane.xlu1 %2234  ;;  %vm2293_vm8 = vweird.f32 %v3165_v32 }
0x1226   :  { %v2285_v27 = vsel %vm2282_vm7, %v2284_v51, %v2280_v60  ;;  %v2333_v28 = vmul.f32 %v3167_v59, %v2238_v9  ;;  %3168 = vrcp.f32 %v2235_v62  ;;  %vm2338_vm11 = vweird.f32 %v3167_v59  ;;  %vm2294_vm13 = vmor %vm2292_vm12, %vm2293_vm8 }
0x1227   :  { %v2286_v0 = vmul.f32 %v4079_v1, %v2285_v27  ;;  %v2289_v35 = vsub.f32 1.0, %v2288_v61  ;;  %v2299_v1 = vor.u32 1.1754944e-38, %v2298_v7  ;;  %vm2339_vm3 = vmor %vm2337_vm14, %vm2338_vm11  ;;  %v2328_v46 = vand.u32 2147483648, %v2235_v62 }
0x1228   :  { %v2334_v8 = vsub.f32 1.0, %v2333_v28  ;;  %v2326_v30 = vand.u32 2147483647, %v2235_v62  ;;  %vm2322_vm6 = vweird.f32 %v2235_v62 }
0x1229   :  { %2365 = vst.msk [vmem:[#allocation17 + $0x90] sm:$0xff] %vm242_vm1, %v2286_v0  ;;  %v2373_v39 = vpack.c.bf16 %v2286_v0, %v2286_v0  ;;  %v2290_v10 = vmul.f32 %v3165_v32, %v2289_v35  ;;  %v2329_v48 = vor.u32 1.1754944e-38, %v2328_v46 }
0x122a   :  { %v2335_v13 = vmul.f32 %v3167_v59, %v2334_v8  ;;  %vm2327_vm8 = vcmp.eq.f32.partialorder %v2326_v30, 8.507059e+37 }
0x122b   :  { %v2291_v42 = vadd.f32 %v3165_v32, %v2290_v10  ;;  %2929 = vmatmul.msk.bf16.vlgmr.msra.gmra.mxu1 %vm242_vm1, %v2373_v39 }
0x122c   :  { %v3169_v15 = vpop.eup %3168  ;;  %v2336_v53 = vadd.f32 %v3167_v59, %v2335_v13 }
0x122d   :  { %v2295_v16 = vsel %vm2294_vm13, %v3165_v32, %v2291_v42  ;;  %v2318_v3 = vmul.f32 %v3169_v15, %v2235_v62  ;;  %vm2323_vm5 = vweird.f32 %v3169_v15 }
0x122e   :  { %v2300_v22 = vsel %vm2297_vm15, %v2299_v1, %v2295_v16  ;;  %v2340_v21 = vsel %vm2339_vm3, %v3167_v59, %v2336_v53  ;;  %vm2324_vm7 = vmor %vm2322_vm6, %vm2323_vm5 }
0x122f   :  { %v2301_v23 = vmul.f32 %v4083_v6, %v2300_v22  ;;  %v2345_v52 = vsel %vm2342_vm4, %v2344_v54, %v2340_v21  ;;  %v2319_v24 = vsub.f32 1.0, %v2318_v3 }
0x1230   :  { %v2346_v29 = vmul.f32 %v4085_v12, %v2345_v52 }
0x1231   :  { %2366 = vst.msk [vmem:[#allocation17 + $0x98] sm:$0xff] %vm242_vm1, %v2301_v23  ;;  %v2374_v25 = vpack.c.bf16 %v2301_v23, %v2301_v23  ;;  %v2320_v36 = vmul.f32 %v3169_v15, %v2319_v24 }
0x1232   :  { %2369 = vst.msk [vmem:[#allocation17 + $0xb0] sm:$0xff] %vm242_vm1, %v2346_v29  ;;  %v2377_v38 = vpack.c.bf16 %v2346_v29, %v2346_v29 }
0x1233   :  { %v2321_v33 = vadd.f32 %v3169_v15, %v2320_v36  ;;  %2930 = vmatmul.msk.bf16.vlgmr.msra.gmra.mxu2 %vm242_vm1, %v2374_v25 }
0x1235   :  { %v2325_v6 = vsel %vm2324_vm7, %v3169_v15, %v2321_v33 }
0x1236   :  { %v2330_v34 = vsel %vm2327_vm8, %v2329_v48, %v2325_v6 }
0x1237   :  { %v2331_v12 = vmul.f32 %v4093_v47, %v2330_v34 }
0x1239   :  { %2368 = vst.msk [vmem:[#allocation17 + $0xa8] sm:$0xff] %vm242_vm1, %v2331_v12  ;;  %v2376_v14 = vpack.c.bf16 %v2331_v12, %v2331_v12 }
0x123d   :  { %v2506_v43 = vpop.permute.xlu1 %2505 }
0x123e   :  { %v2511_v57 = vsel %vm643_vm2, %v2506_v43, 0 }
0x123f   :  { %2520 = vmatpush.bf16.msrb.mxu1 %v2511_v57 }
0x1242   :  { %2933 = vmatmul.msk.bf16.vlgmr.msrb.gmra.mxu1 %vm242_vm1, %v2377_v38 }
0x1245   :  { %v2380_v41 = vpop.permute.xlu1 %2379 }
0x1246   :  { %v2385_v44 = vsel %vm643_vm2, %v2380_v41, 0  ;;  %v2220_v45 = vpop.xlane.xlu2 %2219 }
0x1247   :  { %3170 = vrcp.f32 %v2220_v45  ;;  %v2241_v19 = vpop.xlane.xlu0 %2240  ;;  %2394 = vmatpush.bf16.msrb.mxu3 %v2385_v44  ;;  %v2253_v56 = vand.u32 2147483648, %v2220_v45  ;;  %v2251_v2 = vand.u32 2147483647, %v2220_v45  ;;  %vm2247_vm13 = vweird.f32 %v2220_v45 }
0x1248   :  { %3172 = vrcp.f32 %v2241_v19  ;;  %v2358_v32 = vand.u32 2147483648, %v2241_v19  ;;  %v2356_v59 = vand.u32 2147483647, %v2241_v19  ;;  %vm2352_vm15 = vweird.f32 %v2241_v19 }
0x1249   :  { %v2254_v61 = vor.u32 1.1754944e-38, %v2253_v56  ;;  %vm2252_vm3 = vcmp.eq.f32.partialorder %v2251_v2, 8.507059e+37 }
0x124a   :  { %v2359_v28 = vor.u32 1.1754944e-38, %v2358_v32  ;;  %vm2357_vm5 = vcmp.eq.f32.partialorder %v2356_v59, 8.507059e+37 }
0x124d   :  { %v3171_v4 = vpop.eup %3170  ;;  %v2464_v20 = vpop.permute.xlu1 %2463 }
0x124e   :  { %v3173_v47 = vpop.eup %3172  ;;  %v2243_v40 = vmul.f32 %v3171_v4, %v2220_v45  ;;  %v2469_v49 = vsel %vm643_vm2, %v2464_v20, 0  ;;  %vm2248_vm11 = vweird.f32 %v3171_v4  ;;  %v2970_v20 = vld [vmem:[#allocation8 + $0x20] sm:$0xff] }
0x124f   :  { %v2348_v9 = vmul.f32 %v3173_v47, %v2241_v19  ;;  %2478 = vmatpush.bf16.msra.mxu3 %v2469_v49  ;;  %vm2353_vm12 = vweird.f32 %v3173_v47  ;;  %vm2249_vm14 = vmor %vm2247_vm13, %vm2248_vm11 }
0x1250   :  { %v2244_v50 = vsub.f32 1.0, %v2243_v40  ;;  %vm2354_vm4 = vmor %vm2352_vm15, %vm2353_vm12 }
0x1251   :  { %v2349_v37 = vsub.f32 1.0, %v2348_v9 }
0x1252   :  { %v2245_v58 = vmul.f32 %v3171_v4, %v2244_v50 }
0x1253   :  { %v2350_v51 = vmul.f32 %v3173_v47, %v2349_v37 }
0x1254   :  { %v2246_v60 = vadd.f32 %v3171_v4, %v2245_v58 }
0x1255   :  { %v2351_v62 = vadd.f32 %v3173_v47, %v2350_v51 }
0x1256   :  { %v2250_v27 = vsel %vm2249_vm14, %v3171_v4, %v2246_v60  ;;  %v2971_v4 = vld [vmem:[#allocation8 + $0x28] sm:$0xff] }
0x1257   :  { %v2255_v0 = vsel %vm2252_vm3, %v2254_v61, %v2250_v27  ;;  %v2355_v35 = vsel %vm2354_vm4, %v3173_v47, %v2351_v62 }
0x1258   :  { %v2256_v5 = vmul.f32 %v4102_v31, %v2255_v0  ;;  %v2360_v7 = vsel %vm2357_vm5, %v2359_v28, %v2355_v35  ;;  %v3056_v28 = vld [vmem:[%s4206_s4 + $0x2] ss:$0 sm:$0xff] }
0x1259   :  { %v2361_v8 = vmul.f32 %v4104_v18, %v2360_v7 }
0x125a   :  { %2363 = vst.msk [vmem:[#allocation17 + $0x80] sm:$0xff] %vm242_vm1, %v2256_v5  ;;  %v2485_v39 = vpop.permute.xlu0 %2484  ;;  %v2371_v10 = vpack.c.bf16 %v2256_v5, %v2256_v5 }
0x125b   :  { %2370 = vst.msk [vmem:[#allocation17 + $0xb8] sm:$0xff] %vm242_vm1, %v2361_v8  ;;  %v2378_v11 = vpack.c.bf16 %v2361_v8, %v2361_v8  ;;  %v2490_v13 = vsel %vm643_vm2, %v2485_v39, 0 }
0x125c   :  { %2499 = vmatpush.bf16.msrb.mxu0 %v2490_v13  ;;  %2927 = vmatmul.msk.bf16.vlgmr.msrb.gmra.mxu3 %vm242_vm1, %v2371_v10 }
0x125d   :  { %2934 = vmatmul.msk.bf16.vlgmr.msrb.gmra.mxu2 %vm242_vm1, %v2378_v11  ;;  %2609 = vmatpush.bf16.msrb.mxu3 %v2971_v4 }
0x125f   :  { %2932 = vmatmul.msk.bf16.vlgmr.msrb.gmra.mxu0 %vm242_vm1, %v2376_v14 }
0x1261   :  { %2610 = vmatpush.bf16.msrb.mxu3 %v2970_v20 }
0x1285   :  { %v2232_v31 = vpop.xlane.xlu0 %2231 }
0x1286   :  { %3174 = vrcp.f32 %v2232_v31  ;;  %v2313_v1 = vand.u32 2147483648, %v2232_v31  ;;  %v2311_v16 = vand.u32 2147483647, %v2232_v31  ;;  %vm2307_vm7 = vweird.f32 %v2232_v31 }
0x1288   :  { %v2314_v3 = vor.u32 1.1754944e-38, %v2313_v1  ;;  %vm2312_vm8 = vcmp.eq.f32.partialorder %v2311_v16, 8.507059e+37 }
0x128c   :  { %v3175_v18 = vpop.eup %3174 }
0x128d   :  { %v2303_v42 = vmul.f32 %v3175_v18, %v2232_v31  ;;  %vm2308_vm6 = vweird.f32 %v3175_v18 }
0x128e   :  { %vm2309_vm2 = vmor %vm2307_vm7, %vm2308_vm6 }
0x128f   :  { %v2304_v15 = vsub.f32 1.0, %v2303_v42 }
0x1291   :  { %v2305_v53 = vmul.f32 %v3175_v18, %v2304_v15 }
0x1293   :  { %v2306_v54 = vadd.f32 %v3175_v18, %v2305_v53 }
0x1295   :  { %v2310_v22 = vsel %vm2309_vm2, %v3175_v18, %v2306_v54 }
0x1296   :  { %v2315_v21 = vsel %vm2312_vm8, %v2314_v3, %v2310_v22 }
0x1297   :  { %v2316_v23 = vmul.f32 %v4117_v26, %v2315_v21  ;;  %v2972_v21 = vld [vmem:[#allocation11 + $0x20] sm:$0xff] }
0x1298   :  { %v2417_v52 = vpop.f32.mrf.mxu0 }
0x1299   :  { %2367 = vst.msk [vmem:[#allocation17 + $0xa0] sm:$0xff] %vm242_vm1, %v2316_v23  ;;  %v2375_v24 = vpack.c.bf16 %v2316_v23, %v2316_v23 }
0x129b   :  { %2931 = vmatmul.msk.bf16.vlgmr.msra.gmra.mxu3 %vm242_vm1, %v2375_v24 }
0x12a0   :  { %v2419_v29 = vpop.f32.mrf.mxu0 }
0x12a8   :  { %v2438_v46 = vpop.f32.mrf.mxu1 }
0x12b0   :  { %v2440_v25 = vpop.f32.mrf.mxu1 }
0x12b6   :  { %v2459_v36 = vpop.f32.mrf.mxu2 }
0x12be   :  { %v2461_v30 = vpop.f32.mrf.mxu2 }
0x12bf   :  { %v2522_v33 = vpop.f32.mrf.mxu1 }
0x12c0   :  { %v3031_v38 = vpack.i.bf16 %v2522_v33, %v2438_v46 }
0x12c7   :  { %v2524_v48 = vpop.f32.mrf.mxu1 }
0x12dc   :  { %v2501_v6 = vpop.f32.mrf.mxu0 }
0x12dd   :  { %v3026_v34 = vpack.i.bf16 %v2501_v6, %v2417_v52 }
0x12df   :  { %3027 = vrot.lane.b32.xlu1 %v3026_v34, %s3445_s23  ;;  %v2396_v12 = vpop.f32.mrf.mxu3 }
0x12e0   :  { %v2543_v43 = vpop.f32.mrf.mxu2 }
0x12e1   :  { %v3036_v26 = vpack.i.bf16 %v2543_v43, %v2459_v36 }
0x12e3   :  { %3037 = vrot.lane.b32.xlu2 %v3036_v26, %s3456_s26  ;;  %s2786_s26 = sshll.u32 %s4213_s11, 4  ;;  %s2787_s26 = int_to_ptr.hbm [resolvable:$true] %s2786_s26 }
0x12e4   :  { %v2503_v57 = vpop.f32.mrf.mxu0 }
0x12e5   :  { %v3057_v57 = vld [vmem:[#allocation10 + $0x2] ss:$0 sm:$0xff] }
0x12e7   :  { %3032 = vrot.lane.b32.xlu1 %v3031_v38, %s3447_s14  ;;  %v2398_v41 = vpop.f32.mrf.mxu3 }
0x12e8   :  { %v2545_v44 = vpop.f32.mrf.mxu2 }
0x131e   :  { %v2480_v45 = vpop.f32.mrf.mxu3 }
0x1326   :  { %v2482_v19 = vpop.f32.mrf.mxu3 }
0x133d   :  { %v3038_v9 = vpop.permute.xlu2 %3037 }
0x133e   :  { %v3040_v58 = vunpack.i.h.bf16 %v3038_v9  ;;  %v3039_v2 = vunpack.i.l.bf16 %v3038_v9  ;;  %v3059_v9 = vld [vmem:[#allocation13 + $0x2] ss:$0 sm:$0xff] }
0x1351   :  { %v3028_v47 = vpop.permute.xlu1 %3027 }
0x1352   :  { %v3030_v40 = vunpack.i.h.bf16 %v3028_v47  ;;  %v3029_v49 = vunpack.i.l.bf16 %v3028_v47 }
0x1354   :  { %v2559_v32 = vsel %vm242_vm1, %v2396_v12, %v3029_v49  ;;  %v2574_v51 = vsel %vm242_vm1, %v2480_v45, %v3030_v40  ;;  %v3058_v45 = vld [vmem:[%s4208_s6 + $0x2] ss:$0 sm:$0xff]  ;;  %s3458_s6 = smov [#allocation17]  }
0x1355   :  { %s2797_s20 = sshll.u32 %s3458_s6, 4  ;;  %s2798_s20 = int_to_ptr.vmem [resolvable:$true] %s2797_s20 }
0x1356   :  { %2805 = dma.vmem_to_hbm [thread:$0]  %s2798_s20, 3072, %s2800_s24, [#allocation18], %s3444_s7, %s3444_s7, %s3445_s23  }
0x1359   :  { %v3033_v50 = vpop.permute.xlu1 %3032 }
0x135a   :  { %v3035_v56 = vunpack.i.h.bf16 %v3033_v50  ;;  %v3034_v37 = vunpack.i.l.bf16 %v3033_v50 }
0x135c   :  { %v2560_v59 = vsel %vm820_vm9, %v2559_v32, %v3034_v37  ;;  %v2575_v60 = vsel %vm820_vm9, %v2574_v51, %v3035_v56 }
0x135d   :  { %v2561_v61 = vsel %vm822_vm10, %v2560_v59, %v3039_v2  ;;  %v2576_v62 = vsel %vm822_vm10, %v2575_v60, %v3040_v58 }
0x135e   :  { %v2577_v27 = vpack.c.bf16 %v2576_v62, %v2561_v61 }
0x1360   :  { %2944 = vmatmul.msk.bf16.vlgmr.msrb.gmra.mxu3 %vm191_vm0, %v2577_v27 }
0x13e3   :  { %v2612_v0 = vpop.f32.mrf.mxu3 }
0x13e4   :  { %v2613_v35 = vadd.f32 %v3056_v28, %v2612_v0 }
0x13e6   :  { %v2617_v5 = vadd.f32 %v2613_v35, %v3985_v17 }
0x13e8   :  { %v2619_v7 = vsel %vm191_vm0, %v2617_v5, 0.0 }
0x13e9   :  { %2620 = vadd.xlane.f32.xlu1 %v2619_v7 }
0x13eb   :  { %v2614_v8 = vpop.f32.mrf.mxu3 }
0x13ec   :  { %v2615_v39 = vadd.f32 %v3056_v28, %v2614_v8 }
0x13ee   :  { %v2618_v10 = vadd.f32 %v2615_v39, %v3989_v63  ;;  %v2973_v63 = vld [vmem:[#allocation11 + $0x28] sm:$0xff] }
0x13ef   :  { %2709 = vmatpush.bf16.msra.mxu0 %v2973_v63 }
0x13f0   :  { %v2622_v11 = vsel %vm191_vm0, %v2618_v10, 0.0 }
0x13f1   :  { %2623 = vadd.xlane.f32.xlu0 %v2622_v11 }
0x13f3   :  { %2710 = vmatpush.bf16.msra.mxu0 %v2972_v21 }
0x145c   :  { %v2621_v13 = vpop.xlane.xlu1 %2620 }
0x145d   :  { %v2625_v14 = vmul.f32 %v2621_v13, %v3753_v55 }
0x145f   :  { %v2627_v31 = vsub.f32 %v2617_v5, %v2625_v14 }
0x1461   :  { %v2629_v18 = vmul.f32 %v2627_v31, %v2627_v31 }
0x1463   :  { %v2631_v42 = vsel %vm191_vm0, %v2629_v18, 0.0 }
0x1464   :  { %v2624_v15 = vpop.xlane.xlu0 %2623  ;;  %2632 = vadd.xlane.f32.xlu0 %v2631_v42 }
0x1465   :  { %v2626_v17 = vmul.f32 %v2624_v15, %v3753_v55 }
0x1467   :  { %v2628_v1 = vsub.f32 %v2618_v10, %v2626_v17 }
0x1469   :  { %v2630_v53 = vmul.f32 %v2628_v1, %v2628_v1 }
0x146b   :  { %v2634_v16 = vsel %vm191_vm0, %v2630_v53, 0.0 }
0x146c   :  { %2635 = vadd.xlane.f32.xlu2 %v2634_v16 }
0x14d7   :  { %v2633_v54 = vpop.xlane.xlu0 %2632 }
0x14d8   :  { %v2637_v3 = vmul.f32 %v2633_v54, %v3753_v55  ;;  %v3060_v54 = vld [vmem:[%s4211_s9 + $0x2] ss:$0 sm:$0xff] }
0x14da   :  { %v2639_v22 = vadd.f32 1e-05, %v2637_v3 }
0x14dc   :  { %3176 = vrsqrt.f32 %v2639_v22  ;;  %vm2647_vm9 = vweird.f32 %v2639_v22 }
0x14df   :  { %v2636_v23 = vpop.xlane.xlu2 %2635 }
0x14e0   :  { %v2638_v52 = vmul.f32 %v2636_v23, %v3753_v55 }
0x14e2   :  { %v3177_v24 = vpop.eup %3176  ;;  %v2640_v29 = vadd.f32 1e-05, %v2638_v52 }
0x14e3   :  { %v2642_v46 = vmul.f32 %v3177_v24, %v2639_v22  ;;  %vm2648_vm1 = vweird.f32 %v3177_v24 }
0x14e4   :  { %3178 = vrsqrt.f32 %v2640_v29  ;;  %vm2649_vm10 = vmor %vm2647_vm9, %vm2648_vm1  ;;  %vm2657_vm12 = vweird.f32 %v2640_v29 }
0x14e5   :  { %v2643_v25 = vmul.f32 %v3177_v24, %v2642_v46 }
0x14e7   :  { %v2644_v36 = vmul.f32 0.5, %v2643_v25 }
0x14e9   :  { %v2645_v30 = vsub.f32 1.5, %v2644_v36 }
0x14ea   :  { %v3179_v33 = vpop.eup %3178 }
0x14eb   :  { %v2646_v48 = vmul.f32 %v3177_v24, %v2645_v30  ;;  %v2652_v6 = vmul.f32 %v3179_v33, %v2640_v29  ;;  %vm2658_vm11 = vweird.f32 %v3179_v33 }
0x14ec   :  { %vm2659_vm13 = vmor %vm2657_vm12, %vm2658_vm11 }
0x14ed   :  { %v2653_v34 = vmul.f32 %v3179_v33, %v2652_v6  ;;  %v2650_v12 = vsel %vm2649_vm10, %v3177_v24, %v2646_v48 }
0x14ee   :  { %v2661_v38 = vmul.f32 %v2650_v12, %v2627_v31 }
0x14ef   :  { %v2654_v43 = vmul.f32 0.5, %v2653_v34 }
0x14f0   :  { %v2668_v19 = vmul.f32 %v3057_v57, %v2661_v38 }
0x14f1   :  { %v2655_v26 = vsub.f32 1.5, %v2654_v43 }
0x14f2   :  { %v2675_v47 = vadd.f32 %v3058_v45, %v2668_v19 }
0x14f3   :  { %v2656_v41 = vmul.f32 %v3179_v33, %v2655_v26 }
0x14f5   :  { %v2660_v44 = vsel %vm2659_vm13, %v3179_v33, %v2656_v41 }
0x14f6   :  { %v2662_v4 = vmul.f32 %v2660_v44, %v2628_v1 }
0x14f8   :  { %v2669_v20 = vmul.f32 %v3057_v57, %v2662_v4 }
0x14fa   :  { %v2676_v40 = vadd.f32 %v3058_v45, %v2669_v20 }
0x14fc   :  { %v2677_v49 = vpack.c.bf16 %v2676_v40, %v2675_v47 }
0x14fe   :  { %2954 = vmatmul.msk.bf16.vlgmr.msra.gmra.mxu0 %vm191_vm0, %v2677_v49 }
0x157b   :  { %v2712_v50 = vpop.f32.mrf.mxu0 }
0x157c   :  { %v2713_v56 = vadd.f32 %v3059_v9, %v2712_v50 }
0x157e   :  { %v2717_v37 = vadd.f32 %v2713_v56, %v2675_v47 }
0x1580   :  { %v2719_v58 = vsel %vm191_vm0, %v2717_v37, 0.0 }
0x1581   :  { %2720 = vadd.xlane.f32.xlu0 %v2719_v58 }
0x1583   :  { %v2714_v2 = vpop.f32.mrf.mxu0 }
0x1584   :  { %v2715_v32 = vadd.f32 %v3059_v9, %v2714_v2 }
0x1586   :  { %v2718_v51 = vadd.f32 %v2715_v32, %v2676_v40 }
0x1588   :  { %v2722_v59 = vsel %vm191_vm0, %v2718_v51, 0.0 }
0x1589   :  { %2723 = vadd.xlane.f32.xlu0 %v2722_v59 }
0x15f4   :  { %v2721_v60 = vpop.xlane.xlu0 %2720 }
0x15f5   :  { %v2725_v61 = vmul.f32 %v2721_v60, %v3753_v55 }
0x15f7   :  { %v2727_v62 = vsub.f32 %v2717_v37, %v2725_v61 }
0x15f9   :  { %v2729_v27 = vmul.f32 %v2727_v62, %v2727_v62 }
0x15fb   :  { %v2731_v28 = vsel %vm191_vm0, %v2729_v27, 0.0 }
0x15fc   :  { %2732 = vadd.xlane.f32.xlu0 %v2731_v28  ;;  %v2724_v0 = vpop.xlane.xlu0 %2723 }
0x15fd   :  { %v2726_v35 = vmul.f32 %v2724_v0, %v3753_v55 }
0x15ff   :  { %v2728_v5 = vsub.f32 %v2718_v51, %v2726_v35 }
0x1601   :  { %v2730_v7 = vmul.f32 %v2728_v5, %v2728_v5 }
0x1603   :  { %v2734_v8 = vsel %vm191_vm0, %v2730_v7, 0.0 }
0x1604   :  { %2735 = vadd.xlane.f32.xlu1 %v2734_v8 }
0x166f   :  { %v2733_v39 = vpop.xlane.xlu0 %2732 }
0x1670   :  { %v2737_v10 = vmul.f32 %v2733_v39, %v3753_v55 }
0x1672   :  { %v2739_v11 = vadd.f32 1e-05, %v2737_v10 }
0x1674   :  { %3180 = vrsqrt.f32 %v2739_v11  ;;  %vm2747_vm15 = vweird.f32 %v2739_v11 }
0x1677   :  { %v2736_v13 = vpop.xlane.xlu1 %2735 }
0x1678   :  { %v2738_v14 = vmul.f32 %v2736_v13, %v3753_v55  ;;  %v3061_v55 = vld [vmem:[#allocation14 + $0x2] ss:$0 sm:$0xff] }
0x167a   :  { %v3181_v31 = vpop.eup %3180  ;;  %v2740_v18 = vadd.f32 1e-05, %v2738_v14 }
0x167b   :  { %v2742_v42 = vmul.f32 %v3181_v31, %v2739_v11  ;;  %vm2748_vm14 = vweird.f32 %v3181_v31 }
0x167c   :  { %3182 = vrsqrt.f32 %v2740_v18  ;;  %vm2749_vm3 = vmor %vm2747_vm15, %vm2748_vm14  ;;  %vm2757_vm5 = vweird.f32 %v2740_v18 }
0x167d   :  { %v2743_v15 = vmul.f32 %v3181_v31, %v2742_v42 }
0x167f   :  { %v2744_v17 = vmul.f32 0.5, %v2743_v15 }
0x1681   :  { %v2745_v1 = vsub.f32 1.5, %v2744_v17 }
0x1682   :  { %v3183_v53 = vpop.eup %3182 }
0x1683   :  { %v2746_v16 = vmul.f32 %v3181_v31, %v2745_v1  ;;  %v2752_v63 = vmul.f32 %v3183_v53, %v2740_v18  ;;  %vm2758_vm4 = vweird.f32 %v3183_v53 }
0x1684   :  { %vm2759_vm6 = vmor %vm2757_vm5, %vm2758_vm4 }
0x1685   :  { %v2750_v3 = vsel %vm2749_vm3, %v3181_v31, %v2746_v16  ;;  %v2753_v22 = vmul.f32 %v3183_v53, %v2752_v63 }
0x1686   :  { %v2761_v21 = vmul.f32 %v2750_v3, %v2727_v62 }
0x1687   :  { %v2754_v23 = vmul.f32 0.5, %v2753_v22 }
0x1688   :  { %v2768_v52 = vmul.f32 %v3060_v54, %v2761_v21 }
0x1689   :  { %v2755_v24 = vsub.f32 1.5, %v2754_v23 }
0x168a   :  { %v2775_v29 = vadd.f32 %v3061_v55, %v2768_v52 }
0x168b   :  { %v2756_v46 = vmul.f32 %v3183_v53, %v2755_v24 }
0x168c   :  { %2778 = vst.msk [vmem:[#allocation16 + $0x20] sm:$0xff] %vm191_vm0, %v2775_v29 }
0x168d   :  { %v2760_v25 = vsel %vm2759_vm6, %v3183_v53, %v2756_v46 }
0x168e   :  { %v2762_v36 = vmul.f32 %v2760_v25, %v2728_v5 }
0x1690   :  { %v2769_v30 = vmul.f32 %v3060_v54, %v2762_v36 }
0x1692   :  { %v2776_v33 = vadd.f32 %v3061_v55, %v2769_v30 }
0x1694   :  { %2779 = vst.msk [vmem:[#allocation16 + $0x28] sm:$0xff] %vm191_vm0, %v2776_v33 }
0x1695   :  { %2792 = dma.vmem_to_hbm [thread:$0]  %s2785_s25, 768, %s2787_s26, [#allocation4], %s3444_s7, %s3444_s7, %s3445_s23  }
0x1696   :  { %3434 = dma.done.wait [#allocation4], 768  }
0x1697   :  { %3435 = vsyncadd [#allocation4], 4294966528 }
0x1698   :  { %3436 = dma.done.wait [#allocation18], 3072  }
0x1699   :  { %3437 = vsyncadd [#allocation18], 4294964224 }
0x169a   :  { %2814 = vsyncpa [#allocation3], 1 }
0x169b   :  { %2815 = vsyncpa [#allocation6], 1 }
0x169c   :  { %2816 = vsyncpa [#allocation9], 1 }
0x169d   :  { %2817 = vsyncpa [#allocation12], 1 }
0x169e   :  { %2818 = vsyncpa [#allocation15], 1 }
0x169f   :  { %2819 = vsyncpa [#allocation4], 1 }
0x16a0   :  { %2820 = vsyncpa [#allocation18], 1 }

</bundles_post_ra>
